<compile_context>
chip_gen: v6e
topology: v6e:2x2x1
jax: 0.10.0
libtpu: 0.0.40
codegen_flags: <defaults>
</compile_context>

<pallas_src>
import functools

import numpy as np
import jax
import jax.numpy as jnp
from jax.experimental import pallas as pl
from jax.experimental.pallas import tpu as pltpu


# --------------------------------------------------------------------------
# Kernel A (default): single invocation, all heads + all layers fused in-body
# --------------------------------------------------------------------------

def _fused_all_heads_kernel(*refs, n_layers, out_channels):
    x_ref = refs[0]                                  # (N, C)            f32
    w_refs = refs[1:1 + n_layers]                    # (OC, d_in, d_out) bf16
    b_refs = refs[1 + n_layers:1 + 2 * n_layers]     # (OC, 1, d_out)    f32
    out_ref = refs[1 + 2 * n_layers]                 # (OC, N, d_last)   f32

    x0 = x_ref[...]                                  # pooled features (N, C)
    for h in range(out_channels):                    # unrolled: OC is small
        x = x0
        for l in range(n_layers):
            w = w_refs[l][h]                         # (d_in, d_out) bf16
            b = b_refs[l][h]                         # (1, d_out)    f32
            x = jnp.dot(x.astype(jnp.bfloat16), w,
                        preferred_element_type=jnp.float32) + b
            x = jnp.maximum(x, 0.0)                  # ReLU after every layer
        out_ref[h] = x


# --------------------------------------------------------------------------
# Kernel B (fallback): one grid step per head (for weight sets too big to
# keep fully resident).  Heads shard across TCs on v7x via "parallel".
# --------------------------------------------------------------------------

def _per_head_kernel(*refs, n_layers):
    x_ref = refs[0]                                  # (N, C)        f32 (same block every step)
    w_refs = refs[1:1 + n_layers]                    # (d_in, d_out) bf16
    b_refs = refs[1 + n_layers:1 + 2 * n_layers]     # (1, d_out)    f32
    out_ref = refs[1 + 2 * n_layers]                 # (N, d_last)   f32

    x = x_ref[...]
    for l in range(n_layers):
        x = jnp.dot(x.astype(jnp.bfloat16), w_refs[l][...],
                    preferred_element_type=jnp.float32) + b_refs[l][...]
        x = jnp.maximum(x, 0.0)
    out_ref[...] = x


# --------------------------------------------------------------------------
# Wrapper
# --------------------------------------------------------------------------

def cornet_custom_head_forward(params, inp, *,
                               single_step_vmem_budget=24 * 1024 * 1024):
    """inp: (N, C, H, W) float32 -> (N, 1000, out_channels) or (N, 1000)."""
    N, C, H, W = inp.shape
    ws = params["w"]                                 # list of (OC, d_in, d_out)
    bs = params["b"]                                 # list of (OC, d_out)
    n_layers = len(ws)
    out_channels = int(ws[0].shape[0])
    d_last = int(ws[-1].shape[-1])

    # AdaptiveAvgPool2d(1) + Flatten, hoisted out of the kernel (perf review):
    # feeds the kernel a tiny (N, C) LHS already in (sublane=N, lane=C) layout.
    pooled = jnp.mean(inp.astype(jnp.float32), axis=(2, 3))          # (N, C)

    w_bf16 = [w.astype(jnp.bfloat16) for w in ws]
    b_f32 = [b.reshape(out_channels, 1, -1).astype(jnp.float32) for b in bs]

    weight_bytes = sum(int(np.prod(w.shape)) * 2 for w in w_bf16)    # bf16

    if weight_bytes <= single_step_vmem_budget:
        # ---- default: one fused invocation, no grid, no per-step overhead ----
        out = pl.pallas_call(
            functools.partial(_fused_all_heads_kernel,
                              n_layers=n_layers, out_channels=out_channels),
            out_shape=jax.ShapeDtypeStruct((out_channels, N, d_last),
                                           jnp.float32),
            compiler_params=pltpu.CompilerParams(
                vmem_limit_bytes=32 * 1024 * 1024),
        )(pooled, *w_bf16, *b_f32)
    else:
        # ---- fallback: grid over heads, per-head weight slabs streamed in ----
        in_specs = [pl.BlockSpec((N, C), lambda h: (0, 0))]
        for w in w_bf16:
            d_in, d_out = int(w.shape[1]), int(w.shape[2])
            in_specs.append(
                pl.BlockSpec((None, d_in, d_out), lambda h: (h, 0, 0)))
        for b in b_f32:
            d_out = int(b.shape[-1])
            in_specs.append(
                pl.BlockSpec((None, 1, d_out), lambda h: (h, 0, 0)))

        out = pl.pallas_call(
            functools.partial(_per_head_kernel, n_layers=n_layers),
            out_shape=jax.ShapeDtypeStruct((out_channels, N, d_last),
                                           jnp.float32),
            grid=(out_channels,),
            in_specs=in_specs,
            out_specs=pl.BlockSpec((None, N, d_last), lambda h: (h, 0, 0)),
            compiler_params=pltpu.CompilerParams(
                dimension_semantics=("parallel",),
                vmem_limit_bytes=32 * 1024 * 1024),
        )(pooled, *w_bf16, *b_f32)

    if out_channels > 1:
        # torch.stack(out, axis=2): (N, 1000, out_channels).
        # TODO(synk): drop this transpose if downstream accepts (OC, N, 1000).
        return jnp.transpose(out, (1, 2, 0))
    return out[0]


# --------------------------------------------------------------------------
# Deterministic parameter init (shapes as in CORnetCustomHead.__init__)
# --------------------------------------------------------------------------

def head_sizes_like_pytorch(num_features, head_depth):
    return [int(x) for x in np.linspace(num_features, 1000, head_depth + 1)]


def init_params(key, num_features, out_channels, head_depth):
    sizes = head_sizes_like_pytorch(num_features, head_depth)
    keys = jax.random.split(key, 2 * head_depth)
    ws, bs = [], []
    for l in range(head_depth):
        d_in, d_out = sizes[l], sizes[l + 1]
        kw, kb = keys[2 * l], keys[2 * l + 1]
        ws.append(jax.random.normal(kw, (out_channels, d_in, d_out),
                                    jnp.float32) / np.sqrt(d_in))
        bs.append(0.1 * jax.random.normal(kb, (out_channels, d_out),
                                          jnp.float32))
    return {"w": ws, "b": bs}


# --------------------------------------------------------------------------
# Pure-JAX f32 reference (matches the PyTorch forward semantics)
# --------------------------------------------------------------------------

def reference_forward(params, inp):
    x = jnp.mean(inp.astype(jnp.float32), axis=(2, 3))      # avgpool(1)+flatten
    out_channels = params["w"][0].shape[0]
    outs = []
    for h in range(out_channels):
        xo = x
        for w, b in zip(params["w"], params["b"]):
            xo = jnp.maximum(xo @ w[h] + b[h], 0.0)          # ReLU after every layer
        outs.append(xo)
    if out_channels > 1:
        return jnp.stack(outs, axis=2)
    return outs[0]


if __name__ == "__main__":
    key = jax.random.PRNGKey(0)
    kx, kp = jax.random.split(key)

    N, num_features, H, W = 2, 256, 8, 8
    out_channels, head_depth = 3, 2      # head_sizes = [256, 628, 1000]

    inp = jax.random.normal(kx, (N, num_features, H, W), jnp.float32)
    params = init_params(kp, num_features, out_channels, head_depth)

    ref = reference_forward(params, inp)

    # Default fused single-step path.
    out = cornet_custom_head_forward(params, inp)
    out = jax.block_until_ready(out)
    np.testing.assert_allclose(np.asarray(out), np.asarray(ref),
                               rtol=5e-2, atol=5e-2)

    # Force and verify the grid-over-heads fallback path as well.
    out_grid = cornet_custom_head_forward(params, inp,
                                          single_step_vmem_budget=0)
    out_grid = jax.block_until_ready(out_grid)
    np.testing.assert_allclose(np.asarray(out_grid), np.asarray(ref),
                               rtol=5e-2, atol=5e-2)

    print("KERNEL_OK")
</pallas_src>

<mosaic_0001>
module attributes {stable_mosaic.version = 11 : i64} {
  func.func @_fused_all_heads_kernel(%arg0: memref<2x256xf32, #tpu.memory_space<vmem>>, %arg1: memref<3x256x628xbf16, #tpu.memory_space<vmem>>, %arg2: memref<3x628x1000xbf16, #tpu.memory_space<vmem>>, %arg3: memref<3x1x628xf32, #tpu.memory_space<vmem>>, %arg4: memref<3x1x1000xf32, #tpu.memory_space<vmem>>, %arg5: memref<3x2x1000xf32, #tpu.memory_space<vmem>>) attributes {dimension_semantics = [], scalar_prefetch = 0 : i64, scratch_operands = 0 : i64, tpu.core_type = #tpu.core_type<tc>} {
    %c0 = arith.constant 0 : index
    %c0_0 = arith.constant 0 : index
    %0 = vector.load %arg0[%c0, %c0_0] : memref<2x256xf32, #tpu.memory_space<vmem>>, vector<2x256xf32>
    %c0_1 = arith.constant 0 : index
    %c0_2 = arith.constant 0 : index
    %c0_3 = arith.constant 0 : index
    %1 = vector.load %arg1[%c0_1, %c0_2, %c0_3] : memref<3x256x628xbf16, #tpu.memory_space<vmem>>, vector<1x256x628xbf16>
    %2 = vector.shape_cast %1 : vector<1x256x628xbf16> to vector<256x628xbf16>
    %c0_4 = arith.constant 0 : index
    %c0_5 = arith.constant 0 : index
    %c0_6 = arith.constant 0 : index
    %3 = vector.load %arg3[%c0_4, %c0_5, %c0_6] : memref<3x1x628xf32, #tpu.memory_space<vmem>>, vector<1x1x628xf32>
    %4 = vector.shape_cast %3 : vector<1x1x628xf32> to vector<1x628xf32>
    %5 = arith.truncf %0 : vector<2x256xf32> to vector<2x256xbf16>
    %cst = arith.constant dense<0.000000e+00> : vector<2x628xf32>
    %6 = tpu.matmul %5, %2, %cst {dimension_numbers = #tpu.dot_dimension_numbers<[1], [0], [0], [1], [0, 0, 1, 1], [], []>} : vector<2x256xbf16>, vector<256x628xbf16>, vector<2x628xf32> -> vector<2x628xf32>
    %7 = vector.broadcast %4 : vector<1x628xf32> to vector<2x628xf32>
    %8 = arith.addf %6, %7 : vector<2x628xf32>
    %cst_7 = arith.constant 0.000000e+00 : f32
    %9 = vector.broadcast %cst_7 : f32 to vector<2x628xf32>
    %10 = arith.maximumf %8, %9 : vector<2x628xf32>
    %c0_8 = arith.constant 0 : index
    %c0_9 = arith.constant 0 : index
    %c0_10 = arith.constant 0 : index
    %11 = vector.load %arg2[%c0_8, %c0_9, %c0_10] : memref<3x628x1000xbf16, #tpu.memory_space<vmem>>, vector<1x628x1000xbf16>
    %12 = vector.shape_cast %11 : vector<1x628x1000xbf16> to vector<628x1000xbf16>
    %c0_11 = arith.constant 0 : index
    %c0_12 = arith.constant 0 : index
    %c0_13 = arith.constant 0 : index
    %13 = vector.load %arg4[%c0_11, %c0_12, %c0_13] : memref<3x1x1000xf32, #tpu.memory_space<vmem>>, vector<1x1x1000xf32>
    %14 = vector.shape_cast %13 : vector<1x1x1000xf32> to vector<1x1000xf32>
    %15 = arith.truncf %10 : vector<2x628xf32> to vector<2x628xbf16>
    %cst_14 = arith.constant dense<0.000000e+00> : vector<2x1000xf32>
    %16 = tpu.matmul %15, %12, %cst_14 {dimension_numbers = #tpu.dot_dimension_numbers<[1], [0], [0], [1], [0, 0, 1, 1], [], []>} : vector<2x628xbf16>, vector<628x1000xbf16>, vector<2x1000xf32> -> vector<2x1000xf32>
    %17 = vector.broadcast %14 : vector<1x1000xf32> to vector<2x1000xf32>
    %18 = arith.addf %16, %17 : vector<2x1000xf32>
    %cst_15 = arith.constant 0.000000e+00 : f32
    %19 = vector.broadcast %cst_15 : f32 to vector<2x1000xf32>
    %20 = arith.maximumf %18, %19 : vector<2x1000xf32>
    %c0_16 = arith.constant 0 : index
    %c0_17 = arith.constant 0 : index
    %c0_18 = arith.constant 0 : index
    %21 = vector.load %arg5[%c0_16, %c0_17, %c0_18] : memref<3x2x1000xf32, #tpu.memory_space<vmem>>, vector<1x2x1000xf32>
    %22 = vector.shape_cast %21 : vector<1x2x1000xf32> to vector<2x1000xf32>
    %23 = vector.shape_cast %20 : vector<2x1000xf32> to vector<1x2x1000xf32>
    tpu.vector_store %arg5[%c0_16, %c0_17, %c0_18], %23 {strides = array<i32>} : memref<3x2x1000xf32, #tpu.memory_space<vmem>>, vector<1x2x1000xf32>,
    %c1 = arith.constant 1 : index
    %c0_19 = arith.constant 0 : index
    %c0_20 = arith.constant 0 : index
    %24 = vector.load %arg1[%c1, %c0_19, %c0_20] : memref<3x256x628xbf16, #tpu.memory_space<vmem>>, vector<1x256x628xbf16>
    %25 = vector.shape_cast %24 : vector<1x256x628xbf16> to vector<256x628xbf16>
    %c1_21 = arith.constant 1 : index
    %c0_22 = arith.constant 0 : index
    %c0_23 = arith.constant 0 : index
    %26 = vector.load %arg3[%c1_21, %c0_22, %c0_23] : memref<3x1x628xf32, #tpu.memory_space<vmem>>, vector<1x1x628xf32>
    %27 = vector.shape_cast %26 : vector<1x1x628xf32> to vector<1x628xf32>
    %28 = arith.truncf %0 : vector<2x256xf32> to vector<2x256xbf16>
    %cst_24 = arith.constant dense<0.000000e+00> : vector<2x628xf32>
    %29 = tpu.matmul %28, %25, %cst_24 {dimension_numbers = #tpu.dot_dimension_numbers<[1], [0], [0], [1], [0, 0, 1, 1], [], []>} : vector<2x256xbf16>, vector<256x628xbf16>, vector<2x628xf32> -> vector<2x628xf32>
    %30 = vector.broadcast %27 : vector<1x628xf32> to vector<2x628xf32>
    %31 = arith.addf %29, %30 : vector<2x628xf32>
    %cst_25 = arith.constant 0.000000e+00 : f32
    %32 = vector.broadcast %cst_25 : f32 to vector<2x628xf32>
    %33 = arith.maximumf %31, %32 : vector<2x628xf32>
    %c1_26 = arith.constant 1 : index
    %c0_27 = arith.constant 0 : index
    %c0_28 = arith.constant 0 : index
    %34 = vector.load %arg2[%c1_26, %c0_27, %c0_28] : memref<3x628x1000xbf16, #tpu.memory_space<vmem>>, vector<1x628x1000xbf16>
    %35 = vector.shape_cast %34 : vector<1x628x1000xbf16> to vector<628x1000xbf16>
    %c1_29 = arith.constant 1 : index
    %c0_30 = arith.constant 0 : index
    %c0_31 = arith.constant 0 : index
    %36 = vector.load %arg4[%c1_29, %c0_30, %c0_31] : memref<3x1x1000xf32, #tpu.memory_space<vmem>>, vector<1x1x1000xf32>
    %37 = vector.shape_cast %36 : vector<1x1x1000xf32> to vector<1x1000xf32>
    %38 = arith.truncf %33 : vector<2x628xf32> to vector<2x628xbf16>
    %cst_32 = arith.constant dense<0.000000e+00> : vector<2x1000xf32>
    %39 = tpu.matmul %38, %35, %cst_32 {dimension_numbers = #tpu.dot_dimension_numbers<[1], [0], [0], [1], [0, 0, 1, 1], [], []>} : vector<2x628xbf16>, vector<628x1000xbf16>, vector<2x1000xf32> -> vector<2x1000xf32>
    %40 = vector.broadcast %37 : vector<1x1000xf32> to vector<2x1000xf32>
    %41 = arith.addf %39, %40 : vector<2x1000xf32>
    %cst_33 = arith.constant 0.000000e+00 : f32
    %42 = vector.broadcast %cst_33 : f32 to vector<2x1000xf32>
    %43 = arith.maximumf %41, %42 : vector<2x1000xf32>
    %c1_34 = arith.constant 1 : index
    %c0_35 = arith.constant 0 : index
    %c0_36 = arith.constant 0 : index
    %44 = vector.load %arg5[%c1_34, %c0_35, %c0_36] : memref<3x2x1000xf32, #tpu.memory_space<vmem>>, vector<1x2x1000xf32>
    %45 = vector.shape_cast %44 : vector<1x2x1000xf32> to vector<2x1000xf32>
    %46 = vector.shape_cast %43 : vector<2x1000xf32> to vector<1x2x1000xf32>
    tpu.vector_store %arg5[%c1_34, %c0_35, %c0_36], %46 {strides = array<i32>} : memref<3x2x1000xf32, #tpu.memory_space<vmem>>, vector<1x2x1000xf32>,
    %c2 = arith.constant 2 : index
    %c0_37 = arith.constant 0 : index
    %c0_38 = arith.constant 0 : index
    %47 = vector.load %arg1[%c2, %c0_37, %c0_38] : memref<3x256x628xbf16, #tpu.memory_space<vmem>>, vector<1x256x628xbf16>
    %48 = vector.shape_cast %47 : vector<1x256x628xbf16> to vector<256x628xbf16>
    %c2_39 = arith.constant 2 : index
    %c0_40 = arith.constant 0 : index
    %c0_41 = arith.constant 0 : index
    %49 = vector.load %arg3[%c2_39, %c0_40, %c0_41] : memref<3x1x628xf32, #tpu.memory_space<vmem>>, vector<1x1x628xf32>
    %50 = vector.shape_cast %49 : vector<1x1x628xf32> to vector<1x628xf32>
    %51 = arith.truncf %0 : vector<2x256xf32> to vector<2x256xbf16>
    %cst_42 = arith.constant dense<0.000000e+00> : vector<2x628xf32>
    %52 = tpu.matmul %51, %48, %cst_42 {dimension_numbers = #tpu.dot_dimension_numbers<[1], [0], [0], [1], [0, 0, 1, 1], [], []>} : vector<2x256xbf16>, vector<256x628xbf16>, vector<2x628xf32> -> vector<2x628xf32>
    %53 = vector.broadcast %50 : vector<1x628xf32> to vector<2x628xf32>
    %54 = arith.addf %52, %53 : vector<2x628xf32>
    %cst_43 = arith.constant 0.000000e+00 : f32
    %55 = vector.broadcast %cst_43 : f32 to vector<2x628xf32>
    %56 = arith.maximumf %54, %55 : vector<2x628xf32>
    %c2_44 = arith.constant 2 : index
    %c0_45 = arith.constant 0 : index
    %c0_46 = arith.constant 0 : index
    %57 = vector.load %arg2[%c2_44, %c0_45, %c0_46] : memref<3x628x1000xbf16, #tpu.memory_space<vmem>>, vector<1x628x1000xbf16>
    %58 = vector.shape_cast %57 : vector<1x628x1000xbf16> to vector<628x1000xbf16>
    %c2_47 = arith.constant 2 : index
    %c0_48 = arith.constant 0 : index
    %c0_49 = arith.constant 0 : index
    %59 = vector.load %arg4[%c2_47, %c0_48, %c0_49] : memref<3x1x1000xf32, #tpu.memory_space<vmem>>, vector<1x1x1000xf32>
    %60 = vector.shape_cast %59 : vector<1x1x1000xf32> to vector<1x1000xf32>
    %61 = arith.truncf %56 : vector<2x628xf32> to vector<2x628xbf16>
    %cst_50 = arith.constant dense<0.000000e+00> : vector<2x1000xf32>
    %62 = tpu.matmul %61, %58, %cst_50 {dimension_numbers = #tpu.dot_dimension_numbers<[1], [0], [0], [1], [0, 0, 1, 1], [], []>} : vector<2x628xbf16>, vector<628x1000xbf16>, vector<2x1000xf32> -> vector<2x1000xf32>
    %63 = vector.broadcast %60 : vector<1x1000xf32> to vector<2x1000xf32>
    %64 = arith.addf %62, %63 : vector<2x1000xf32>
    %cst_51 = arith.constant 0.000000e+00 : f32
    %65 = vector.broadcast %cst_51 : f32 to vector<2x1000xf32>
    %66 = arith.maximumf %64, %65 : vector<2x1000xf32>
    %c2_52 = arith.constant 2 : index
    %c0_53 = arith.constant 0 : index
    %c0_54 = arith.constant 0 : index
    %67 = vector.load %arg5[%c2_52, %c0_53, %c0_54] : memref<3x2x1000xf32, #tpu.memory_space<vmem>>, vector<1x2x1000xf32>
    %68 = vector.shape_cast %67 : vector<1x2x1000xf32> to vector<2x1000xf32>
    %69 = vector.shape_cast %66 : vector<2x1000xf32> to vector<1x2x1000xf32>
    tpu.vector_store %arg5[%c2_52, %c0_53, %c0_54], %69 {strides = array<i32>} : memref<3x2x1000xf32, #tpu.memory_space<vmem>>, vector<1x2x1000xf32>,
    return
  }
}

</mosaic_0001>

<bundles_post_ra>
// kernel: tpu_custom_call.1
= control target key start
LH: loop header
LB: loop body
LE: loop exit
PB: predicated region body
PF: predicated region fallthrough
CT: control target
= control target key end

     0   :  { %vm2649_vm0 = vcmask 1041408   ;;  %s16156_s0 = inlined_call_operand.vmem [shape: f32[2,256], index: 0, kind: input, shape index: {}]   ;;  %s16157_s1 = inlined_call_operand.vmem [shape: bf16[3,256,628], index: 1, kind: input, shape index: {}]   ;;  %s16158_s2 = inlined_call_operand.vmem [shape: bf16[3,628,1000], index: 2, kind: input, shape index: {}]   ;;  %s16159_s3 = inlined_call_operand.vmem [shape: f32[3,1,628], index: 3, kind: input, shape index: {}]   ;;  %s16160_s4 = inlined_call_operand.vmem [shape: f32[3,1,1000], index: 4, kind: input, shape index: {}]   ;;  %s16161_s5 = inlined_call_operand.hbm [shape: f32[3,2,1000], index: 5, kind: output, shape index: {}]  }
   0x1   :  { %v11740_v0 = vld [vmem:[%s16157_s1 + $0x11c] ss:$20 sps:$4 sm:$0xff]   ;;  %v11742_v1 = vld [vmem:[%s16157_s1 + $0x124] ss:$20 sps:$4 sm:$0xff]   ;;  %v11745_v3 = vld [vmem:[%s16157_s1 + $0x120] ss:$20 sps:$4 sm:$0xff]  }
   0x2   :  { %575 = vmatprep.subr.bf16.mxu0 %v11740_v0  ;;  %v11744_v2 = vld [vmem:[%s16157_s1 + $0x118] ss:$20 sps:$4 sm:$0xff]   ;;  %616 = vmatprep.subr.bf16.mxu1 %v11742_v1  ;;  %v11746_v4 = vld [vmem:[%s16157_s1 + $0xf4] ss:$20 sps:$4 sm:$0xff]   ;;  %v11748_v5 = vld [vmem:[%s16157_s1 + $0xfc] ss:$20 sps:$4 sm:$0xff]  }
   0x3   :  { %576 = vmatpush1.bf16.msra.mxu0 %v11744_v2  ;;  %617 = vmatpush1.bf16.msra.mxu1 %v11745_v3  ;;  %v11750_v6 = vld [vmem:[%s16157_s1 + $0xf0] ss:$20 sps:$4 sm:$0xff]   ;;  %v11751_v7 = vld [vmem:[%s16157_s1 + $0xf8] ss:$20 sps:$4 sm:$0xff]   ;;  %v11754_v9 = vld [vmem:[%s16157_s1 + $0xd4] ss:$20 sps:$4 sm:$0xff]  }
   0x4   :  { %577 = vmatprep.subr.bf16.mxu0 %v11746_v4  ;;  %618 = vmatprep.subr.bf16.mxu1 %v11748_v5  ;;  %v11752_v8 = vld [vmem:[%s16157_s1 + $0xcc] ss:$20 sps:$4 sm:$0xff]   ;;  %v11756_v10 = vld [vmem:[%s16157_s1 + $0xc8] ss:$20 sps:$4 sm:$0xff]   ;;  %v11757_v11 = vld [vmem:[%s16157_s1 + $0xd0] ss:$20 sps:$4 sm:$0xff]  }
   0x5   :  { %v11758_v12 = vld [vmem:[%s16157_s1 + $0xa4] ss:$20 sps:$4 sm:$0xff]   ;;  %v11760_v13 = vld [vmem:[%s16157_s1 + $0xac] ss:$20 sps:$4 sm:$0xff]   ;;  %v11763_v15 = vld [vmem:[%s16157_s1 + $0xa8] ss:$20 sps:$4 sm:$0xff]  }
   0x6   :  { %v11762_v14 = vld [vmem:[%s16157_s1 + $0xa0] ss:$20 sps:$4 sm:$0xff]   ;;  %v11764_v16 = vld [vmem:[%s16157_s1 + $0x7c] ss:$20 sps:$4 sm:$0xff]   ;;  %v11766_v17 = vld [vmem:[%s16157_s1 + $0x84] ss:$20 sps:$4 sm:$0xff]  }
   0x7   :  { %578 = vmatpush1.bf16.msra.mxu0 %v11750_v6  ;;  %619 = vmatpush1.bf16.msra.mxu1 %v11751_v7  ;;  %v11768_v18 = vld [vmem:[%s16157_s1 + $0x78] ss:$20 sps:$4 sm:$0xff]   ;;  %v11769_v19 = vld [vmem:[%s16157_s1 + $0x80] ss:$20 sps:$4 sm:$0xff]   ;;  %v11772_v21 = vld [vmem:[%s16157_s1 + $0x5c] ss:$20 sps:$4 sm:$0xff]  }
   0x8   :  { %579 = vmatprep.subr.bf16.mxu0 %v11752_v8  ;;  %620 = vmatprep.subr.bf16.mxu1 %v11754_v9  ;;  %v11770_v20 = vld [vmem:[%s16157_s1 + $0x54] ss:$20 sps:$4 sm:$0xff]   ;;  %v11774_v22 = vld [vmem:[%s16157_s1 + $0x50] ss:$20 sps:$4 sm:$0xff]   ;;  %v11775_v23 = vld [vmem:[%s16157_s1 + $0x58] ss:$20 sps:$4 sm:$0xff]  }
   0x9   :  { %v11776_v24 = vld [vmem:[%s16157_s1 + $0x2c] ss:$20 sps:$4 sm:$0xff]   ;;  %v11778_v25 = vld [vmem:[%s16157_s1 + $0x34] ss:$20 sps:$4 sm:$0xff]   ;;  %v11781_v27 = vld [vmem:[%s16157_s1 + $0x30] ss:$20 sps:$4 sm:$0xff]  }
   0xa   :  { %v11780_v26 = vld [vmem:[%s16157_s1 + $0x28] ss:$20 sps:$4 sm:$0xff]   ;;  %v11782_v28 = vld [vmem:[%s16157_s1 + $0x4] ss:$20 sps:$4 sm:$0xff]   ;;  %v11784_v29 = vld [vmem:[%s16157_s1 + $0xc] ss:$20 sps:$4 sm:$0xff]  }
   0xb   :  { %580 = vmatpush1.bf16.msra.mxu0 %v11756_v10  ;;  %621 = vmatpush1.bf16.msra.mxu1 %v11757_v11  ;;  %v11786_v30 = vld [vmem:[%s16157_s1] ss:$20 sps:$4 sm:$0xff]   ;;  %v11787_v31 = vld [vmem:[%s16157_s1 + $0x8] ss:$20 sps:$4 sm:$0xff]   ;;  %v11790_v33 = vld [vmem:[%s16157_s1 + $0x264] ss:$20 sps:$4 sm:$0xff]  }
   0xc   :  { %581 = vmatprep.subr.bf16.mxu0 %v11758_v12  ;;  %622 = vmatprep.subr.bf16.mxu1 %v11760_v13  ;;  %v11788_v32 = vld [vmem:[%s16157_s1 + $0x25c] ss:$20 sps:$4 sm:$0xff]   ;;  %v11792_v34 = vld [vmem:[%s16157_s1 + $0x258] ss:$20 sps:$4 sm:$0xff]   ;;  %v11793_v35 = vld [vmem:[%s16157_s1 + $0x260] ss:$20 sps:$4 sm:$0xff]  }
   0xd   :  { %v11794_v36 = vld [vmem:[%s16157_s1 + $0x234] ss:$20 sps:$4 sm:$0xff]   ;;  %v11796_v37 = vld [vmem:[%s16157_s1 + $0x23c] ss:$20 sps:$4 sm:$0xff]   ;;  %v11799_v39 = vld [vmem:[%s16157_s1 + $0x238] ss:$20 sps:$4 sm:$0xff]  }
   0xe   :  { %v11798_v38 = vld [vmem:[%s16157_s1 + $0x230] ss:$20 sps:$4 sm:$0xff]   ;;  %v11800_v40 = vld [vmem:[%s16157_s1 + $0x20c] ss:$20 sps:$4 sm:$0xff]   ;;  %v11802_v41 = vld [vmem:[%s16157_s1 + $0x214] ss:$20 sps:$4 sm:$0xff]  }
   0xf   :  { %582 = vmatpush1.bf16.msra.mxu0 %v11762_v14  ;;  %623 = vmatpush1.bf16.msra.mxu1 %v11763_v15  ;;  %v11804_v42 = vld [vmem:[%s16157_s1 + $0x208] ss:$20 sps:$4 sm:$0xff]   ;;  %v11805_v43 = vld [vmem:[%s16157_s1 + $0x210] ss:$20 sps:$4 sm:$0xff]   ;;  %v11808_v45 = vld [vmem:[%s16157_s1 + $0x1ec] ss:$20 sps:$4 sm:$0xff]  }
  0x10   :  { %583 = vmatprep.subr.bf16.mxu0 %v11764_v16  ;;  %624 = vmatprep.subr.bf16.mxu1 %v11766_v17  ;;  %v11806_v44 = vld [vmem:[%s16157_s1 + $0x1e4] ss:$20 sps:$4 sm:$0xff]   ;;  %v11810_v46 = vld [vmem:[%s16157_s1 + $0x1e0] ss:$20 sps:$4 sm:$0xff]   ;;  %v11811_v47 = vld [vmem:[%s16157_s1 + $0x1e8] ss:$20 sps:$4 sm:$0xff]  }
  0x11   :  { %v9616_v48 = vld.sshfl [vmem:[%s16156_s0] sm:$0x33 pattern:$0x76325410]  ;;  %v11812_v49 = vld [vmem:[%s16157_s1 + $0x1bc] ss:$20 sps:$4 sm:$0xff]  }
  0x12   :  { %v128_v50 = vcombine.high %v9616_v48, %v9616_v48  ;;  %v11814_v51 = vld [vmem:[%s16157_s1 + $0x1c4] ss:$20 sps:$4 sm:$0xff]   ;;  %v11817_v54 = vld [vmem:[%s16157_s1 + $0x1c0] ss:$20 sps:$4 sm:$0xff]   ;;  %v11820_v56 = vld [vmem:[%s16157_s1 + $0x19c] ss:$20 sps:$4 sm:$0xff]   ;;  %v12367_v7 = vpack.c.bf16 %v9616_v48, %v9616_v48 }
  0x13   :  { %584 = vmatpush1.bf16.msra.mxu0 %v11768_v18  ;;  %625 = vmatpush1.bf16.msra.mxu1 %v11769_v19  ;;  %v11816_v52 = vld [vmem:[%s16157_s1 + $0x1b8] ss:$20 sps:$4 sm:$0xff]   ;;  %v11818_v55 = vld [vmem:[%s16157_s1 + $0x194] ss:$20 sps:$4 sm:$0xff]   ;;  %v11822_v57 = vld [vmem:[%s16157_s1 + $0x190] ss:$20 sps:$4 sm:$0xff]  }
  0x14   :  { %585 = vmatprep.subr.bf16.mxu0 %v11770_v20  ;;  %626 = vmatprep.subr.bf16.mxu1 %v11772_v21  ;;  %v12315_v53 = vpack.c.bf16 %v128_v50, %v128_v50  ;;  %v11823_v58 = vld [vmem:[%s16157_s1 + $0x198] ss:$20 sps:$4 sm:$0xff]   ;;  %v11826_v60 = vld [vmem:[%s16157_s1 + $0x174] ss:$20 sps:$4 sm:$0xff]   ;;  %v11829_v62 = vld [vmem:[%s16157_s1 + $0x170] ss:$20 sps:$4 sm:$0xff]  }
  0x15   :  { %v11824_v59 = vld [vmem:[%s16157_s1 + $0x16c] ss:$20 sps:$4 sm:$0xff]   ;;  %v11828_v61 = vld [vmem:[%s16157_s1 + $0x168] ss:$20 sps:$4 sm:$0xff]   ;;  %v11830_v63 = vld [vmem:[%s16157_s1 + $0x144] ss:$20 sps:$4 sm:$0xff]  }
  0x16   :  { %607 = vmatprep.mubr.bf16.mxu0 %v12315_v53  ;;  %648 = vmatprep.mubr.bf16.mxu1 %v12315_v53  ;;  %v11832_v0 = vld [vmem:[%s16157_s1 + $0x14c] ss:$20 sps:$4 sm:$0xff]   ;;  %v11835_v2 = vld [vmem:[%s16157_s1 + $0x148] ss:$20 sps:$4 sm:$0xff]  }
  0x17   :  { %586 = vmatpush1.bf16.msra.mxu0 %v11774_v22  ;;  %627 = vmatpush1.bf16.msra.mxu1 %v11775_v23  ;;  %v11834_v1 = vld [vmem:[%s16157_s1 + $0x140] ss:$20 sps:$4 sm:$0xff]   ;;  %v11836_v5 = vld [vmem:[%s16157_s1 + $0x268] ss:$20 sps:$4 sm:$0xff]   ;;  %v11840_v17 = vld [vmem:[%s16157_s1 + $0x218] ss:$20 sps:$4 sm:$0xff]  }
  0x18   :  { %587 = vmatprep.subr.bf16.mxu0 %v11776_v24  ;;  %628 = vmatprep.subr.bf16.mxu1 %v11778_v25  ;;  %v758_v3 = vld [vmem:[%s16158_s2 + $0x1c0] sm:$0xff]  ;;  %v11837_v10 = vld [vmem:[%s16157_s1 + $0x128] ss:$20 sps:$4 sm:$0xff]   ;;  %v11841_v22 = vld [vmem:[%s16157_s1 + $0xd8] ss:$20 sps:$4 sm:$0xff]  }
  0x19   :  { %v762_v4 = vld [vmem:[%s16158_s2 + $0x1e0] sm:$0xff] }
  0x1a   :  { %v9754_v6 = vcombine.high %v758_v3, %v762_v4  ;;  %v750_v8 = vld [vmem:[%s16158_s2 + $0x180] sm:$0xff]  ;;  %v9753_v12 = vcombine.low %v758_v3, %v762_v4 }
  0x1b   :  { %588 = vmatpush1.bf16.msra.mxu0 %v11780_v26  ;;  %629 = vmatpush1.bf16.msra.mxu1 %v11781_v27  ;;  %v754_v9 = vld [vmem:[%s16158_s2 + $0x1a0] sm:$0xff] }
  0x1c   :  { %589 = vmatprep.subr.bf16.mxu0 %v11782_v28  ;;  %630 = vmatprep.subr.bf16.mxu1 %v11784_v29  ;;  %v11838_v11 = vld [vmem:[%s16157_s1 + $0x240] ss:$20 sps:$4 sm:$0xff]   ;;  %v9746_v13 = vcombine.high %v750_v8, %v754_v9  ;;  %v9745_v18 = vcombine.low %v750_v8, %v754_v9  ;;  %v11842_v23 = vld [vmem:[%s16157_s1 + $0x1f0] ss:$20 sps:$4 sm:$0xff]   ;;  %v11844_v29 = vld [vmem:[%s16157_s1 + $0x1c8] ss:$20 sps:$4 sm:$0xff]  }
  0x1d   :  { %v742_v14 = vld [vmem:[%s16158_s2 + $0x140] sm:$0xff] }
  0x1e   :  { %v746_v15 = vld [vmem:[%s16158_s2 + $0x160] sm:$0xff] }
  0x1f   :  { %590 = vmatpush1.bf16.msra.mxu0 %v11786_v30  ;;  %631 = vmatpush1.bf16.msra.mxu1 %v11787_v31  ;;  %v11839_v16 = vld [vmem:[%s16157_s1 + $0x100] ss:$20 sps:$4 sm:$0xff]   ;;  %v9738_v19 = vcombine.high %v742_v14, %v746_v15  ;;  %v9737_v24 = vcombine.low %v742_v14, %v746_v15  ;;  %v11843_v28 = vld [vmem:[%s16157_s1 + $0xb0] ss:$20 sps:$4 sm:$0xff]  }
  0x20   :  { %591 = vmatprep.subr.bf16.mxu0 %v11788_v32  ;;  %632 = vmatprep.subr.bf16.mxu1 %v11790_v33  ;;  %v734_v20 = vld [vmem:[%s16158_s2 + $0x100] sm:$0xff]  ;;  %v11845_v32 = vld [vmem:[%s16157_s1 + $0x88] ss:$20 sps:$4 sm:$0xff]  }
  0x21   :  { %v738_v21 = vld [vmem:[%s16158_s2 + $0x120] sm:$0xff] }
  0x22   :  { %v9730_v25 = vcombine.high %v734_v20, %v738_v21  ;;  %v726_v26 = vld [vmem:[%s16158_s2 + $0xc0] sm:$0xff]  ;;  %v9729_v30 = vcombine.low %v734_v20, %v738_v21 }
  0x23   :  { %592 = vmatpush2.bf16.msra.mxu0 %v11792_v34  ;;  %633 = vmatpush2.bf16.msra.mxu1 %v11793_v35  ;;  %v730_v27 = vld [vmem:[%s16158_s2 + $0xe0] sm:$0xff] }
  0x24   :  { %593 = vmatprep.subr.bf16.mxu0 %v11794_v36  ;;  %634 = vmatprep.subr.bf16.mxu1 %v11796_v37  ;;  %v718_v31 = vld [vmem:[%s16158_s2 + $0x80] sm:$0xff]  ;;  %v9722_v33 = vcombine.high %v726_v26, %v730_v27  ;;  %v9721_v36 = vcombine.low %v726_v26, %v730_v27 }
  0x25   :  { %v722_v34 = vld [vmem:[%s16158_s2 + $0xa0] sm:$0xff] }
  0x26   :  { %v11846_v35 = vld [vmem:[%s16157_s1 + $0x1a0] ss:$20 sps:$4 sm:$0xff]  }
  0x27   :  { %594 = vmatpush2.bf16.msra.mxu0 %v11798_v38  ;;  %635 = vmatpush2.bf16.msra.mxu1 %v11799_v39  ;;  %v710_v37 = vld [vmem:[%s16158_s2 + $0x40] sm:$0xff] }
  0x28   :  { %595 = vmatprep.subr.bf16.mxu0 %v11800_v40  ;;  %636 = vmatprep.subr.bf16.mxu1 %v11802_v41  ;;  %v714_v38 = vld [vmem:[%s16158_s2 + $0x60] sm:$0xff]  ;;  %v9714_v40 = vcombine.high %v718_v31, %v722_v34  ;;  %v11848_v41 = vld [vmem:[%s16157_s1 + $0x178] ss:$20 sps:$4 sm:$0xff]  }
  0x29   :  { %v11847_v39 = vld [vmem:[%s16157_s1 + $0x60] ss:$20 sps:$4 sm:$0xff]   ;;  %v9705_v50 = vcombine.low %v710_v37, %v714_v38 }
  0x2a   :  { %v886_v48 = vld [vmem:[%s16158_s2 + $0x5c0] sm:$0xff] }
  0x2b   :  { %596 = vmatpush2.bf16.msra.mxu0 %v11804_v42  ;;  %637 = vmatpush2.bf16.msra.mxu1 %v11805_v43  ;;  %v9713_v42 = vcombine.low %v718_v31, %v722_v34  ;;  %v702_v43 = vld [vmem:[%s16158_s2] sm:$0xff] }
  0x2c   :  { %597 = vmatprep.subr.bf16.mxu0 %v11806_v44  ;;  %638 = vmatprep.subr.bf16.mxu1 %v11808_v45  ;;  %v706_v44 = vld [vmem:[%s16158_s2 + $0x20] sm:$0xff]  ;;  %v11849_v45 = vld [vmem:[%s16157_s1 + $0x38] ss:$20 sps:$4 sm:$0xff]  }
  0x2d   :  { %v806_v4 = vld [vmem:[%s16158_s2 + $0x340] sm:$0xff] }
  0x2e   :  { %v862_v9 = vld [vmem:[%s16158_s2 + $0x500] sm:$0xff] }
  0x2f   :  { %598 = vmatpush2.bf16.msra.mxu0 %v11810_v46  ;;  %639 = vmatpush2.bf16.msra.mxu1 %v11811_v47  ;;  %v9706_v46 = vcombine.high %v710_v37, %v714_v38  ;;  %v11850_v47 = vld [vmem:[%s16157_s1 + $0x150] ss:$20 sps:$4 sm:$0xff]  }
  0x30   :  { %599 = vmatprep.subr.bf16.mxu0 %v11812_v49  ;;  %640 = vmatprep.subr.bf16.mxu1 %v11814_v51  ;;  %v890_v49 = vld [vmem:[%s16158_s2 + $0x5e0] sm:$0xff] }
  0x31   :  { %v822_v51 = vld [vmem:[%s16158_s2 + $0x3c0] sm:$0xff] }
  0x32   :  { %v802_v14 = vld [vmem:[%s16158_s2 + $0x320] sm:$0xff] }
  0x33   :  { %600 = vmatpush2.bf16.msra.mxu0 %v11816_v52  ;;  %641 = vmatpush2.bf16.msra.mxu1 %v11817_v54  ;;  %v826_v52 = vld [vmem:[%s16158_s2 + $0x3e0] sm:$0xff] }
  0x34   :  { %601 = vmatprep.subr.bf16.mxu0 %v11818_v55  ;;  %642 = vmatprep.subr.bf16.mxu1 %v11820_v56  ;;  %v11851_v54 = vld [vmem:[%s16157_s1 + $0x10] ss:$20 sps:$4 sm:$0xff]   ;;  %v9698_v55 = vcombine.high %v702_v43, %v706_v44  ;;  %v9817_v3 = vcombine.low %v822_v51, %v826_v52 }
  0x35   :  { %v878_v56 = vld [vmem:[%s16158_s2 + $0x580] sm:$0xff] }
  0x36   :  { %v790_v21 = vld [vmem:[%s16158_s2 + $0x2c0] sm:$0xff] }
  0x37   :  { %602 = vmatpush2.bf16.msra.mxu0 %v11822_v57  ;;  %643 = vmatpush2.bf16.msra.mxu1 %v11823_v58  ;;  %v882_v57 = vld [vmem:[%s16158_s2 + $0x5a0] sm:$0xff]  ;;  %v9882_v58 = vcombine.high %v886_v48, %v890_v49 }
  0x38   :  { %603 = vmatprep.subr.bf16.mxu0 %v11824_v59  ;;  %644 = vmatprep.subr.bf16.mxu1 %v11826_v60  ;;  %v9697_v59 = vcombine.low %v702_v43, %v706_v44  ;;  %v814_v60 = vld [vmem:[%s16158_s2 + $0x380] sm:$0xff]  ;;  %v9873_v8 = vcombine.low %v878_v56, %v882_v57 }
  0x39   :  { %v850_v26 = vld [vmem:[%s16158_s2 + $0x4a0] sm:$0xff] }
  0x3a   :  { %v842_v34 = vld [vmem:[%s16158_s2 + $0x460] sm:$0xff] }
  0x3b   :  { %604 = vmatpush2.bf16.msra.mxu0 %v11828_v61  ;;  %645 = vmatpush2.bf16.msra.mxu1 %v11829_v62  ;;  %v818_v61 = vld [vmem:[%s16158_s2 + $0x3a0] sm:$0xff]  ;;  %v9818_v62 = vcombine.high %v822_v51, %v826_v52 }
  0x3c   :  { %605 = vmatprep.subr.bf16.mxu0 %v11830_v63  ;;  %646 = vmatprep.subr.bf16.mxu1 %v11832_v0  ;;  %v9881_v63 = vcombine.low %v886_v48, %v890_v49  ;;  %v870_v0 = vld [vmem:[%s16158_s2 + $0x540] sm:$0xff] }
  0x3d   :  { %v950_v44 = vld [vmem:[%s16158_s2 + $0x7c0] sm:$0xff] }
  0x3e   :  { %v942_v48 = vld [vmem:[%s16158_s2 + $0x780] sm:$0xff] }
  0x3f   :  { %606 = vmatpush2.bf16.msra.mxu0 %v11834_v1  ;;  %647 = vmatpush2.bf16.msra.mxu1 %v11835_v2  ;;  %v874_v1 = vld [vmem:[%s16158_s2 + $0x560] sm:$0xff]  ;;  %v9874_v2 = vcombine.high %v878_v56, %v882_v57 }
  0x40   :  { %11669 = vmatprep.subr.bf16.mxu0 %v11836_v5  ;;  %2674 = vmatprep.subr.bf16.mxu1 %v9754_v6  ;;  %v810_v5 = vld [vmem:[%s16158_s2 + $0x360] sm:$0xff]  ;;  %v9810_v6 = vcombine.high %v814_v60, %v818_v61 }
  0x41   :  { %v9802_v15 = vcombine.high %v806_v4, %v810_v5  ;;  %v9801_v20 = vcombine.low %v806_v4, %v810_v5  ;;  %v946_v49 = vld [vmem:[%s16158_s2 + $0x7a0] sm:$0xff] }
  0x42   :  { %608 = vmatmul.mubr.bf16.vlgmr.msra.gmra.mxu0 %v12367_v7  ;;  %649 = vmatmul.mubr.bf16.vlgmr.msra.gmra.mxu1 %v12367_v7  ;;  %v9938_v52 = vcombine.high %v942_v48, %v946_v49  ;;  %v774_v56 = vld [vmem:[%s16158_s2 + $0x240] sm:$0xff] }
  0x43   :  { %11670 = vmatpush3.bf16.msra.mxu0 %v11837_v10  ;;  %689 = vmatprep.mubr.bf16.mxu0 %v12315_v53  ;;  %v866_v10 = vld [vmem:[%s16158_s2 + $0x520] sm:$0xff] }
  0x44   :  { %11671 = vmatprep.subr.bf16.mxu0 %v11838_v11  ;;  %2675 = vmatpush1.bf16.msra.mxu1 %v9753_v12  ;;  %v9866_v11 = vcombine.high %v870_v0, %v874_v1  ;;  %v9809_v12 = vcombine.low %v814_v60, %v818_v61  ;;  %v778_v57 = vld [vmem:[%s16158_s2 + $0x260] sm:$0xff] }
  0x45   :  { %2676 = vmatprep.subr.bf16.mxu1 %v9746_v13  ;;  %v798_v13 = vld [vmem:[%s16158_s2 + $0x300] sm:$0xff]  ;;  %v9769_v60 = vcombine.low %v774_v56, %v778_v57 }
  0x46   :  { %v918_v4 = vld [vmem:[%s16158_s2 + $0x6c0] sm:$0xff] }
  0x47   :  { %11672 = vmatpush3.bf16.msra.mxu0 %v11839_v16  ;;  %v9865_v16 = vcombine.low %v870_v0, %v874_v1  ;;  %v766_v0 = vld [vmem:[%s16158_s2 + $0x200] sm:$0xff] }
  0x48   :  { %11673 = vmatprep.subr.bf16.mxu0 %v11840_v17  ;;  %2677 = vmatpush1.bf16.msra.mxu1 %v9745_v18  ;;  %v854_v17 = vld [vmem:[%s16158_s2 + $0x4c0] sm:$0xff] }
  0x49   :  { %2678 = vmatprep.subr.bf16.mxu1 %v9738_v19  ;;  %v858_v18 = vld [vmem:[%s16158_s2 + $0x4e0] sm:$0xff]  ;;  %v9858_v19 = vcombine.high %v862_v9, %v866_v10 }
  0x4a   :  { %v9850_v27 = vcombine.high %v854_v17, %v858_v18  ;;  %v770_v1 = vld [vmem:[%s16158_s2 + $0x220] sm:$0xff] }
  0x4b   :  { %11674 = vmatpush3.bf16.msra.mxu0 %v11841_v22  ;;  %v794_v22 = vld [vmem:[%s16158_s2 + $0x2e0] sm:$0xff] }
  0x4c   :  { %11675 = vmatprep.subr.bf16.mxu0 %v11842_v23  ;;  %2679 = vmatpush1.bf16.msra.mxu1 %v9737_v24  ;;  %v9794_v23 = vcombine.high %v798_v13, %v802_v14  ;;  %v9857_v24 = vcombine.low %v862_v9, %v866_v10  ;;  %v9786_v31 = vcombine.high %v790_v21, %v794_v22  ;;  %v922_v5 = vld [vmem:[%s16158_s2 + $0x6e0] sm:$0xff]  ;;  %v12589_v9 = vld [vmem:[%s16158_s2 + $0x1c8] sm:$0xff] }
  0x4d   :  { %2680 = vmatprep.subr.bf16.mxu1 %v9730_v25  ;;  %v846_v25 = vld [vmem:[%s16158_s2 + $0x480] sm:$0xff]  ;;  %v12594_v10 = vld [vmem:[%s16158_s2 + $0x1e8] sm:$0xff] }
  0x4e   :  { %v9841_v38 = vcombine.low %v846_v25, %v850_v26 }
  0x4f   :  { %11676 = vmatpush3.bf16.msra.mxu0 %v11843_v28  ;;  %v9793_v28 = vcombine.low %v798_v13, %v802_v14 }
  0x50   :  { %11677 = vmatprep.subr.bf16.mxu0 %v11844_v29  ;;  %2681 = vmatpush1.bf16.msra.mxu1 %v9729_v30  ;;  %v782_v29 = vld [vmem:[%s16158_s2 + $0x280] sm:$0xff] }
  0x51   :  { %2682 = vmatprep.subr.bf16.mxu1 %v9722_v33  ;;  %v786_v30 = vld [vmem:[%s16158_s2 + $0x2a0] sm:$0xff] }
  0x52   :  { %v838_v33 = vld [vmem:[%s16158_s2 + $0x440] sm:$0xff]  ;;  %v9778_v37 = vcombine.high %v782_v29, %v786_v30 }
  0x53   :  { %11678 = vmatpush3.bf16.msra.mxu0 %v11845_v32  ;;  %v9849_v32 = vcombine.low %v854_v17, %v858_v18  ;;  %v9833_v43 = vcombine.low %v838_v33, %v842_v34  ;;  %v914_v17 = vld [vmem:[%s16158_s2 + $0x6a0] sm:$0xff]  ;;  %v9913_v18 = vcombine.low %v918_v4, %v922_v5 }
  0x54   :  { %11679 = vmatprep.subr.bf16.mxu0 %v11846_v35  ;;  %2683 = vmatpush1.bf16.msra.mxu1 %v9721_v36  ;;  %v9842_v35 = vcombine.high %v846_v25, %v850_v26  ;;  %v9785_v36 = vcombine.low %v790_v21, %v794_v22  ;;  %v906_v21 = vld [vmem:[%s16158_s2 + $0x660] sm:$0xff] }
  0x55   :  { %2684 = vmatprep.subr.bf16.mxu1 %v9714_v40  ;;  %v834_v40 = vld [vmem:[%s16158_s2 + $0x420] sm:$0xff] }
  0x57   :  { %11680 = vmatpush3.bf16.msra.mxu0 %v11847_v39  ;;  %v830_v39 = vld [vmem:[%s16158_s2 + $0x400] sm:$0xff] }
  0x58   :  { %11681 = vmatprep.subr.bf16.mxu0 %v11848_v41  ;;  %2685 = vmatpush1.bf16.msra.mxu1 %v9713_v42  ;;  %v9834_v41 = vcombine.high %v838_v33, %v842_v34  ;;  %v9777_v42 = vcombine.low %v782_v29, %v786_v30 }
  0x59   :  { %2686 = vmatprep.subr.bf16.mxu1 %v9706_v46  ;;  %v9826_v46 = vcombine.high %v830_v39, %v834_v40 }
  0x5b   :  { %11682 = vmatpush3.bf16.msra.mxu0 %v11849_v45  ;;  %v954_v45 = vld [vmem:[%s16158_s2 + $0x7e0] sm:$0xff] }
  0x5c   :  { %11683 = vmatprep.subr.bf16.mxu0 %v11850_v47  ;;  %2687 = vmatpush1.bf16.msra.mxu1 %v9705_v50  ;;  %v9825_v47 = vcombine.low %v830_v39, %v834_v40  ;;  %v9946_v50 = vcombine.high %v950_v44, %v954_v45  ;;  %v9945_v51 = vcombine.low %v950_v44, %v954_v45 }
  0x5d   :  { %2688 = vmatprep.subr.bf16.mxu1 %v9698_v55  ;;  %v938_v55 = vld [vmem:[%s16158_s2 + $0x760] sm:$0xff] }
  0x5f   :  { %11684 = vmatpush3.bf16.msra.mxu0 %v11851_v54  ;;  %v934_v54 = vld [vmem:[%s16158_s2 + $0x740] sm:$0xff] }
  0x60   :  { %2715 = vmatprep.subr.bf16.mxu0 %v9882_v58  ;;  %2689 = vmatpush1.bf16.msra.mxu1 %v9697_v59  ;;  %v9770_v58 = vcombine.high %v774_v56, %v778_v57  ;;  %v9937_v59 = vcombine.low %v942_v48, %v946_v49  ;;  %v9930_v61 = vcombine.high %v934_v54, %v938_v55 }
  0x61   :  { %2690 = vmatprep.subr.bf16.mxu1 %v9818_v62  ;;  %v926_v62 = vld [vmem:[%s16158_s2 + $0x700] sm:$0xff] }
  0x62   :  { %690 = vmatmul.mubr.bf16.vlgmr.msra.gmra.mxu0 %v12367_v7 }
  0x63   :  { %2716 = vmatpush1.bf16.msra.mxu0 %v9881_v63  ;;  %v930_v63 = vld [vmem:[%s16158_s2 + $0x720] sm:$0xff] }
  0x64   :  { %2717 = vmatprep.subr.bf16.mxu0 %v9874_v2  ;;  %2691 = vmatpush2.bf16.msra.mxu1 %v9817_v3  ;;  %v9762_v2 = vcombine.high %v766_v0, %v770_v1  ;;  %v9929_v3 = vcombine.low %v934_v54, %v938_v55  ;;  %v9921_v14 = vcombine.low %v926_v62, %v930_v63 }
  0x65   :  { %2692 = vmatprep.subr.bf16.mxu1 %v9810_v6  ;;  %v9761_v6 = vcombine.low %v766_v0, %v770_v1 }
  0x67   :  { %2718 = vmatpush1.bf16.msra.mxu0 %v9873_v8  ;;  %v9922_v8 = vcombine.high %v926_v62, %v930_v63 }
  0x68   :  { %2719 = vmatprep.subr.bf16.mxu0 %v9866_v11  ;;  %2693 = vmatpush2.bf16.msra.mxu1 %v9809_v12  ;;  %v12599_v11 = vld [vmem:[%s16158_s2 + $0x9c0] sm:$0x33]  ;;  %v9755_v12 = vcombine.low %v12589_v9, %v12594_v10 }
  0x69   :  { %2694 = vmatprep.subr.bf16.mxu1 %v9802_v15  ;;  %v10010_v13 = vcombine.high %v12599_v11, %v12599_v11  ;;  %v9914_v15 = vcombine.high %v918_v4, %v922_v5 }
  0x6b   :  { %2720 = vmatpush1.bf16.msra.mxu0 %v9865_v16  ;;  %v910_v16 = vld [vmem:[%s16158_s2 + $0x680] sm:$0xff] }
  0x6c   :  { %2721 = vmatprep.subr.bf16.mxu0 %v9858_v19  ;;  %2695 = vmatpush2.bf16.msra.mxu1 %v9801_v20  ;;  %v9906_v19 = vcombine.high %v910_v16, %v914_v17  ;;  %v902_v20 = vld [vmem:[%s16158_s2 + $0x640] sm:$0xff]  ;;  %v9905_v22 = vcombine.low %v910_v16, %v914_v17 }
  0x6d   :  { %2696 = vmatprep.subr.bf16.mxu1 %v9794_v23  ;;  %v9898_v23 = vcombine.high %v902_v20, %v906_v21 }
  0x6f   :  { %2722 = vmatpush1.bf16.msra.mxu0 %v9857_v24 }
  0x70   :  { %2723 = vmatprep.subr.bf16.mxu0 %v9850_v27  ;;  %2697 = vmatpush2.bf16.msra.mxu1 %v9793_v28 }
  0x71   :  { %2698 = vmatprep.subr.bf16.mxu1 %v9786_v31 }
  0x73   :  { %2724 = vmatpush1.bf16.msra.mxu0 %v9849_v32 }
  0x74   :  { %2725 = vmatprep.subr.bf16.mxu0 %v9842_v35  ;;  %2699 = vmatpush2.bf16.msra.mxu1 %v9785_v36 }
  0x75   :  { %2700 = vmatprep.subr.bf16.mxu1 %v9778_v37 }
  0x77   :  { %2726 = vmatpush1.bf16.msra.mxu0 %v9841_v38 }
  0x78   :  { %2727 = vmatprep.subr.bf16.mxu0 %v9834_v41  ;;  %2701 = vmatpush2.bf16.msra.mxu1 %v9777_v42 }
  0x79   :  { %2702 = vmatprep.subr.bf16.mxu1 %v9770_v58 }
  0x7b   :  { %2728 = vmatpush1.bf16.msra.mxu0 %v9833_v43 }
  0x7c   :  { %2729 = vmatprep.subr.bf16.mxu0 %v9826_v46  ;;  %2703 = vmatpush2.bf16.msra.mxu1 %v9769_v60 }
  0x7d   :  { %2704 = vmatprep.subr.bf16.mxu1 %v9762_v2 }
  0x7f   :  { %2730 = vmatpush1.bf16.msra.mxu0 %v9825_v47 }
  0x80   :  { %2731 = vmatprep.subr.bf16.mxu0 %v9946_v50  ;;  %2705 = vmatpush2.bf16.msra.mxu1 %v9761_v6 }
  0x81   :  { %10017 = vmatprep.subr.msk.bf16.mxu1 %vm2649_vm0, %v10010_v13 }
  0x83   :  { %2732 = vmatpush2.bf16.msra.mxu0 %v9945_v51 }
  0x84   :  { %2733 = vmatprep.subr.bf16.mxu0 %v9938_v52 }
  0x87   :  { %2734 = vmatpush2.bf16.msra.mxu0 %v9937_v59 }
  0x88   :  { %2735 = vmatprep.subr.bf16.mxu0 %v9930_v61 }
  0x8b   :  { %2736 = vmatpush2.bf16.msra.mxu0 %v9929_v3 }
  0x8c   :  { %2737 = vmatprep.subr.bf16.mxu0 %v9922_v8 }
  0x8f   :  { %2738 = vmatpush2.bf16.msra.mxu0 %v9921_v14 }
  0x90   :  { %2739 = vmatprep.subr.bf16.mxu0 %v9914_v15 }
  0x93   :  { %2740 = vmatpush2.bf16.msra.mxu0 %v9913_v18 }
  0x94   :  { %2741 = vmatprep.subr.bf16.mxu0 %v9906_v19 }
  0x95   :  { %10 = vsyncpa [#allocation3], 0  ;;  %v894_v24 = vld [vmem:[%s16158_s2 + $0x600] sm:$0xff]  ;;  %v9897_v26 = vcombine.low %v902_v20, %v906_v21  ;;  %v9756_v29 = vcombine.high %v12589_v9, %v12594_v10  ;;  %v134_v30 = vlaneseq  ;;  %v10009_v54 = vcombine.low %v12599_v11, %v12599_v11  ;;  %v751_v57 = vld [vmem:[%s16158_s2 + $0x188] sm:$0xff] }
  0x96   :  { %v898_v25 = vld [vmem:[%s16158_s2 + $0x620] sm:$0xff]  ;;  %v755_v58 = vld [vmem:[%s16158_s2 + $0x1a8] sm:$0xff]  ;;  %vm2645_vm1 = vcmask 949248   ;;  %vm3219_vm2 = vcmask 1043458   ;;  %vm3221_vm4 = vcmask 1045508   ;;  %vm3223_vm6 = vcmask 850950  }
  0x97   :  { %2742 = vmatpush2.bf16.msra.mxu0 %v9905_v22  ;;  %v9890_v27 = vcombine.high %v894_v24, %v898_v25  ;;  %v9889_v28 = vcombine.low %v894_v24, %v898_v25  ;;  %v12626_v31 = vshrl.u32 %v134_v30, 7  ;;  %v12637_v34 = vld [vmem:[%s16159_s3] sm:$0x1f]  ;;  %v2651_v3 = vsel %vm2649_vm0, %v10009_v54, 0  ;;  %v743_v5 = vld [vmem:[%s16158_s2 + $0x148] sm:$0xff]  ;;  %vm3220_vm3 = vmor %vm3219_vm2, %vm2649_vm0 }
  0x98   :  { %2743 = vmatprep.subr.bf16.mxu0 %v9898_v23  ;;  %v1006_v62 = vld [vmem:[%s16158_s2 + $0x980] sm:$0xff]  ;;  %v9748_v4 = vcombine.high %v751_v57, %v755_v58  ;;  %v747_v8 = vld [vmem:[%s16158_s2 + $0x168] sm:$0xff]  ;;  %v9747_v14 = vcombine.low %v751_v57, %v755_v58  ;;  %vm3222_vm5 = vmor %vm3221_vm4, %vm3220_vm3 }
  0x99   :  { %v12629_v32 = vsub.s32 0, %v12626_v31  ;;  %v12632_v33 = vsub.s32 2, %v12626_v31  ;;  %v12640_v35 = vsub.s32 1, %v12626_v31  ;;  %v12643_v36 = vsub.s32 3, %v12626_v31  ;;  %v1010_v63 = vld [vmem:[%s16158_s2 + $0x9a0] sm:$0xff]  ;;  %v735_v18 = vld [vmem:[%s16158_s2 + $0x108] sm:$0xff]  ;;  %vm13978_vm7 = vmor %vm3223_vm6, %vm3222_vm5 }
  0x9a   :  { %v10002_v6 = vcombine.high %v1006_v62, %v1010_v63  ;;  %v998_v11 = vld [vmem:[%s16158_s2 + $0x940] sm:$0xff]  ;;  %v10001_v15 = vcombine.low %v1006_v62, %v1010_v63  ;;  %v9740_v16 = vcombine.high %v743_v5, %v747_v8  ;;  %v739_v19 = vld [vmem:[%s16158_s2 + $0x128] sm:$0xff]  ;;  %v9739_v20 = vcombine.low %v743_v5, %v747_v8 }
  0x9b   :  { %2744 = vmatpush2.bf16.msra.mxu0 %v9897_v26  ;;  %v137_v37 = vrot.slane %v12637_v34, %v12629_v32  ;;  %v145_v38 = vrot.slane %v12637_v34, %v12632_v33  ;;  %v141_v39 = vrot.slane %v12637_v34, %v12640_v35  ;;  %v149_v40 = vrot.slane %v12637_v34, %v12643_v36  ;;  %v1002_v13 = vld [vmem:[%s16158_s2 + $0x960] sm:$0xff]  ;;  %v727_v24 = vld [vmem:[%s16158_s2 + $0xc8] sm:$0xff] }
  0x9c   :  { %2745 = vmatprep.subr.bf16.mxu0 %v9890_v27  ;;  %v9994_v17 = vcombine.high %v998_v11, %v1002_v13  ;;  %v990_v9 = vld [vmem:[%s16158_s2 + $0x900] sm:$0xff]  ;;  %v9993_v21 = vcombine.low %v998_v11, %v1002_v13  ;;  %v9732_v22 = vcombine.high %v735_v18, %v739_v19  ;;  %v731_v25 = vld [vmem:[%s16158_s2 + $0xe8] sm:$0xff] }
  0x9d   :  { %v994_v10 = vld [vmem:[%s16158_s2 + $0x920] sm:$0xff]  ;;  %v9724_v30 = vcombine.high %v727_v24, %v731_v25  ;;  %v707_v57 = vld [vmem:[%s16158_s2 + $0x28] sm:$0xff] }
  0x9e   :  { %v9986_v23 = vcombine.high %v990_v9, %v994_v10  ;;  %v982_v26 = vld [vmem:[%s16158_s2 + $0x8c0] sm:$0xff]  ;;  %v823_v5 = vld [vmem:[%s16158_s2 + $0x3c8] sm:$0xff] }
  0x9f   :  { %2746 = vmatpush2.bf16.msra.mxu0 %v9889_v28  ;;  %v986_v27 = vld [vmem:[%s16158_s2 + $0x8e0] sm:$0xff]  ;;  %v9731_v28 = vcombine.low %v735_v18, %v739_v19  ;;  %v827_v8 = vld [vmem:[%s16158_s2 + $0x3e8] sm:$0xff] }
  0xa0   :  { %2797 = vmatprep.subr.bf16.mxu0 %v9756_v29  ;;  %v9985_v29 = vcombine.low %v990_v9, %v994_v10  ;;  %v958_v58 = vld [vmem:[%s16158_s2 + $0x800] sm:$0xff]  ;;  %v887_v11 = vld [vmem:[%s16158_s2 + $0x5c8] sm:$0xff] }
  0xa1   :  { %v891_v13 = vld [vmem:[%s16158_s2 + $0x5e8] sm:$0xff] }
  0xa2   :  { %v9884_v19 = vcombine.high %v887_v11, %v891_v13  ;;  %v815_v10 = vld [vmem:[%s16158_s2 + $0x388] sm:$0xff] }
 0x102   :  { %v609_v41 = vpop.f32.mrf.mxu0  ;;  %v650_v42 = vpop.f32.mrf.mxu1 }
 0x103   :  { %v610_v43 = vadd.f32 %v609_v41, %v137_v37  ;;  %v651_v44 = vadd.f32 %v650_v42, %v145_v38  ;;  %v9978_v37 = vcombine.high %v982_v26, %v986_v27  ;;  %v719_v38 = vld [vmem:[%s16158_s2 + $0x88] sm:$0xff]  ;;  %v978_v41 = vld [vmem:[%s16158_s2 + $0x8a0] sm:$0xff]  ;;  %v9723_v42 = vcombine.low %v727_v24, %v731_v25 }
 0x104   :  { %v611_v45 = vpop.f32.mrf.mxu0  ;;  %v652_v46 = vpop.f32.mrf.mxu1  ;;  %v9819_v25 = vcombine.low %v823_v5, %v827_v8 }
 0x105   :  { %v699_v47 = vmax.f32 %v651_v44, 0.0  ;;  %v612_v48 = vadd.f32 %v611_v45, %v141_v39  ;;  %v653_v49 = vadd.f32 %v652_v46, %v149_v40  ;;  %v697_v50 = vmax.f32 %v610_v43, 0.0  ;;  %v723_v39 = vld [vmem:[%s16158_s2 + $0xa8] sm:$0xff]  ;;  %v974_v40 = vld [vmem:[%s16158_s2 + $0x880] sm:$0xff] }
 0x106   :  { %v613_v51 = vpop.f32.mrf.mxu0  ;;  %v654_v52 = vpop.f32.mrf.mxu1  ;;  %v9977_v43 = vcombine.low %v982_v26, %v986_v27  ;;  %v9716_v44 = vcombine.high %v719_v38, %v723_v39  ;;  %v9970_v45 = vcombine.high %v974_v40, %v978_v41  ;;  %v711_v46 = vld [vmem:[%s16158_s2 + $0x48] sm:$0xff]  ;;  %v9883_v26 = vcombine.low %v887_v11, %v891_v13 }
 0x107   :  { %v698_v55 = vmax.f32 %v612_v48, 0.0  ;;  %v700_v56 = vmax.f32 %v653_v49, 0.0  ;;  %v12661_v59 = vpack.c.bf16 %v699_v47, %v699_v47  ;;  %v12673_v2 = vpack.c.bf16 %v697_v50, %v697_v50  ;;  %v715_v47 = vld [vmem:[%s16158_s2 + $0x68] sm:$0xff]  ;;  %v966_v48 = vld [vmem:[%s16158_s2 + $0x840] sm:$0xff] }
 0x108   :  { %v614_v60 = vpop.f32.mrf.mxu0  ;;  %v655_v61 = vpop.f32.mrf.mxu1  ;;  %v970_v49 = vld [vmem:[%s16158_s2 + $0x860] sm:$0xff]  ;;  %v9715_v50 = vcombine.low %v719_v38, %v723_v39  ;;  %v9969_v51 = vcombine.low %v974_v40, %v978_v41  ;;  %v9708_v52 = vcombine.high %v711_v46, %v715_v47  ;;  %v871_v38 = vld [vmem:[%s16158_s2 + $0x548] sm:$0xff] }
 0x109   :  { %v12669_v0 = vpack.c.bf16 %v698_v55, %v698_v55  ;;  %v12671_v1 = vpack.c.bf16 %v700_v56, %v700_v56  ;;  %v9962_v54 = vcombine.high %v966_v48, %v970_v49  ;;  %v703_v55 = vld [vmem:[%s16158_s2 + $0x8] sm:$0xff]  ;;  %v12749_v56 = vsub.s32 4, %v12626_v31  ;;  %v962_v60 = vld [vmem:[%s16158_s2 + $0x820] sm:$0xff] }
 0x10a   :  { %v9707_v61 = vcombine.low %v711_v46, %v715_v47  ;;  %v9961_v62 = vcombine.low %v966_v48, %v970_v49  ;;  %v875_v39 = vld [vmem:[%s16158_s2 + $0x568] sm:$0xff] }
 0x10b   :  { %2706 = vmatprep.mubr.bf16.mxu1 %v12669_v0  ;;  %2747 = vmatprep.mubr.bf16.mxu0 %v12671_v1  ;;  %v863_v46 = vld [vmem:[%s16158_s2 + $0x508] sm:$0xff]  ;;  %v9867_v49 = vcombine.low %v871_v38, %v875_v39 }
 0x10c   :  { %2707 = vmatmul.mubr.bf16.vlgmr.msra.gmra.mxu1 %v12673_v2  ;;  %2748 = vmatmul.mubr.bf16.vlgmr.msra.gmra.mxu0 %v12661_v59  ;;  %v867_v47 = vld [vmem:[%s16158_s2 + $0x528] sm:$0xff] }
 0x10d   :  { %2798 = vmatpush1.bf16.msra.mxu0 %v9755_v12  ;;  %2757 = vmatpush1.bf16.msra.mxu1 %v2651_v3  ;;  %v12124_v12 = vmov 0   ;;  %v9700_v3 = vcombine.high %v703_v55, %v707_v57 }
 0x10e   :  { %2829 = vmatprep.mubr.bf16.mxu0 %v12669_v0  ;;  %2799 = vmatprep.subr.bf16.mxu0 %v9748_v4  ;;  %v9954_v4 = vcombine.high %v958_v58, %v962_v60 }
 0x10f   :  { %2758 = vmatprep.subr.bf16.mxu1 %v10002_v6  ;;  %2788 = vmatprep.mubr.bf16.mxu1 %v12124_v12  ;;  %v153_v6 = vrot.slane %v12637_v34, %v12749_v56  ;;  %v9820_v34 = vcombine.high %v823_v5, %v827_v8  ;;  %v851_v5 = vld [vmem:[%s16158_s2 + $0x4a8] sm:$0xff] }
 0x111   :  { %2800 = vmatpush1.bf16.msra.mxu0 %v9747_v14  ;;  %2759 = vmatpush1.bf16.msra.mxu1 %v10001_v15 }
 0x112   :  { %2801 = vmatprep.subr.bf16.mxu0 %v9740_v16  ;;  %2760 = vmatprep.subr.bf16.mxu1 %v9994_v17  ;;  %v9699_v16 = vcombine.low %v703_v55, %v707_v57  ;;  %v9953_v17 = vcombine.low %v958_v58, %v962_v60  ;;  %v855_v55 = vld [vmem:[%s16158_s2 + $0x4c8] sm:$0xff]  ;;  %v9859_v60 = vcombine.low %v863_v46, %v867_v47 }
 0x113   :  { %v859_v57 = vld [vmem:[%s16158_s2 + $0x4e8] sm:$0xff] }
 0x114   :  { %v9851_v8 = vcombine.low %v855_v55, %v859_v57 }
 0x115   :  { %2802 = vmatpush1.bf16.msra.mxu0 %v9739_v20  ;;  %2761 = vmatpush1.bf16.msra.mxu1 %v9993_v21  ;;  %v819_v21 = vld [vmem:[%s16158_s2 + $0x3a8] sm:$0xff] }
 0x116   :  { %2803 = vmatprep.subr.bf16.mxu0 %v9732_v22  ;;  %2762 = vmatprep.subr.bf16.mxu1 %v9986_v23  ;;  %v879_v22 = vld [vmem:[%s16158_s2 + $0x588] sm:$0xff]  ;;  %v9811_v40 = vcombine.low %v815_v10, %v819_v21 }
 0x117   :  { %v883_v23 = vld [vmem:[%s16158_s2 + $0x5a8] sm:$0xff] }
 0x118   :  { %v9875_v41 = vcombine.low %v879_v22, %v883_v23 }
 0x119   :  { %2804 = vmatpush1.bf16.msra.mxu0 %v9731_v28  ;;  %2763 = vmatpush1.bf16.msra.mxu1 %v9985_v29  ;;  %v9812_v28 = vcombine.high %v815_v10, %v819_v21  ;;  %v9876_v29 = vcombine.high %v879_v22, %v883_v23  ;;  %v767_v10 = vld [vmem:[%s16158_s2 + $0x208] sm:$0xff] }
 0x11a   :  { %2805 = vmatprep.subr.bf16.mxu0 %v9724_v30  ;;  %2764 = vmatprep.subr.bf16.mxu1 %v9978_v37  ;;  %v807_v30 = vld [vmem:[%s16158_s2 + $0x348] sm:$0xff] }
 0x11b   :  { %v811_v37 = vld [vmem:[%s16158_s2 + $0x368] sm:$0xff] }
 0x11c   :  { %v9803_v48 = vcombine.low %v807_v30, %v811_v37  ;;  %v831_v21 = vld [vmem:[%s16158_s2 + $0x408] sm:$0xff] }
 0x11d   :  { %2806 = vmatpush1.bf16.msra.mxu0 %v9723_v42  ;;  %2765 = vmatpush1.bf16.msra.mxu1 %v9977_v43  ;;  %v9804_v42 = vcombine.high %v807_v30, %v811_v37  ;;  %v9868_v43 = vcombine.high %v871_v38, %v875_v39  ;;  %v835_v22 = vld [vmem:[%s16158_s2 + $0x428] sm:$0xff] }
 0x11e   :  { %2807 = vmatprep.subr.bf16.mxu0 %v9716_v44  ;;  %2766 = vmatprep.subr.bf16.mxu1 %v9970_v45  ;;  %v799_v44 = vld [vmem:[%s16158_s2 + $0x308] sm:$0xff]  ;;  %v9827_v38 = vcombine.low %v831_v21, %v835_v22 }
 0x11f   :  { %v803_v45 = vld [vmem:[%s16158_s2 + $0x328] sm:$0xff] }
 0x120   :  { %v9795_v58 = vcombine.low %v799_v44, %v803_v45  ;;  %v955_v30 = vld [vmem:[%s16158_s2 + $0x7e8] sm:$0xff] }
 0x121   :  { %2808 = vmatpush1.bf16.msra.mxu0 %v9715_v50  ;;  %2767 = vmatpush1.bf16.msra.mxu1 %v9969_v51  ;;  %v9796_v50 = vcombine.high %v799_v44, %v803_v45  ;;  %v9860_v51 = vcombine.high %v863_v46, %v867_v47  ;;  %v943_v44 = vld [vmem:[%s16158_s2 + $0x788] sm:$0xff] }
 0x122   :  { %v11685_v63 = vpop.f32.mrf.mxu0  ;;  %2809 = vmatprep.subr.bf16.mxu0 %v9708_v52  ;;  %2768 = vmatprep.subr.bf16.mxu1 %v9962_v54  ;;  %v791_v52 = vld [vmem:[%s16158_s2 + $0x2c8] sm:$0xff] }
 0x123   :  { %v795_v54 = vld [vmem:[%s16158_s2 + $0x2e8] sm:$0xff] }
 0x124   :  { %v11686_v14 = vpop.f32.mrf.mxu0  ;;  %v947_v45 = vld [vmem:[%s16158_s2 + $0x7a8] sm:$0xff] }
 0x125   :  { %v11687_v15 = vadd.f32 %v11686_v14, %v11685_v63  ;;  %2810 = vmatpush1.bf16.msra.mxu0 %v9707_v61  ;;  %2769 = vmatpush1.bf16.msra.mxu1 %v9961_v62  ;;  %v9788_v61 = vcombine.high %v791_v52, %v795_v54  ;;  %v9852_v62 = vcombine.high %v855_v55, %v859_v57  ;;  %v783_v63 = vld [vmem:[%s16158_s2 + $0x288] sm:$0xff] }
 0x126   :  { %v11688_v18 = vpop.f32.mrf.mxu0  ;;  %2811 = vmatprep.subr.bf16.mxu0 %v9700_v3  ;;  %2770 = vmatprep.subr.bf16.mxu1 %v9954_v4  ;;  %v787_v3 = vld [vmem:[%s16158_s2 + $0x2a8] sm:$0xff]  ;;  %v9939_v57 = vcombine.low %v943_v44, %v947_v45 }
 0x127   :  { %v692_v9 = vadd.f32 %v11687_v15, %v153_v6  ;;  %v847_v4 = vld [vmem:[%s16158_s2 + $0x488] sm:$0xff]  ;;  %v9787_v6 = vcombine.low %v791_v52, %v795_v54  ;;  %v9780_v11 = vcombine.high %v783_v63, %v787_v3  ;;  %v9779_v18 = vcombine.low %v783_v63, %v787_v3 }
 0x128   :  { %v11689_v20 = vpop.f32.mrf.mxu0  ;;  %v9844_v13 = vcombine.high %v847_v4, %v851_v5  ;;  %v775_v14 = vld [vmem:[%s16158_s2 + $0x248] sm:$0xff] }
 0x129   :  { %v701_v24 = vmax.f32 %v692_v9, 0.0  ;;  %2812 = vmatpush1.bf16.msra.mxu0 %v9699_v16  ;;  %2771 = vmatpush1.bf16.msra.mxu1 %v9953_v17  ;;  %v779_v15 = vld [vmem:[%s16158_s2 + $0x268] sm:$0xff] }
 0x12a   :  { %2813 = vmatprep.subr.bf16.mxu0 %v9820_v34  ;;  %2838 = vmatprep.subr.bf16.mxu1 %v9884_v19  ;;  %v839_v16 = vld [vmem:[%s16158_s2 + $0x448] sm:$0xff]  ;;  %v9843_v34 = vcombine.low %v847_v4, %v851_v5  ;;  %v9772_v19 = vcombine.high %v775_v14, %v779_v15  ;;  %v9771_v23 = vcombine.low %v775_v14, %v779_v15 }
 0x12b   :  { %v12786_v27 = vpack.c.bf16 %v701_v24, %v701_v24  ;;  %v843_v17 = vld [vmem:[%s16158_s2 + $0x468] sm:$0xff] }
 0x12c   :  { %v9836_v9 = vcombine.high %v839_v16, %v843_v17  ;;  %v771_v20 = vld [vmem:[%s16158_s2 + $0x228] sm:$0xff]  ;;  %v9835_v24 = vcombine.low %v839_v16, %v843_v17 }
 0x12d   :  { %2814 = vmatpush2.bf16.msra.mxu0 %v9819_v25  ;;  %10018 = vmatmul.mubr.msk.bf16.vlgmr.msra.gmra.mxu1 %vm2645_vm1, %v12786_v27  ;;  %v9764_v25 = vcombine.high %v767_v10, %v771_v20  ;;  %v9763_v37 = vcombine.low %v767_v10, %v771_v20  ;;  %v935_v52 = vld [vmem:[%s16158_s2 + $0x748] sm:$0xff] }
 0x12e   :  { %2839 = vmatpush1.bf16.msra.mxu1 %v9883_v26  ;;  %2870 = vmatprep.mubr.bf16.mxu1 %v12671_v1  ;;  %v9828_v26 = vcombine.high %v831_v21, %v835_v22  ;;  %v939_v54 = vld [vmem:[%s16158_s2 + $0x768] sm:$0xff] }
 0x12f   :  { %2815 = vmatprep.subr.bf16.mxu0 %v9812_v28  ;;  %2840 = vmatprep.subr.bf16.mxu1 %v9876_v29  ;;  %v1015_v28 = vld [vmem:[%s16158_s2 + $0x9c8] sm:$0x33]  ;;  %v9931_v5 = vcombine.low %v935_v52, %v939_v54 }
 0x130   :  { %v951_v29 = vld [vmem:[%s16158_s2 + $0x7c8] sm:$0xff]  ;;  %v10012_v39 = vcombine.high %v1015_v28, %v1015_v28 }
 0x131   :  { %2816 = vmatpush2.bf16.msra.mxu0 %v9811_v40  ;;  %v10011_v40 = vcombine.low %v1015_v28, %v1015_v28  ;;  %v9947_v46 = vcombine.low %v951_v29, %v955_v30  ;;  %v927_v63 = vld [vmem:[%s16158_s2 + $0x708] sm:$0xff] }
 0x132   :  { %2841 = vmatpush1.bf16.msra.mxu1 %v9875_v41  ;;  %2817 = vmatprep.subr.bf16.mxu0 %v9804_v42  ;;  %v9948_v41 = vcombine.high %v951_v29, %v955_v30  ;;  %v1007_v42 = vld [vmem:[%s16158_s2 + $0x988] sm:$0xff] }
 0x133   :  { %2842 = vmatprep.subr.bf16.mxu1 %v9868_v43  ;;  %v1011_v43 = vld [vmem:[%s16158_s2 + $0x9a8] sm:$0xff]  ;;  %v2657_v47 = vsel %vm2649_vm0, %v10011_v40, 0 }
 0x134   :  { %v10003_v55 = vcombine.low %v1007_v42, %v1011_v43  ;;  %v931_v3 = vld [vmem:[%s16158_s2 + $0x728] sm:$0xff] }
 0x135   :  { %2818 = vmatpush2.bf16.msra.mxu0 %v9803_v48  ;;  %v10004_v48 = vcombine.high %v1007_v42, %v1011_v43  ;;  %v919_v14 = vld [vmem:[%s16158_s2 + $0x6c8] sm:$0xff]  ;;  %v9923_v17 = vcombine.low %v927_v63, %v931_v3 }
 0x136   :  { %2843 = vmatpush1.bf16.msra.mxu1 %v9867_v49  ;;  %2819 = vmatprep.subr.bf16.mxu0 %v9796_v50  ;;  %v9940_v49 = vcombine.high %v943_v44, %v947_v45  ;;  %v999_v50 = vld [vmem:[%s16158_s2 + $0x948] sm:$0xff] }
 0x137   :  { %2844 = vmatprep.subr.bf16.mxu1 %v9860_v51  ;;  %v1003_v51 = vld [vmem:[%s16158_s2 + $0x968] sm:$0xff] }
 0x138   :  { %v9995_v4 = vcombine.low %v999_v50, %v1003_v51  ;;  %v923_v15 = vld [vmem:[%s16158_s2 + $0x6e8] sm:$0xff] }
 0x139   :  { %2820 = vmatpush2.bf16.msra.mxu0 %v9795_v58  ;;  %v9996_v58 = vcombine.high %v999_v50, %v1003_v51  ;;  %v911_v10 = vld [vmem:[%s16158_s2 + $0x688] sm:$0xff]  ;;  %v9915_v22 = vcombine.low %v919_v14, %v923_v15  ;;  %v760_v50 = vld [vmem:[%s16158_s2 + $0x1d0] sm:$0xff] }
 0x13a   :  { %2845 = vmatpush1.bf16.msra.mxu1 %v9859_v60  ;;  %2821 = vmatprep.subr.bf16.mxu0 %v9788_v61  ;;  %v9932_v60 = vcombine.high %v935_v52, %v939_v54  ;;  %v991_v61 = vld [vmem:[%s16158_s2 + $0x908] sm:$0xff]  ;;  %v764_v51 = vld [vmem:[%s16158_s2 + $0x1f0] sm:$0xff] }
 0x13b   :  { %2846 = vmatprep.subr.bf16.mxu1 %v9852_v62  ;;  %v995_v62 = vld [vmem:[%s16158_s2 + $0x928] sm:$0xff] }
 0x13c   :  { %v9987_v16 = vcombine.low %v991_v61, %v995_v62  ;;  %v915_v20 = vld [vmem:[%s16158_s2 + $0x6a8] sm:$0xff] }
 0x13d   :  { %2822 = vmatpush2.bf16.msra.mxu0 %v9787_v6  ;;  %v9988_v6 = vcombine.high %v991_v61, %v995_v62  ;;  %v903_v28 = vld [vmem:[%s16158_s2 + $0x648] sm:$0xff]  ;;  %v752_v62 = vld [vmem:[%s16158_s2 + $0x190] sm:$0xff] }
 0x13e   :  { %2847 = vmatpush1.bf16.msra.mxu1 %v9851_v8  ;;  %2823 = vmatprep.subr.bf16.mxu0 %v9780_v11  ;;  %v9924_v8 = vcombine.high %v927_v63, %v931_v3  ;;  %v983_v11 = vld [vmem:[%s16158_s2 + $0x8c8] sm:$0xff]  ;;  %v756_v63 = vld [vmem:[%s16158_s2 + $0x1b0] sm:$0xff]  ;;  %v9757_v3 = vcombine.low %v760_v50, %v764_v51 }
 0x13f   :  { %2848 = vmatprep.subr.bf16.mxu1 %v9844_v13  ;;  %v987_v13 = vld [vmem:[%s16158_s2 + $0x8e8] sm:$0xff] }
 0x140   :  { %v9979_v21 = vcombine.low %v983_v11, %v987_v13  ;;  %v907_v29 = vld [vmem:[%s16158_s2 + $0x668] sm:$0xff] }
 0x141   :  { %2824 = vmatpush2.bf16.msra.mxu0 %v9779_v18  ;;  %v9980_v18 = vcombine.high %v983_v11, %v987_v13  ;;  %v959_v40 = vld [vmem:[%s16158_s2 + $0x808] sm:$0xff]  ;;  %v9899_v45 = vcombine.low %v903_v28, %v907_v29  ;;  %v744_v11 = vld [vmem:[%s16158_s2 + $0x150] sm:$0xff] }
 0x142   :  { %2849 = vmatpush1.bf16.msra.mxu1 %v9843_v34  ;;  %2825 = vmatprep.subr.bf16.mxu0 %v9772_v19  ;;  %v9916_v34 = vcombine.high %v919_v14, %v923_v15  ;;  %v975_v19 = vld [vmem:[%s16158_s2 + $0x888] sm:$0xff]  ;;  %v748_v13 = vld [vmem:[%s16158_s2 + $0x170] sm:$0xff]  ;;  %v9749_v15 = vcombine.low %v752_v62, %v756_v63 }
 0x143   :  { %2850 = vmatprep.subr.bf16.mxu1 %v9836_v9  ;;  %v979_v9 = vld [vmem:[%s16158_s2 + $0x8a8] sm:$0xff] }
 0x144   :  { %v9971_v30 = vcombine.low %v975_v19, %v979_v9  ;;  %v895_v42 = vld [vmem:[%s16158_s2 + $0x608] sm:$0xff] }
 0x145   :  { %2826 = vmatpush2.bf16.msra.mxu0 %v9771_v23  ;;  %v9972_v23 = vcombine.high %v975_v19, %v979_v9  ;;  %v899_v43 = vld [vmem:[%s16158_s2 + $0x628] sm:$0xff]  ;;  %v736_v19 = vld [vmem:[%s16158_s2 + $0x110] sm:$0xff] }
 0x146   :  { %2851 = vmatpush1.bf16.msra.mxu1 %v9835_v24  ;;  %2827 = vmatprep.subr.bf16.mxu0 %v9764_v25  ;;  %v9908_v24 = vcombine.high %v911_v10, %v915_v20  ;;  %v967_v25 = vld [vmem:[%s16158_s2 + $0x848] sm:$0xff]  ;;  %v9891_v54 = vcombine.low %v895_v42, %v899_v43  ;;  %v740_v9 = vld [vmem:[%s16158_s2 + $0x130] sm:$0xff] }
 0x147   :  { %2852 = vmatprep.subr.bf16.mxu1 %v9828_v26  ;;  %v971_v26 = vld [vmem:[%s16158_s2 + $0x868] sm:$0xff] }
 0x148   :  { %v9963_v44 = vcombine.low %v967_v25, %v971_v26 }
 0x149   :  { %2828 = vmatpush2.bf16.msra.mxu0 %v9763_v37  ;;  %v9907_v37 = vcombine.low %v911_v10, %v915_v20  ;;  %v9741_v20 = vcombine.low %v744_v11, %v748_v13 }
 0x14a   :  { %2853 = vmatpush1.bf16.msra.mxu1 %v9827_v38  ;;  %10019 = vmatprep.subr.msk.bf16.mxu0 %vm2649_vm0, %v10012_v39  ;;  %v9964_v38 = vcombine.high %v967_v25, %v971_v26  ;;  %v9900_v39 = vcombine.high %v903_v28, %v907_v29  ;;  %v728_v25 = vld [vmem:[%s16158_s2 + $0xd0] sm:$0xff]  ;;  %v9733_v29 = vcombine.low %v736_v19, %v740_v9 }
 0x14b   :  { %2854 = vmatprep.subr.bf16.mxu1 %v9948_v41  ;;  %v963_v41 = vld [vmem:[%s16158_s2 + $0x828] sm:$0xff]  ;;  %v732_v26 = vld [vmem:[%s16158_s2 + $0xf0] sm:$0xff] }
 0x14c   :  { %2830 = vmatmul.mubr.bf16.vlgmr.msra.gmra.mxu0 %v12673_v2  ;;  %v9955_v52 = vcombine.low %v959_v40, %v963_v41 }
 0x14d   :  { %2880 = vmatpush1.bf16.msra.mxu0 %v2657_v47  ;;  %2911 = vmatprep.mubr.bf16.mxu0 %v12124_v12  ;;  %v9892_v47 = vcombine.high %v895_v42, %v899_v43  ;;  %v9725_v43 = vcombine.low %v728_v25, %v732_v26 }
 0x14e   :  { %2855 = vmatpush2.bf16.msra.mxu1 %v9947_v46  ;;  %2881 = vmatprep.subr.bf16.mxu0 %v10004_v48  ;;  %v9956_v46 = vcombine.high %v959_v40, %v963_v41  ;;  %v888_v48 = vld [vmem:[%s16158_s2 + $0x5d0] sm:$0xff] }
 0x14f   :  { %2856 = vmatprep.subr.bf16.mxu1 %v9940_v49  ;;  %v892_v49 = vld [vmem:[%s16158_s2 + $0x5f0] sm:$0xff] }
 0x150   :  { %v9885_v61 = vcombine.low %v888_v48, %v892_v49  ;;  %v720_v40 = vld [vmem:[%s16158_s2 + $0x90] sm:$0xff] }
 0x151   :  { %2882 = vmatpush1.bf16.msra.mxu0 %v10003_v55  ;;  %v9886_v55 = vcombine.high %v888_v48, %v892_v49  ;;  %v724_v41 = vld [vmem:[%s16158_s2 + $0xb0] sm:$0xff] }
 0x152   :  { %2857 = vmatpush2.bf16.msra.mxu1 %v9939_v57  ;;  %2883 = vmatprep.subr.bf16.mxu0 %v9996_v58  ;;  %v9758_v57 = vcombine.high %v760_v50, %v764_v51  ;;  %v880_v58 = vld [vmem:[%s16158_s2 + $0x590] sm:$0xff]  ;;  %v9717_v51 = vcombine.low %v720_v40, %v724_v41 }
 0x153   :  { %2858 = vmatprep.subr.bf16.mxu1 %v9932_v60  ;;  %v884_v60 = vld [vmem:[%s16158_s2 + $0x5b0] sm:$0xff] }
 0x154   :  { %v9877_v14 = vcombine.low %v880_v58, %v884_v60  ;;  %v712_v48 = vld [vmem:[%s16158_s2 + $0x50] sm:$0xff] }
 0x155   :  { %2884 = vmatpush1.bf16.msra.mxu0 %v9995_v4  ;;  %v9878_v4 = vcombine.high %v880_v58, %v884_v60  ;;  %v716_v49 = vld [vmem:[%s16158_s2 + $0x70] sm:$0xff] }
 0x156   :  { %2859 = vmatpush2.bf16.msra.mxu1 %v9931_v5  ;;  %2885 = vmatprep.subr.bf16.mxu0 %v9988_v6  ;;  %v872_v5 = vld [vmem:[%s16158_s2 + $0x550] sm:$0xff] }
 0x157   :  { %2860 = vmatprep.subr.bf16.mxu1 %v9924_v8  ;;  %v876_v6 = vld [vmem:[%s16158_s2 + $0x570] sm:$0xff]  ;;  %v9750_v8 = vcombine.high %v752_v62, %v756_v63  ;;  %v9709_v62 = vcombine.low %v712_v48, %v716_v49 }
 0x158   :  { %v9869_v10 = vcombine.low %v872_v5, %v876_v6  ;;  %v704_v58 = vld [vmem:[%s16158_s2 + $0x10] sm:$0xff] }
 0x159   :  { %2886 = vmatpush1.bf16.msra.mxu0 %v9987_v16  ;;  %v9870_v16 = vcombine.high %v872_v5, %v876_v6  ;;  %v708_v60 = vld [vmem:[%s16158_s2 + $0x30] sm:$0xff] }
 0x15a   :  { %2861 = vmatpush2.bf16.msra.mxu1 %v9923_v17  ;;  %2887 = vmatprep.subr.bf16.mxu0 %v9980_v18  ;;  %v9742_v17 = vcombine.high %v744_v11, %v748_v13  ;;  %v864_v18 = vld [vmem:[%s16158_s2 + $0x510] sm:$0xff]  ;;  %v9701_v13 = vcombine.low %v704_v58, %v708_v60 }
 0x15b   :  { %2862 = vmatprep.subr.bf16.mxu1 %v9916_v34  ;;  %v868_v34 = vld [vmem:[%s16158_s2 + $0x530] sm:$0xff] }
 0x15c   :  { %v9861_v28 = vcombine.low %v864_v18, %v868_v34  ;;  %v956_v5 = vld [vmem:[%s16158_s2 + $0x7f0] sm:$0xff] }
 0x15d   :  { %2888 = vmatpush1.bf16.msra.mxu0 %v9979_v21  ;;  %v9862_v21 = vcombine.high %v864_v18, %v868_v34  ;;  %v824_v6 = vld [vmem:[%s16158_s2 + $0x3d0] sm:$0xff] }
 0x15e   :  { %2863 = vmatpush2.bf16.msra.mxu1 %v9915_v22  ;;  %2889 = vmatprep.subr.bf16.mxu0 %v9972_v23  ;;  %v9734_v22 = vcombine.high %v736_v19, %v740_v9  ;;  %v856_v23 = vld [vmem:[%s16158_s2 + $0x4d0] sm:$0xff] }
 0x15f   :  { %2864 = vmatprep.subr.bf16.mxu1 %v9908_v24  ;;  %v860_v24 = vld [vmem:[%s16158_s2 + $0x4f0] sm:$0xff] }
 0x160   :  { %v9853_v42 = vcombine.low %v856_v23, %v860_v24  ;;  %v816_v18 = vld [vmem:[%s16158_s2 + $0x390] sm:$0xff] }
 0x161   :  { %2890 = vmatpush1.bf16.msra.mxu0 %v9971_v30  ;;  %v9854_v30 = vcombine.high %v856_v23, %v860_v24  ;;  %v820_v34 = vld [vmem:[%s16158_s2 + $0x3b0] sm:$0xff] }
 0x162   :  { %2865 = vmatpush2.bf16.msra.mxu1 %v9907_v37  ;;  %2891 = vmatprep.subr.bf16.mxu0 %v9964_v38  ;;  %v9726_v37 = vcombine.high %v728_v25, %v732_v26  ;;  %v848_v38 = vld [vmem:[%s16158_s2 + $0x490] sm:$0xff]  ;;  %v9813_v26 = vcombine.low %v816_v18, %v820_v34 }
 0x163   :  { %2866 = vmatprep.subr.bf16.mxu1 %v9900_v39  ;;  %v852_v39 = vld [vmem:[%s16158_s2 + $0x4b0] sm:$0xff] }
 0x164   :  { %v9845_v50 = vcombine.low %v848_v38, %v852_v39  ;;  %v808_v23 = vld [vmem:[%s16158_s2 + $0x350] sm:$0xff] }
 0x165   :  { %2892 = vmatpush1.bf16.msra.mxu0 %v9963_v44  ;;  %v9846_v44 = vcombine.high %v848_v38, %v852_v39  ;;  %v812_v24 = vld [vmem:[%s16158_s2 + $0x370] sm:$0xff] }
 0x166   :  { %2867 = vmatpush2.bf16.msra.mxu1 %v9899_v45  ;;  %2893 = vmatprep.subr.bf16.mxu0 %v9956_v46  ;;  %v9718_v45 = vcombine.high %v720_v40, %v724_v41  ;;  %v840_v46 = vld [vmem:[%s16158_s2 + $0x450] sm:$0xff]  ;;  %v9805_v41 = vcombine.low %v808_v23, %v812_v24 }
 0x167   :  { %2868 = vmatprep.subr.bf16.mxu1 %v9892_v47  ;;  %v844_v47 = vld [vmem:[%s16158_s2 + $0x470] sm:$0xff] }
 0x168   :  { %v800_v38 = vld [vmem:[%s16158_s2 + $0x310] sm:$0xff] }
 0x169   :  { %2894 = vmatpush1.bf16.msra.mxu0 %v9955_v52  ;;  %v9838_v52 = vcombine.high %v840_v46, %v844_v47  ;;  %v804_v39 = vld [vmem:[%s16158_s2 + $0x330] sm:$0xff] }
 0x16a   :  { %2869 = vmatpush2.bf16.msra.mxu1 %v9891_v54  ;;  %2961 = vmatprep.subr.bf16.mxu0 %v9886_v55  ;;  %v9710_v54 = vcombine.high %v712_v48, %v716_v49  ;;  %v832_v55 = vld [vmem:[%s16158_s2 + $0x410] sm:$0xff]  ;;  %v9797_v49 = vcombine.low %v800_v38, %v804_v39 }
 0x16b   :  { %2920 = vmatprep.subr.bf16.mxu1 %v9758_v57  ;;  %v836_v57 = vld [vmem:[%s16158_s2 + $0x430] sm:$0xff] }
 0x16c   :  { %10020 = vmatmul.mubr.msk.bf16.vlgmr.msra.gmra.mxu0 %vm2645_vm1, %v12786_v27  ;;  %v9830_v63 = vcombine.high %v832_v55, %v836_v57  ;;  %v9829_v11 = vcombine.low %v832_v55, %v836_v57  ;;  %v784_v55 = vld [vmem:[%s16158_s2 + $0x290] sm:$0xff] }
 0x16d   :  { %2871 = vmatmul.mubr.bf16.vlgmr.msra.gmra.mxu1 %v12661_v59  ;;  %2962 = vmatpush1.bf16.msra.mxu0 %v9885_v61  ;;  %v9837_v61 = vcombine.low %v840_v46, %v844_v47  ;;  %v792_v46 = vld [vmem:[%s16158_s2 + $0x2d0] sm:$0xff] }
 0x16e   :  { %2993 = vmatprep.mubr.bf16.mxu0 %v12671_v1  ;;  %2921 = vmatpush1.bf16.msra.mxu1 %v9757_v3  ;;  %v9702_v3 = vcombine.high %v704_v58, %v708_v60  ;;  %v796_v47 = vld [vmem:[%s16158_s2 + $0x2f0] sm:$0xff] }
 0x16f   :  { %2952 = vmatprep.mubr.bf16.mxu1 %v12669_v0  ;;  %2963 = vmatprep.subr.bf16.mxu0 %v9878_v4  ;;  %v952_v4 = vld [vmem:[%s16158_s2 + $0x7d0] sm:$0xff]  ;;  %v9789_v60 = vcombine.low %v792_v46, %v796_v47 }
 0x170   :  { %2922 = vmatprep.subr.bf16.mxu1 %v9750_v8  ;;  %v828_v8 = vld [vmem:[%s16158_s2 + $0x3f0] sm:$0xff]  ;;  %v9949_v19 = vcombine.low %v952_v4, %v956_v5 }
 0x171   :  { %2964 = vmatpush1.bf16.msra.mxu0 %v9877_v14  ;;  %v9950_v14 = vcombine.high %v952_v4, %v956_v5  ;;  %v9821_v9 = vcombine.low %v824_v6, %v828_v8  ;;  %v788_v57 = vld [vmem:[%s16158_s2 + $0x2b0] sm:$0xff] }
 0x172   :  { %2923 = vmatpush1.bf16.msra.mxu1 %v9749_v15  ;;  %2965 = vmatprep.subr.bf16.mxu0 %v9870_v16  ;;  %v9822_v15 = vcombine.high %v824_v6, %v828_v8  ;;  %v944_v16 = vld [vmem:[%s16158_s2 + $0x790] sm:$0xff]  ;;  %v9781_v8 = vcombine.low %v784_v55, %v788_v57 }
 0x173   :  { %2924 = vmatprep.subr.bf16.mxu1 %v9742_v17  ;;  %v948_v17 = vld [vmem:[%s16158_s2 + $0x7b0] sm:$0xff] }
 0x174   :  { %v9941_v25 = vcombine.low %v944_v16, %v948_v17  ;;  %v776_v4 = vld [vmem:[%s16158_s2 + $0x250] sm:$0xff] }
 0x175   :  { %2966 = vmatpush1.bf16.msra.mxu0 %v9869_v10  ;;  %v9942_v10 = vcombine.high %v944_v16, %v948_v17  ;;  %v780_v5 = vld [vmem:[%s16158_s2 + $0x270] sm:$0xff] }
 0x176   :  { %2925 = vmatpush1.bf16.msra.mxu1 %v9741_v20  ;;  %2967 = vmatprep.subr.bf16.mxu0 %v9862_v21  ;;  %v9814_v20 = vcombine.high %v816_v18, %v820_v34  ;;  %v936_v21 = vld [vmem:[%s16158_s2 + $0x750] sm:$0xff]  ;;  %v9773_v34 = vcombine.low %v776_v4, %v780_v5 }
 0x177   :  { %2926 = vmatprep.subr.bf16.mxu1 %v9734_v22  ;;  %v940_v22 = vld [vmem:[%s16158_s2 + $0x770] sm:$0xff] }
 0x178   :  { %v9933_v40 = vcombine.low %v936_v21, %v940_v22  ;;  %v768_v16 = vld [vmem:[%s16158_s2 + $0x210] sm:$0xff] }
 0x179   :  { %2968 = vmatpush1.bf16.msra.mxu0 %v9861_v28  ;;  %v9934_v28 = vcombine.high %v936_v21, %v940_v22  ;;  %v772_v17 = vld [vmem:[%s16158_s2 + $0x230] sm:$0xff] }
 0x17a   :  { %2927 = vmatpush1.bf16.msra.mxu1 %v9733_v29  ;;  %2969 = vmatprep.subr.bf16.mxu0 %v9854_v30  ;;  %v9806_v29 = vcombine.high %v808_v23, %v812_v24  ;;  %v928_v30 = vld [vmem:[%s16158_s2 + $0x710] sm:$0xff]  ;;  %v9765_v23 = vcombine.low %v768_v16, %v772_v17 }
 0x17b   :  { %2928 = vmatprep.subr.bf16.mxu1 %v9726_v37  ;;  %v932_v37 = vld [vmem:[%s16158_s2 + $0x730] sm:$0xff] }
 0x17c   :  { %v9925_v48 = vcombine.low %v928_v30, %v932_v37  ;;  %v1016_v21 = vld [vmem:[%s16158_s2 + $0x9d0] sm:$0x33] }
 0x17d   :  { %2970 = vmatpush1.bf16.msra.mxu0 %v9853_v42  ;;  %v9926_v42 = vcombine.high %v928_v30, %v932_v37  ;;  %v1008_v30 = vld [vmem:[%s16158_s2 + $0x990] sm:$0xff] }
 0x17e   :  { %2929 = vmatpush1.bf16.msra.mxu1 %v9725_v43  ;;  %2971 = vmatprep.subr.bf16.mxu0 %v9846_v44  ;;  %v9798_v43 = vcombine.high %v800_v38, %v804_v39  ;;  %v920_v44 = vld [vmem:[%s16158_s2 + $0x6d0] sm:$0xff] }
 0x17f   :  { %2930 = vmatprep.subr.bf16.mxu1 %v9718_v45  ;;  %v924_v45 = vld [vmem:[%s16158_s2 + $0x6f0] sm:$0xff] }
 0x180   :  { %v9917_v58 = vcombine.low %v920_v44, %v924_v45  ;;  %v1012_v37 = vld [vmem:[%s16158_s2 + $0x9b0] sm:$0xff] }
 0x181   :  { %2972 = vmatpush1.bf16.msra.mxu0 %v9845_v50  ;;  %v9918_v50 = vcombine.high %v920_v44, %v924_v45  ;;  %v1000_v44 = vld [vmem:[%s16158_s2 + $0x950] sm:$0xff] }
 0x182   :  { %2931 = vmatpush1.bf16.msra.mxu1 %v9717_v51  ;;  %2973 = vmatprep.subr.bf16.mxu0 %v9838_v52  ;;  %v9790_v51 = vcombine.high %v792_v46, %v796_v47  ;;  %v912_v52 = vld [vmem:[%s16158_s2 + $0x690] sm:$0xff]  ;;  %v10005_v47 = vcombine.low %v1008_v30, %v1012_v37 }
 0x183   :  { %2932 = vmatprep.subr.bf16.mxu1 %v9710_v54  ;;  %v916_v54 = vld [vmem:[%s16158_s2 + $0x6b0] sm:$0xff] }
 0x184   :  { %v9909_v6 = vcombine.low %v912_v52, %v916_v54  ;;  %v1004_v45 = vld [vmem:[%s16158_s2 + $0x970] sm:$0xff] }
 0x185   :  { %2974 = vmatpush1.bf16.msra.mxu0 %v9837_v61  ;;  %v9910_v61 = vcombine.high %v912_v52, %v916_v54  ;;  %v992_v52 = vld [vmem:[%s16158_s2 + $0x910] sm:$0xff] }
 0x186   :  { %2933 = vmatpush1.bf16.msra.mxu1 %v9709_v62  ;;  %2975 = vmatprep.subr.bf16.mxu0 %v9830_v63  ;;  %v9782_v62 = vcombine.high %v784_v55, %v788_v57  ;;  %v904_v63 = vld [vmem:[%s16158_s2 + $0x650] sm:$0xff]  ;;  %v9997_v55 = vcombine.low %v1000_v44, %v1004_v45 }
 0x187   :  { %2934 = vmatprep.subr.bf16.mxu1 %v9702_v3  ;;  %v908_v3 = vld [vmem:[%s16158_s2 + $0x670] sm:$0xff] }
 0x188   :  { %v9901_v18 = vcombine.low %v904_v63, %v908_v3 }
 0x189   :  { %2976 = vmatpush1.bf16.msra.mxu0 %v9829_v11  ;;  %v9902_v11 = vcombine.high %v904_v63, %v908_v3  ;;  %v988_v63 = vld [vmem:[%s16158_s2 + $0x8f0] sm:$0xff] }
 0x18a   :  { %2935 = vmatpush1.bf16.msra.mxu1 %v9701_v13  ;;  %2977 = vmatprep.subr.bf16.mxu0 %v9950_v14  ;;  %v9774_v13 = vcombine.high %v776_v4, %v780_v5  ;;  %v896_v14 = vld [vmem:[%s16158_s2 + $0x610] sm:$0xff] }
 0x18b   :  { %2936 = vmatprep.subr.bf16.mxu1 %v9822_v15  ;;  %v900_v15 = vld [vmem:[%s16158_s2 + $0x630] sm:$0xff] }
 0x18c   :  { %v9893_v22 = vcombine.low %v896_v14, %v900_v15 }
 0x18d   :  { %2978 = vmatpush2.bf16.msra.mxu0 %v9949_v19  ;;  %v9894_v19 = vcombine.high %v896_v14, %v900_v15  ;;  %v980_v14 = vld [vmem:[%s16158_s2 + $0x8b0] sm:$0xff] }
 0x18e   :  { %2937 = vmatpush2.bf16.msra.mxu1 %v9821_v9  ;;  %2979 = vmatprep.subr.bf16.mxu0 %v9942_v10  ;;  %v9766_v9 = vcombine.high %v768_v16, %v772_v17  ;;  %v761_v10 = vld [vmem:[%s16158_s2 + $0x1d8] sm:$0xff] }
 0x18f   :  { %2938 = vmatprep.subr.bf16.mxu1 %v9814_v20  ;;  %v765_v20 = vld [vmem:[%s16158_s2 + $0x1f8] sm:$0xff] }
 0x190   :  { %v9760_v24 = vcombine.high %v761_v10, %v765_v20  ;;  %v9759_v38 = vcombine.low %v761_v10, %v765_v20  ;;  %v972_v10 = vld [vmem:[%s16158_s2 + $0x870] sm:$0xff] }
 0x191   :  { %2980 = vmatpush2.bf16.msra.mxu0 %v9941_v25  ;;  %v10014_v25 = vcombine.high %v1016_v21, %v1016_v21 }
 0x192   :  { %2939 = vmatpush2.bf16.msra.mxu1 %v9813_v26  ;;  %2981 = vmatprep.subr.bf16.mxu0 %v9934_v28  ;;  %v10013_v26 = vcombine.low %v1016_v21, %v1016_v21  ;;  %v753_v28 = vld [vmem:[%s16158_s2 + $0x198] sm:$0xff] }
 0x193   :  { %2940 = vmatprep.subr.bf16.mxu1 %v9806_v29  ;;  %v757_v29 = vld [vmem:[%s16158_s2 + $0x1b8] sm:$0xff] }
 0x194   :  { %v2663_v39 = vsel %vm2649_vm0, %v10013_v26, 0  ;;  %v9751_v46 = vcombine.low %v753_v28, %v757_v29  ;;  %v960_v26 = vld [vmem:[%s16158_s2 + $0x810] sm:$0xff] }
 0x195   :  { %2982 = vmatpush2.bf16.msra.mxu0 %v9933_v40  ;;  %v9752_v40 = vcombine.high %v753_v28, %v757_v29  ;;  %v964_v28 = vld [vmem:[%s16158_s2 + $0x830] sm:$0xff] }
 0x196   :  { %2941 = vmatpush2.bf16.msra.mxu1 %v9805_v41  ;;  %2983 = vmatprep.subr.bf16.mxu0 %v9926_v42  ;;  %v10006_v41 = vcombine.high %v1008_v30, %v1012_v37  ;;  %v745_v42 = vld [vmem:[%s16158_s2 + $0x158] sm:$0xff] }
 0x197   :  { %2942 = vmatprep.subr.bf16.mxu1 %v9798_v43  ;;  %v749_v43 = vld [vmem:[%s16158_s2 + $0x178] sm:$0xff] }
 0x198   :  { %v9743_v54 = vcombine.low %v745_v42, %v749_v43 }
 0x199   :  { %2984 = vmatpush2.bf16.msra.mxu0 %v9925_v48  ;;  %v9744_v48 = vcombine.high %v745_v42, %v749_v43  ;;  %v893_v42 = vld [vmem:[%s16158_s2 + $0x5f8] sm:$0xff] }
 0x19a   :  { %2943 = vmatpush2.bf16.msra.mxu1 %v9797_v49  ;;  %2985 = vmatprep.subr.bf16.mxu0 %v9918_v50  ;;  %v9998_v49 = vcombine.high %v1000_v44, %v1004_v45  ;;  %v737_v50 = vld [vmem:[%s16158_s2 + $0x118] sm:$0xff]  ;;  %v9957_v44 = vcombine.low %v960_v26, %v964_v28 }
 0x19b   :  { %2944 = vmatprep.subr.bf16.mxu1 %v9790_v51  ;;  %v741_v51 = vld [vmem:[%s16158_s2 + $0x138] sm:$0xff] }
 0x19c   :  { %v9736_v57 = vcombine.high %v737_v50, %v741_v51  ;;  %v9735_v3 = vcombine.low %v737_v50, %v741_v51  ;;  %v881_v50 = vld [vmem:[%s16158_s2 + $0x598] sm:$0xff] }
 0x19d   :  { %2986 = vmatpush2.bf16.msra.mxu0 %v9917_v58  ;;  %v885_v51 = vld [vmem:[%s16158_s2 + $0x5b8] sm:$0xff] }
 0x19e   :  { %2945 = vmatpush2.bf16.msra.mxu1 %v9789_v60  ;;  %2987 = vmatprep.subr.bf16.mxu0 %v9910_v61  ;;  %v729_v60 = vld [vmem:[%s16158_s2 + $0xd8] sm:$0xff] }
 0x19f   :  { %2946 = vmatprep.subr.bf16.mxu1 %v9782_v62  ;;  %v733_v61 = vld [vmem:[%s16158_s2 + $0xf8] sm:$0xff]  ;;  %v984_v62 = vld [vmem:[%s16158_s2 + $0x8d0] sm:$0xff] }
 0x1a0   :  { %v9728_v5 = vcombine.high %v729_v60, %v733_v61  ;;  %v9727_v15 = vcombine.low %v729_v60, %v733_v61  ;;  %v9981_v16 = vcombine.low %v984_v62, %v988_v63  ;;  %v809_v60 = vld [vmem:[%s16158_s2 + $0x358] sm:$0xff] }
 0x1a1   :  { %2988 = vmatpush2.bf16.msra.mxu0 %v9909_v6  ;;  %v9982_v6 = vcombine.high %v984_v62, %v988_v63  ;;  %v813_v61 = vld [vmem:[%s16158_s2 + $0x378] sm:$0xff] }
 0x1a2   :  { %2947 = vmatpush2.bf16.msra.mxu1 %v9781_v8  ;;  %2989 = vmatprep.subr.bf16.mxu0 %v9902_v11  ;;  %v721_v8 = vld [vmem:[%s16158_s2 + $0x98] sm:$0xff] }
 0x1a3   :  { %2948 = vmatprep.subr.bf16.mxu1 %v9774_v13  ;;  %v725_v11 = vld [vmem:[%s16158_s2 + $0xb8] sm:$0xff]  ;;  %v976_v13 = vld [vmem:[%s16158_s2 + $0x890] sm:$0xff] }
 0x1a4   :  { %v9720_v17 = vcombine.high %v721_v8, %v725_v11  ;;  %v9719_v20 = vcombine.low %v721_v8, %v725_v11  ;;  %v9973_v21 = vcombine.low %v976_v13, %v980_v14 }
 0x1a5   :  { %2990 = vmatpush2.bf16.msra.mxu0 %v9901_v18  ;;  %v9974_v18 = vcombine.high %v976_v13, %v980_v14  ;;  %v9879_v13 = vcombine.low %v881_v50, %v885_v51  ;;  %v9808_v14 = vcombine.high %v809_v60, %v813_v61 }
 0x1a6   :  { %2949 = vmatpush2.bf16.msra.mxu1 %v9773_v34  ;;  %2991 = vmatprep.subr.bf16.mxu0 %v9894_v19  ;;  %v713_v34 = vld [vmem:[%s16158_s2 + $0x58] sm:$0xff] }
 0x1a7   :  { %2950 = vmatprep.subr.bf16.mxu1 %v9766_v9  ;;  %v717_v19 = vld [vmem:[%s16158_s2 + $0x78] sm:$0xff]  ;;  %v968_v9 = vld [vmem:[%s16158_s2 + $0x850] sm:$0xff] }
 0x1a8   :  { %v9711_v29 = vcombine.low %v713_v34, %v717_v19  ;;  %v9965_v30 = vcombine.low %v968_v9, %v972_v10 }
 0x1a9   :  { %2992 = vmatpush2.bf16.msra.mxu0 %v9893_v22  ;;  %v9712_v22 = vcombine.high %v713_v34, %v717_v19  ;;  %v805_v34 = vld [vmem:[%s16158_s2 + $0x338] sm:$0xff] }
 0x1aa   :  { %2951 = vmatpush2.bf16.msra.mxu1 %v9765_v23  ;;  %3043 = vmatprep.subr.bf16.mxu0 %v9760_v24  ;;  %v9966_v23 = vcombine.high %v968_v9, %v972_v10  ;;  %v705_v24 = vld [vmem:[%s16158_s2 + $0x18] sm:$0xff] }
 0x1ab   :  { %10021 = vmatprep.subr.msk.bf16.mxu1 %vm2649_vm0, %v10014_v25  ;;  %v709_v25 = vld [vmem:[%s16158_s2 + $0x38] sm:$0xff] }
 0x1ac   :  { %2994 = vmatmul.mubr.bf16.vlgmr.msra.gmra.mxu0 %v12661_v59  ;;  %v9704_v37 = vcombine.high %v705_v24, %v709_v25  ;;  %v9703_v43 = vcombine.low %v705_v24, %v709_v25  ;;  %v865_v9 = vld [vmem:[%s16158_s2 + $0x518] sm:$0xff] }
 0x1ad   :  { %2953 = vmatmul.mubr.bf16.vlgmr.msra.gmra.mxu1 %v12673_v2  ;;  %3044 = vmatpush1.bf16.msra.mxu0 %v9759_v38  ;;  %v9958_v38 = vcombine.high %v960_v26, %v964_v28  ;;  %v869_v10 = vld [vmem:[%s16158_s2 + $0x538] sm:$0xff] }
 0x1ae   :  { %3075 = vmatprep.mubr.bf16.mxu0 %v12669_v0  ;;  %3003 = vmatpush1.bf16.msra.mxu1 %v2663_v39  ;;  %v996_v0 = vld [vmem:[%s16158_s2 + $0x930] sm:$0xff]  ;;  %v825_v39 = vld [vmem:[%s16158_s2 + $0x3d8] sm:$0xff]  ;;  %v9864_v26 = vcombine.high %v865_v9, %v869_v10 }
 0x1af   :  { %3045 = vmatprep.subr.bf16.mxu0 %v9752_v40  ;;  %3004 = vmatprep.subr.bf16.mxu1 %v10006_v41  ;;  %v9990_v58 = vcombine.high %v992_v52, %v996_v0  ;;  %v9989_v4 = vcombine.low %v992_v52, %v996_v0  ;;  %v829_v40 = vld [vmem:[%s16158_s2 + $0x3f8] sm:$0xff] }
 0x1b0   :  { %3034 = vmatprep.mubr.bf16.mxu1 %v12124_v12  ;;  %v889_v41 = vld [vmem:[%s16158_s2 + $0x5d8] sm:$0xff]  ;;  %v9824_v45 = vcombine.high %v825_v39, %v829_v40  ;;  %v9823_v52 = vcombine.low %v825_v39, %v829_v40  ;;  %v9863_v39 = vcombine.low %v865_v9, %v869_v10 }
 0x1b1   :  { %3046 = vmatpush1.bf16.msra.mxu0 %v9751_v46  ;;  %v13271_v46 = vld [vmem:[%s16160_s4] sm:$0xff]  ;;  %v793_v28 = vld [vmem:[%s16158_s2 + $0x2d8] sm:$0xff] }
 0x1b2   :  { %3005 = vmatpush1.bf16.msra.mxu1 %v10005_v47  ;;  %3047 = vmatprep.subr.bf16.mxu0 %v9744_v48  ;;  %v9888_v47 = vcombine.high %v889_v41, %v893_v42  ;;  %v817_v48 = vld [vmem:[%s16158_s2 + $0x398] sm:$0xff]  ;;  %v1028_v0 = vrot.slane %v13271_v46, %v12629_v32 }
 0x1b3   :  { %3006 = vmatprep.subr.bf16.mxu1 %v9998_v49  ;;  %v821_v49 = vld [vmem:[%s16158_s2 + $0x3b8] sm:$0xff] }
 0x1b4   :  { %v1013_v9 = vld [vmem:[%s16158_s2 + $0x9b8] sm:$0xff] }
 0x1b5   :  { %3048 = vmatpush1.bf16.msra.mxu0 %v9743_v54  ;;  %v9887_v54 = vcombine.low %v889_v41, %v893_v42  ;;  %v785_v42 = vld [vmem:[%s16158_s2 + $0x298] sm:$0xff] }
 0x1b6   :  { %3007 = vmatpush1.bf16.msra.mxu1 %v9997_v55  ;;  %3049 = vmatprep.subr.bf16.mxu0 %v9736_v57  ;;  %v1032_v55 = vrot.slane %v13271_v46, %v12640_v35  ;;  %v9816_v57 = vcombine.high %v817_v48, %v821_v49  ;;  %v945_v10 = vld [vmem:[%s16158_s2 + $0x798] sm:$0xff] }
 0x1b7   :  { %3008 = vmatprep.subr.bf16.mxu1 %v9990_v58  ;;  %v9880_v58 = vcombine.high %v881_v50, %v885_v51  ;;  %v777_v51 = vld [vmem:[%s16158_s2 + $0x258] sm:$0xff] }
 0x1b9   :  { %3050 = vmatpush1.bf16.msra.mxu0 %v9735_v3  ;;  %v873_v3 = vld [vmem:[%s16158_s2 + $0x558] sm:$0xff] }
 0x1ba   :  { %3009 = vmatpush1.bf16.msra.mxu1 %v9989_v4  ;;  %3051 = vmatprep.subr.bf16.mxu0 %v9728_v5  ;;  %v877_v4 = vld [vmem:[%s16158_s2 + $0x578] sm:$0xff] }
 0x1bb   :  { %3010 = vmatprep.subr.bf16.mxu1 %v9982_v6  ;;  %v9815_v6 = vcombine.low %v817_v48, %v821_v49  ;;  %v9871_v24 = vcombine.low %v873_v3, %v877_v4 }
 0x1bd   :  { %3052 = vmatpush1.bf16.msra.mxu0 %v9727_v15 }
 0x1be   :  { %3011 = vmatpush1.bf16.msra.mxu1 %v9981_v16  ;;  %3053 = vmatprep.subr.bf16.mxu0 %v9720_v17  ;;  %v9872_v17 = vcombine.high %v873_v3, %v877_v4  ;;  %v837_v3 = vld [vmem:[%s16158_s2 + $0x438] sm:$0xff] }
 0x1bf   :  { %3012 = vmatprep.subr.bf16.mxu1 %v9974_v18  ;;  %v801_v18 = vld [vmem:[%s16158_s2 + $0x318] sm:$0xff] }
 0x1c0   :  { %v9800_v25 = vcombine.high %v801_v18, %v805_v34 }
 0x1c1   :  { %3054 = vmatpush1.bf16.msra.mxu0 %v9719_v20 }
 0x1c2   :  { %3013 = vmatpush1.bf16.msra.mxu1 %v9973_v21  ;;  %3055 = vmatprep.subr.bf16.mxu0 %v9712_v22  ;;  %v9807_v21 = vcombine.low %v809_v60, %v813_v61  ;;  %v769_v61 = vld [vmem:[%s16158_s2 + $0x218] sm:$0xff] }
 0x1c3   :  { %3014 = vmatprep.subr.bf16.mxu1 %v9966_v23 }
 0x1c5   :  { %3056 = vmatpush1.bf16.msra.mxu0 %v9711_v29  ;;  %v797_v29 = vld [vmem:[%s16158_s2 + $0x2f8] sm:$0xff] }
 0x1c6   :  { %3015 = vmatpush1.bf16.msra.mxu1 %v9965_v30  ;;  %3057 = vmatprep.subr.bf16.mxu0 %v9704_v37  ;;  %v857_v30 = vld [vmem:[%s16158_s2 + $0x4d8] sm:$0xff]  ;;  %v9792_v40 = vcombine.high %v793_v28, %v797_v29 }
 0x1c7   :  { %3016 = vmatprep.subr.bf16.mxu1 %v9958_v38  ;;  %v861_v37 = vld [vmem:[%s16158_s2 + $0x4f8] sm:$0xff]  ;;  %v9799_v38 = vcombine.low %v801_v18, %v805_v34 }
 0x1c8   :  { %v9856_v41 = vcombine.high %v857_v30, %v861_v37  ;;  %v9855_v48 = vcombine.low %v857_v30, %v861_v37  ;;  %v941_v30 = vld [vmem:[%s16158_s2 + $0x778] sm:$0xff] }
 0x1c9   :  { %3058 = vmatpush1.bf16.msra.mxu0 %v9703_v43  ;;  %v789_v43 = vld [vmem:[%s16158_s2 + $0x2b8] sm:$0xff] }
 0x1ca   :  { %3017 = vmatpush1.bf16.msra.mxu1 %v9957_v44  ;;  %3059 = vmatprep.subr.bf16.mxu0 %v9824_v45  ;;  %v849_v44 = vld [vmem:[%s16158_s2 + $0x498] sm:$0xff]  ;;  %v9784_v49 = vcombine.high %v785_v42, %v789_v43 }
 0x1cb   :  { %3084 = vmatprep.subr.bf16.mxu1 %v9888_v47  ;;  %v853_v45 = vld [vmem:[%s16158_s2 + $0x4b8] sm:$0xff]  ;;  %v9791_v47 = vcombine.low %v793_v28, %v797_v29 }
 0x1cc   :  { %v2708_v62 = vpop.f32.mrf.mxu1  ;;  %v2749_v63 = vpop.f32.mrf.mxu0  ;;  %v9848_v50 = vcombine.high %v849_v44, %v853_v45  ;;  %v1005_v28 = vld [vmem:[%s16158_s2 + $0x978] sm:$0xff] }
 0x1cd   :  { %v2709_v5 = vadd.f32 %v2708_v62, %v1028_v0  ;;  %10022 = vmatmul.mubr.msk.bf16.vlgmr.msra.gmra.mxu1 %vm2645_vm1, %v12786_v27  ;;  %3060 = vmatpush2.bf16.msra.mxu0 %v9823_v52  ;;  %v781_v52 = vld [vmem:[%s16158_s2 + $0x278] sm:$0xff] }
 0x1ce   :  { %3085 = vmatpush1.bf16.msra.mxu1 %v9887_v54  ;;  %3116 = vmatprep.mubr.bf16.mxu1 %v12671_v1  ;;  %v2710_v8 = vpop.f32.mrf.mxu1  ;;  %v2751_v11 = vpop.f32.mrf.mxu0  ;;  %v841_v0 = vld [vmem:[%s16158_s2 + $0x458] sm:$0xff]  ;;  %v9775_v4 = vcombine.low %v777_v51, %v781_v52 }
 0x1cf   :  { %v13304_v15 = vadd.f32 %v2749_v63, %v2709_v5  ;;  %v2711_v16 = vadd.f32 %v2710_v8, %v1032_v55  ;;  %3061 = vmatprep.subr.bf16.mxu0 %v9816_v57  ;;  %3086 = vmatprep.subr.bf16.mxu1 %v9880_v58  ;;  %v845_v54 = vld [vmem:[%s16158_s2 + $0x478] sm:$0xff]  ;;  %v9783_v55 = vcombine.low %v785_v42, %v789_v43 }
 0x1d0   :  { %v2712_v19 = vpop.f32.mrf.mxu1  ;;  %v2753_v1 = vpop.f32.mrf.mxu0  ;;  %v9847_v57 = vcombine.low %v849_v44, %v853_v45  ;;  %v9776_v58 = vcombine.high %v777_v51, %v781_v52  ;;  %v9840_v60 = vcombine.high %v841_v0, %v845_v54  ;;  %v773_v62 = vld [vmem:[%s16158_s2 + $0x238] sm:$0xff]  ;;  %v9839_v5 = vcombine.low %v841_v0, %v845_v54 }
 0x1d1   :  { %v13318_v20 = vadd.f32 %v2751_v11, %v2711_v16  ;;  %3062 = vmatpush2.bf16.msra.mxu0 %v9815_v6  ;;  %v833_v63 = vld [vmem:[%s16158_s2 + $0x418] sm:$0xff]  ;;  %v9768_v6 = vcombine.high %v769_v61, %v773_v62  ;;  %v9767_v16 = vcombine.low %v769_v61, %v773_v62 }
 0x1d2   :  { %3087 = vmatpush1.bf16.msra.mxu1 %v9879_v13  ;;  %v2713_v22 = vpop.f32.mrf.mxu1  ;;  %v2754_v23 = vpop.f32.mrf.mxu0  ;;  %3063 = vmatprep.subr.bf16.mxu0 %v9808_v14  ;;  %v9832_v8 = vcombine.high %v833_v63, %v837_v3  ;;  %v1017_v11 = vld [vmem:[%s16158_s2 + $0x9d8] sm:$0x33] }
 0x1d3   :  { %3088 = vmatprep.subr.bf16.mxu1 %v9872_v17  ;;  %v953_v13 = vld [vmem:[%s16158_s2 + $0x7d8] sm:$0xff]  ;;  %v9831_v17 = vcombine.low %v833_v63, %v837_v3  ;;  %v10016_v18 = vcombine.high %v1017_v11, %v1017_v11  ;;  %v10015_v34 = vcombine.low %v1017_v11, %v1017_v11 }
 0x1d4   :  { %v957_v14 = vld [vmem:[%s16158_s2 + $0x7f8] sm:$0xff] }
 0x1d5   :  { %3064 = vmatpush2.bf16.msra.mxu0 %v9807_v21  ;;  %v9952_v19 = vcombine.high %v953_v13, %v957_v14  ;;  %v1009_v1 = vld [vmem:[%s16158_s2 + $0x998] sm:$0xff]  ;;  %v9951_v22 = vcombine.low %v953_v13, %v957_v14  ;;  %v2669_v23 = vsel %vm2649_vm0, %v10015_v34, 0 }
 0x1d6   :  { %3089 = vmatpush1.bf16.msra.mxu1 %v9871_v24  ;;  %3065 = vmatprep.subr.bf16.mxu0 %v9800_v25  ;;  %v949_v21 = vld [vmem:[%s16158_s2 + $0x7b8] sm:$0xff]  ;;  %v10008_v24 = vcombine.high %v1009_v1, %v1013_v9 }
 0x1d7   :  { %3090 = vmatprep.subr.bf16.mxu1 %v9864_v26  ;;  %v9944_v25 = vcombine.high %v945_v10, %v949_v21  ;;  %v1001_v26 = vld [vmem:[%s16158_s2 + $0x958] sm:$0xff] }
 0x1d8   :  { %v937_v29 = vld [vmem:[%s16158_s2 + $0x758] sm:$0xff] }
 0x1d9   :  { %3066 = vmatpush2.bf16.msra.mxu0 %v9799_v38  ;;  %v10007_v38 = vcombine.low %v1009_v1, %v1013_v9  ;;  %v9936_v42 = vcombine.high %v937_v29, %v941_v30  ;;  %v993_v43 = vld [vmem:[%s16158_s2 + $0x918] sm:$0xff]  ;;  %v9935_v52 = vcombine.low %v937_v29, %v941_v30 }
 0x1da   :  { %3091 = vmatpush1.bf16.msra.mxu1 %v9863_v39  ;;  %3067 = vmatprep.subr.bf16.mxu0 %v9792_v40  ;;  %v9943_v40 = vcombine.low %v945_v10, %v949_v21  ;;  %v997_v44 = vld [vmem:[%s16158_s2 + $0x938] sm:$0xff] }
 0x1db   :  { %3092 = vmatprep.subr.bf16.mxu1 %v9856_v41  ;;  %v10000_v41 = vcombine.high %v1001_v26, %v1005_v28  ;;  %v9992_v0 = vcombine.high %v993_v43, %v997_v44  ;;  %v925_v61 = vld [vmem:[%s16158_s2 + $0x6f8] sm:$0xff]  ;;  %v9991_v62 = vcombine.low %v993_v43, %v997_v44  ;;  %v11871_v44 = vld [vmem:[%s16157_s1 + $0x374] ss:$20 sps:$4 sm:$0xff]  }
 0x1dc   :  { %v917_v11 = vld [vmem:[%s16158_s2 + $0x6b8] sm:$0xff] }
 0x1dd   :  { %3068 = vmatpush2.bf16.msra.mxu0 %v9791_v47  ;;  %v933_v47 = vld [vmem:[%s16158_s2 + $0x738] sm:$0xff] }
 0x1de   :  { %3093 = vmatpush1.bf16.msra.mxu1 %v9855_v48  ;;  %3069 = vmatprep.subr.bf16.mxu0 %v9784_v49  ;;  %v9999_v49 = vcombine.low %v1001_v26, %v1005_v28  ;;  %v973_v34 = vld [vmem:[%s16158_s2 + $0x878] sm:$0xff] }
 0x1df   :  { %3094 = vmatprep.subr.bf16.mxu1 %v9848_v50  ;;  %v909_v1 = vld [vmem:[%s16158_s2 + $0x678] sm:$0xff] }
 0x1e0   :  { %v901_v26 = vld [vmem:[%s16158_s2 + $0x638] sm:$0xff] }
 0x1e1   :  { %3070 = vmatpush2.bf16.msra.mxu0 %v9783_v55  ;;  %v985_v55 = vld [vmem:[%s16158_s2 + $0x8d8] sm:$0xff] }
 0x1e2   :  { %3095 = vmatpush1.bf16.msra.mxu1 %v9847_v57  ;;  %3071 = vmatprep.subr.bf16.mxu0 %v9776_v58  ;;  %v989_v57 = vld [vmem:[%s16158_s2 + $0x8f8] sm:$0xff] }
 0x1e3   :  { %3096 = vmatprep.subr.bf16.mxu1 %v9840_v60  ;;  %v921_v60 = vld [vmem:[%s16158_s2 + $0x6d8] sm:$0xff]  ;;  %v9984_v3 = vcombine.high %v985_v55, %v989_v57  ;;  %v9983_v13 = vcombine.low %v985_v55, %v989_v57  ;;  %v11881_v55 = vld [vmem:[%s16157_s1 + $0x320] ss:$20 sps:$4 sm:$0xff]  }
 0x1e4   :  { %v9919_v14 = vcombine.low %v921_v60, %v925_v61  ;;  %v11868_v43 = vld [vmem:[%s16157_s1 + $0x37c] ss:$20 sps:$4 sm:$0xff]   ;;  %v11886_v57 = vld [vmem:[%s16157_s1 + $0x304] ss:$20 sps:$4 sm:$0xff]  }
 0x1e5   :  { %3072 = vmatpush2.bf16.msra.mxu0 %v9775_v4  ;;  %v9920_v4 = vcombine.high %v921_v60, %v925_v61  ;;  %v11889_v60 = vld [vmem:[%s16157_s1 + $0x2fc] ss:$20 sps:$4 sm:$0xff]   ;;  %v11884_v61 = vld [vmem:[%s16157_s1 + $0x300] ss:$20 sps:$4 sm:$0xff]  }
 0x1e6   :  { %3097 = vmatpush1.bf16.msra.mxu1 %v9839_v5  ;;  %3073 = vmatprep.subr.bf16.mxu0 %v9768_v6  ;;  %v977_v5 = vld [vmem:[%s16158_s2 + $0x898] sm:$0xff] }
 0x1e7   :  { %3098 = vmatprep.subr.bf16.mxu1 %v9832_v8  ;;  %v981_v6 = vld [vmem:[%s16158_s2 + $0x8b8] sm:$0xff] }
 0x1e8   :  { %v913_v8 = vld [vmem:[%s16158_s2 + $0x698] sm:$0xff]  ;;  %v9975_v9 = vcombine.low %v977_v5, %v981_v6 }
 0x1e9   :  { %3074 = vmatpush2.bf16.msra.mxu0 %v9767_v16  ;;  %v9976_v16 = vcombine.high %v977_v5, %v981_v6  ;;  %v9911_v10 = vcombine.low %v913_v8, %v917_v11  ;;  %v11893_v5 = vld [vmem:[%s16157_s1 + $0x2d0] ss:$20 sps:$4 sm:$0xff]   ;;  %v11898_v6 = vld [vmem:[%s16157_s1 + $0x2b4] ss:$20 sps:$4 sm:$0xff]  }
 0x1ea   :  { %3099 = vmatpush1.bf16.msra.mxu1 %v9831_v17  ;;  %10023 = vmatprep.subr.msk.bf16.mxu0 %vm2649_vm0, %v10016_v18  ;;  %v9912_v17 = vcombine.high %v913_v8, %v917_v11  ;;  %v969_v18 = vld [vmem:[%s16158_s2 + $0x858] sm:$0xff]  ;;  %v11901_v8 = vld [vmem:[%s16157_s1 + $0x2ac] ss:$20 sps:$4 sm:$0xff]   ;;  %v11896_v11 = vld [vmem:[%s16157_s1 + $0x2b0] ss:$20 sps:$4 sm:$0xff]  }
 0x1eb   :  { %3100 = vmatprep.subr.bf16.mxu1 %v9952_v19  ;;  %v905_v19 = vld [vmem:[%s16158_s2 + $0x658] sm:$0xff]  ;;  %v9968_v21 = vcombine.high %v969_v18, %v973_v34  ;;  %v9967_v28 = vcombine.low %v969_v18, %v973_v34  ;;  %v11905_v18 = vld [vmem:[%s16157_s1 + $0x280] ss:$20 sps:$4 sm:$0xff]  }
 0x1ec   :  { %3076 = vmatmul.mubr.bf16.vlgmr.msra.gmra.mxu0 %v12673_v2  ;;  %v9903_v29 = vcombine.low %v905_v19, %v909_v1  ;;  %v11910_v34 = vld [vmem:[%s16157_s1 + $0x4e4] ss:$20 sps:$4 sm:$0xff]  }
 0x1ed   :  { %3126 = vmatpush1.bf16.msra.mxu0 %v2669_v23  ;;  %v2790_v37 = vpop.f32.mrf.mxu1  ;;  %3157 = vmatprep.mubr.bf16.mxu0 %v12124_v12  ;;  %v961_v23 = vld [vmem:[%s16158_s2 + $0x818] sm:$0xff] }
 0x1ee   :  { %v2791_v39 = vadd.f32 %v2790_v37, %v13304_v15  ;;  %3101 = vmatpush2.bf16.msra.mxu1 %v9951_v22  ;;  %3127 = vmatprep.subr.bf16.mxu0 %v10008_v24  ;;  %v929_v15 = vld [vmem:[%s16158_s2 + $0x718] sm:$0xff]  ;;  %v9904_v22 = vcombine.high %v905_v19, %v909_v1  ;;  %v1036_v1 = vrot.slane %v13271_v46, %v12632_v33 }
 0x1ef   :  { %v2792_v2 = vpop.f32.mrf.mxu1  ;;  %3102 = vmatprep.subr.bf16.mxu1 %v9944_v25  ;;  %v9927_v63 = vcombine.low %v929_v15, %v933_v47  ;;  %v965_v24 = vld [vmem:[%s16158_s2 + $0x838] sm:$0xff] }
 0x1f0   :  { %v2793_v45 = vadd.f32 %v2792_v2, %v13318_v20  ;;  %v3166_v50 = vmax.f32 %v2791_v39, 0.0  ;;  %v9928_v20 = vcombine.high %v929_v15, %v933_v47  ;;  %v897_v25 = vld [vmem:[%s16158_s2 + $0x618] sm:$0xff]  ;;  %v9960_v30 = vcombine.high %v961_v23, %v965_v24  ;;  %v11860_v2 = vld [vmem:[%s16157_s1 + $0x3a0] ss:$20 sps:$4 sm:$0xff]  }
 0x1f1   :  { %3128 = vmatpush1.bf16.msra.mxu0 %v10007_v38  ;;  %v2794_v48 = vpop.f32.mrf.mxu1  ;;  %v9896_v37 = vcombine.high %v897_v25, %v901_v26  ;;  %v9959_v38 = vcombine.low %v961_v23, %v965_v24  ;;  %v9895_v39 = vcombine.low %v897_v25, %v901_v26  ;;  %v11866_v15 = vld [vmem:[%s16157_s1 + $0x378] ss:$20 sps:$4 sm:$0xff]   ;;  %v11913_v19 = vld [vmem:[%s16157_s1 + $0x4dc] ss:$20 sps:$4 sm:$0xff]   ;;  %v11919_v23 = vld [vmem:[%s16157_s1 + $0x4b4] ss:$20 sps:$4 sm:$0xff]  }
 0x1f2   :  { %v3167_v51 = vmax.f32 %v2793_v45, 0.0  ;;  %3103 = vmatpush2.bf16.msra.mxu1 %v9943_v40  ;;  %3129 = vmatprep.subr.bf16.mxu0 %v10000_v41  ;;  %v11862_v40 = vld [vmem:[%s16157_s1 + $0x3a4] ss:$20 sps:$4 sm:$0xff]   ;;  %v11865_v41 = vld [vmem:[%s16157_s1 + $0x39c] ss:$20 sps:$4 sm:$0xff]  }
 0x1f3   :  { %v2795_v54 = vpop.f32.mrf.mxu1  ;;  %3104 = vmatprep.subr.bf16.mxu1 %v9936_v42  ;;  %v11863_v42 = vld [vmem:[%s16157_s1 + $0x398] ss:$20 sps:$4 sm:$0xff]   ;;  %v11869_v48 = vld [vmem:[%s16157_s1 + $0x370] ss:$20 sps:$4 sm:$0xff]   ;;  %v12125_v24 = vmov 1983009808  }
 0x1f4   :  { %v13425_v58 = vcombine.low %v3166_v50, %v3167_v51  ;;  %v11872_v50 = vld [vmem:[%s16157_s1 + $0x350] ss:$20 sps:$4 sm:$0xff]   ;;  %v3185_v25 = vunpack.c.l.s4 %v12125_v24  ;;  %v11960_v24 = vld [vmem:[%s16157_s1 + $0x498] ss:$20 sps:$4 sm:$0xff]  }
 0x1f5   :  { %3130 = vmatpush1.bf16.msra.mxu0 %v9999_v49  ;;  %v11874_v49 = vld [vmem:[%s16157_s1 + $0x354] ss:$20 sps:$4 sm:$0xff]   ;;  %v11883_v54 = vld [vmem:[%s16157_s1 + $0x324] ss:$20 sps:$4 sm:$0xff]  }
 0x1f6   :  { %3105 = vmatpush2.bf16.msra.mxu1 %v9935_v52  ;;  %3131 = vmatprep.subr.bf16.mxu0 %v9992_v0  ;;  %v11875_v52 = vld [vmem:[%s16157_s1 + $0x348] ss:$20 sps:$4 sm:$0xff]   ;;  %v11880_v0 = vld [vmem:[%s16157_s1 + $0x32c] ss:$20 sps:$4 sm:$0xff]  }
 0x1f7   :  { %3106 = vmatprep.subr.bf16.mxu1 %v9928_v20  ;;  %v11878_v20 = vld [vmem:[%s16157_s1 + $0x328] ss:$20 sps:$4 sm:$0xff]  }
 0x1f9   :  { %3132 = vmatpush1.bf16.msra.mxu0 %v9991_v62  ;;  %v11887_v62 = vld [vmem:[%s16157_s1 + $0x2f8] ss:$20 sps:$4 sm:$0xff]  }
 0x1fa   :  { %3107 = vmatpush2.bf16.msra.mxu1 %v9927_v63  ;;  %3133 = vmatprep.subr.bf16.mxu0 %v9984_v3  ;;  %v11892_v63 = vld [vmem:[%s16157_s1 + $0x2dc] ss:$20 sps:$4 sm:$0xff]   ;;  %v11895_v3 = vld [vmem:[%s16157_s1 + $0x2d4] ss:$20 sps:$4 sm:$0xff]  }
 0x1fb   :  { %3108 = vmatprep.subr.bf16.mxu1 %v9920_v4  ;;  %v11890_v4 = vld [vmem:[%s16157_s1 + $0x2d8] ss:$20 sps:$4 sm:$0xff]  }
 0x1fd   :  { %3134 = vmatpush1.bf16.msra.mxu0 %v9983_v13  ;;  %v11899_v13 = vld [vmem:[%s16157_s1 + $0x2a8] ss:$20 sps:$4 sm:$0xff]  }
 0x1fe   :  { %3109 = vmatpush2.bf16.msra.mxu1 %v9919_v14  ;;  %3135 = vmatprep.subr.bf16.mxu0 %v9976_v16  ;;  %v11904_v14 = vld [vmem:[%s16157_s1 + $0x28c] ss:$20 sps:$4 sm:$0xff]   ;;  %v11907_v16 = vld [vmem:[%s16157_s1 + $0x284] ss:$20 sps:$4 sm:$0xff]  }
 0x1ff   :  { %3110 = vmatprep.subr.bf16.mxu1 %v9912_v17  ;;  %v11902_v17 = vld [vmem:[%s16157_s1 + $0x288] ss:$20 sps:$4 sm:$0xff]  }
 0x201   :  { %3136 = vmatpush1.bf16.msra.mxu0 %v9975_v9  ;;  %v11908_v9 = vld [vmem:[%s16157_s1 + $0x4e0] ss:$20 sps:$4 sm:$0xff]  }
 0x202   :  { %3111 = vmatpush2.bf16.msra.mxu1 %v9911_v10  ;;  %3137 = vmatprep.subr.bf16.mxu0 %v9968_v21  ;;  %v1040_v10 = vrot.slane %v13271_v46, %v12643_v36  ;;  %v11911_v21 = vld [vmem:[%s16157_s1 + $0x4d8] ss:$20 sps:$4 sm:$0xff]  }
 0x203   :  { %3112 = vmatprep.subr.bf16.mxu1 %v9904_v22  ;;  %v11916_v22 = vld [vmem:[%s16157_s1 + $0x4bc] ss:$20 sps:$4 sm:$0xff]  }
 0x205   :  { %3138 = vmatpush1.bf16.msra.mxu0 %v9967_v28 }
 0x206   :  { %3113 = vmatpush2.bf16.msra.mxu1 %v9903_v29  ;;  %3139 = vmatprep.subr.bf16.mxu0 %v9960_v30  ;;  %v11914_v30 = vld [vmem:[%s16157_s1 + $0x4b8] ss:$20 sps:$4 sm:$0xff]  }
 0x207   :  { %3114 = vmatprep.subr.bf16.mxu1 %v9896_v37 }
 0x209   :  { %3140 = vmatpush1.bf16.msra.mxu0 %v9959_v38 }
 0x20a   :  { %3115 = vmatpush2.bf16.msra.mxu1 %v9895_v39  ;;  %3808 = vmatprep.subr.bf16.mxu0 %v11862_v40  ;;  %v11917_v40 = vld [vmem:[%s16157_s1 + $0x4b0] ss:$20 sps:$4 sm:$0xff]  }
 0x20b   :  { %3767 = vmatprep.subr.bf16.mxu1 %v11865_v41  ;;  %v11922_v41 = vld [vmem:[%s16157_s1 + $0x494] ss:$20 sps:$4 sm:$0xff]  }
 0x20c   :  { %v13487_v45 = vpop.f32.mrf.mxu0  ;;  %10024 = vmatmul.mubr.msk.bf16.vlgmr.msra.gmra.mxu0 %vm2645_vm1, %v12786_v27 }
 0x20d   :  { %3117 = vmatmul.mubr.bf16.vlgmr.msra.gmra.mxu1 %v12661_v59  ;;  %3809 = vmatpush1.bf16.msra.mxu0 %v11860_v2  ;;  %v11877_v59 = vld [vmem:[%s16157_s1 + $0x34c] ss:$20 sps:$4 sm:$0xff]   ;;  %v2832_v26 = vadd.f32 %v13487_v45, %v1036_v1  ;;  %v11950_v1 = vld [vmem:[%s16157_s1 + $0x3c8] ss:$20 sps:$4 sm:$0xff]  }
 0x20e   :  { %v13495_v47 = vpop.f32.mrf.mxu0  ;;  %3768 = vmatpush1.bf16.msra.mxu1 %v11863_v42  ;;  %3810 = vmatprep.subr.bf16.mxu0 %v11868_v43  ;;  %v11925_v42 = vld [vmem:[%s16157_s1 + $0x48c] ss:$20 sps:$4 sm:$0xff]   ;;  %v3186_v43 = vunpack.c.0.s8 %v3185_v25 }
 0x20f   :  { %3769 = vmatprep.subr.bf16.mxu1 %v11871_v44  ;;  %3840 = vmatprep.mubr.bf16.mxu0 %v12315_v53  ;;  %v2834_v37 = vadd.f32 %v13495_v47, %v1040_v10  ;;  %v11956_v10 = vld [vmem:[%s16157_s1 + $0x4e8] ss:$20 sps:$4 sm:$0xff]   ;;  %v11961_v25 = vld [vmem:[%s16157_s1 + $0x358] ss:$20 sps:$4 sm:$0xff]  }
 0x210   :  { %v2835_v27 = vpop.f32.mrf.mxu0  ;;  %3799 = vmatprep.mubr.bf16.mxu1 %v12315_v53 }
 0x211   :  { %3811 = vmatpush1.bf16.msra.mxu0 %v11866_v15  ;;  %v11923_v27 = vld [vmem:[%s16157_s1 + $0x488] ss:$20 sps:$4 sm:$0xff]  }
 0x212   :  { %v2836_v51 = vpop.f32.mrf.mxu0  ;;  %3770 = vmatpush1.bf16.msra.mxu1 %v11869_v48  ;;  %3812 = vmatprep.subr.bf16.mxu0 %v11874_v49  ;;  %v11920_v48 = vld [vmem:[%s16157_s1 + $0x490] ss:$20 sps:$4 sm:$0xff]  }
 0x213   :  { %3771 = vmatprep.subr.bf16.mxu1 %v11877_v59 }
 0x215   :  { %3813 = vmatpush1.bf16.msra.mxu0 %v11872_v50  ;;  %v11928_v50 = vld [vmem:[%s16157_s1 + $0x46c] ss:$20 sps:$4 sm:$0xff]  }
 0x216   :  { %3772 = vmatpush1.bf16.msra.mxu1 %v11875_v52  ;;  %3814 = vmatprep.subr.bf16.mxu0 %v11880_v0  ;;  %v11931_v52 = vld [vmem:[%s16157_s1 + $0x464] ss:$20 sps:$4 sm:$0xff]   ;;  %v13623_v0 = vsub.s32 %v3186_v43, %v12626_v31  ;;  %v11966_v43 = vld [vmem:[%s16157_s1 + $0x420] ss:$20 sps:$4 sm:$0xff]  }
 0x217   :  { %3773 = vmatprep.subr.bf16.mxu1 %v11883_v54 }
 0x219   :  { %3815 = vmatpush1.bf16.msra.mxu0 %v11878_v20 }
 0x21a   :  { %3774 = vmatpush1.bf16.msra.mxu1 %v11881_v55  ;;  %3816 = vmatprep.subr.bf16.mxu0 %v11886_v57  ;;  %v11926_v55 = vld [vmem:[%s16157_s1 + $0x468] ss:$20 sps:$4 sm:$0xff]  }
 0x21b   :  { %3775 = vmatprep.subr.bf16.mxu1 %v11889_v60  ;;  %v11929_v60 = vld [vmem:[%s16157_s1 + $0x460] ss:$20 sps:$4 sm:$0xff]  }
 0x21d   :  { %3817 = vmatpush1.bf16.msra.mxu0 %v11884_v61  ;;  %v11934_v61 = vld [vmem:[%s16157_s1 + $0x444] ss:$20 sps:$4 sm:$0xff]  }
 0x21e   :  { %3776 = vmatpush1.bf16.msra.mxu1 %v11887_v62  ;;  %3818 = vmatprep.subr.bf16.mxu0 %v11892_v63  ;;  %v11937_v62 = vld [vmem:[%s16157_s1 + $0x43c] ss:$20 sps:$4 sm:$0xff]   ;;  %v3190_v63 = vrot.slane %v13425_v58, %v13623_v0  ;;  %v11943_v58 = vld [vmem:[%s16157_s1 + $0x414] ss:$20 sps:$4 sm:$0xff]  }
 0x21f   :  { %3777 = vmatprep.subr.bf16.mxu1 %v11895_v3 }
 0x221   :  { %3819 = vmatpush1.bf16.msra.mxu0 %v11890_v4  ;;  %v11932_v4 = vld [vmem:[%s16157_s1 + $0x440] ss:$20 sps:$4 sm:$0xff]  }
 0x222   :  { %3778 = vmatpush1.bf16.msra.mxu1 %v11893_v5  ;;  %3820 = vmatprep.subr.bf16.mxu0 %v11898_v6  ;;  %v11935_v6 = vld [vmem:[%s16157_s1 + $0x438] ss:$20 sps:$4 sm:$0xff]  }
 0x223   :  { %3779 = vmatprep.subr.bf16.mxu1 %v11901_v8  ;;  %v11940_v8 = vld [vmem:[%s16157_s1 + $0x41c] ss:$20 sps:$4 sm:$0xff]  }
 0x225   :  { %3821 = vmatpush1.bf16.msra.mxu0 %v11896_v11  ;;  %v11938_v11 = vld [vmem:[%s16157_s1 + $0x418] ss:$20 sps:$4 sm:$0xff]  }
 0x226   :  { %3780 = vmatpush1.bf16.msra.mxu1 %v11899_v13  ;;  %3822 = vmatprep.subr.bf16.mxu0 %v11904_v14  ;;  %v11941_v13 = vld [vmem:[%s16157_s1 + $0x410] ss:$20 sps:$4 sm:$0xff]   ;;  %v11946_v14 = vld [vmem:[%s16157_s1 + $0x3f4] ss:$20 sps:$4 sm:$0xff]  }
 0x227   :  { %3781 = vmatprep.subr.bf16.mxu1 %v11907_v16  ;;  %v11949_v16 = vld [vmem:[%s16157_s1 + $0x3ec] ss:$20 sps:$4 sm:$0xff]  }
 0x229   :  { %3823 = vmatpush1.bf16.msra.mxu0 %v11902_v17  ;;  %v11944_v17 = vld [vmem:[%s16157_s1 + $0x3f0] ss:$20 sps:$4 sm:$0xff]  }
 0x22a   :  { %3782 = vmatpush1.bf16.msra.mxu1 %v11905_v18  ;;  %3824 = vmatprep.subr.bf16.mxu0 %v11910_v34  ;;  %v11947_v18 = vld [vmem:[%s16157_s1 + $0x3e8] ss:$20 sps:$4 sm:$0xff]   ;;  %v11952_v34 = vld [vmem:[%s16157_s1 + $0x3cc] ss:$20 sps:$4 sm:$0xff]  }
 0x22b   :  { %3783 = vmatprep.subr.bf16.mxu1 %v11913_v19  ;;  %v11955_v19 = vld [vmem:[%s16157_s1 + $0x3c4] ss:$20 sps:$4 sm:$0xff]  }
 0x22c   :  { %v2913_v28 = vpop.f32.mrf.mxu0 }
 0x22d   :  { %v2872_v29 = vpop.f32.mrf.mxu1  ;;  %3825 = vmatpush2.bf16.msra.mxu0 %v11908_v9  ;;  %v11953_v9 = vld [vmem:[%s16157_s1 + $0x3c0] ss:$20 sps:$4 sm:$0xff]  }
 0x22e   :  { %v2873_v38 = vadd.f32 %v2872_v29, %v2832_v26  ;;  %v2915_v39 = vpop.f32.mrf.mxu0  ;;  %3784 = vmatpush2.bf16.msra.mxu1 %v11911_v21  ;;  %3826 = vmatprep.subr.bf16.mxu0 %v11916_v22  ;;  %v11957_v21 = vld [vmem:[%s16157_s1 + $0x3a8] ss:$20 sps:$4 sm:$0xff]   ;;  %v11958_v22 = vld [vmem:[%s16157_s1 + $0x4c0] ss:$20 sps:$4 sm:$0xff]   ;;  %v11962_v26 = vld [vmem:[%s16157_s1 + $0x470] ss:$20 sps:$4 sm:$0xff]  }
 0x22f   :  { %v2874_v2 = vpop.f32.mrf.mxu1  ;;  %3785 = vmatprep.subr.bf16.mxu1 %v11919_v23  ;;  %v11959_v23 = vld [vmem:[%s16157_s1 + $0x380] ss:$20 sps:$4 sm:$0xff]  }
 0x230   :  { %v2914_v44 = vadd.f32 %v2913_v28, %v2873_v38  ;;  %v2875_v45 = vadd.f32 %v2874_v2, %v2834_v37  ;;  %v2917_v15 = vpop.f32.mrf.mxu0  ;;  %v10258_v28 = vld [vmem:[%s16158_s2 + $0xba0] sm:$0xff]  ;;  %v11964_v38 = vld [vmem:[%s16157_s1 + $0x448] ss:$20 sps:$4 sm:$0xff]  }
 0x231   :  { %v2876_v47 = vpop.f32.mrf.mxu1  ;;  %3827 = vmatpush2.bf16.msra.mxu0 %v11914_v30  ;;  %v10262_v29 = vld [vmem:[%s16158_s2 + $0xbc0] sm:$0xff]  ;;  %v11965_v2 = vld [vmem:[%s16157_s1 + $0x308] ss:$20 sps:$4 sm:$0xff]  }
 0x232   :  { %v2916_v49 = vadd.f32 %v2915_v39, %v2875_v45  ;;  %v2918_v59 = vpop.f32.mrf.mxu0  ;;  %3786 = vmatpush2.bf16.msra.mxu1 %v11917_v40  ;;  %3828 = vmatprep.subr.bf16.mxu0 %v11922_v41  ;;  %v3168_v54 = vmax.f32 %v2914_v44, 0.0  ;;  %v11963_v30 = vld [vmem:[%s16157_s1 + $0x330] ss:$20 sps:$4 sm:$0xff]   ;;  %v10576_v37 = vcombine.high %v10258_v28, %v10262_v29  ;;  %v10575_v39 = vcombine.low %v10258_v28, %v10262_v29 }
 0x233   :  { %v2877_v51 = vpop.f32.mrf.mxu1  ;;  %3787 = vmatprep.subr.bf16.mxu1 %v11925_v42  ;;  %v10250_v40 = vld [vmem:[%s16158_s2 + $0xb60] sm:$0xff] }
 0x234   :  { %v3169_v20 = vmax.f32 %v2916_v49, 0.0  ;;  %v10254_v41 = vld [vmem:[%s16158_s2 + $0xb80] sm:$0xff] }
 0x235   :  { %3829 = vmatpush2.bf16.msra.mxu0 %v11920_v48  ;;  %v10568_v42 = vcombine.high %v10250_v40, %v10254_v41  ;;  %v10567_v44 = vcombine.low %v10250_v40, %v10254_v41  ;;  %v10242_v45 = vld [vmem:[%s16158_s2 + $0xb20] sm:$0xff] }
 0x236   :  { %v3183_v57 = vcombine.low %v3168_v54, %v3169_v20  ;;  %3788 = vmatpush2.bf16.msra.mxu1 %v11923_v27  ;;  %3830 = vmatprep.subr.bf16.mxu0 %v11928_v50  ;;  %v10246_v15 = vld [vmem:[%s16158_s2 + $0xb40] sm:$0xff]  ;;  %v11968_v50 = vld [vmem:[%s16157_s1 + $0x3f8] ss:$20 sps:$4 sm:$0xff]  }
 0x237   :  { %3789 = vmatprep.subr.bf16.mxu1 %v11931_v52  ;;  %v10559_v47 = vcombine.low %v10242_v45, %v10246_v15  ;;  %v10560_v48 = vcombine.high %v10242_v45, %v10246_v15  ;;  %v10234_v49 = vld [vmem:[%s16158_s2 + $0xae0] sm:$0xff] }
 0x238   :  { %v3197_v3 = vrot.slane %v3183_v57, %v13623_v0  ;;  %v11967_v59 = vld [vmem:[%s16157_s1 + $0x2e0] ss:$20 sps:$4 sm:$0xff]  }
 0x239   :  { %3831 = vmatpush2.bf16.msra.mxu0 %v11926_v55  ;;  %v10238_v27 = vld [vmem:[%s16158_s2 + $0xb00] sm:$0xff]  ;;  %v11969_v55 = vld [vmem:[%s16157_s1 + $0x2b8] ss:$20 sps:$4 sm:$0xff]  }
 0x23a   :  { %v3198_v5 = vcombine.low %v3190_v63, %v3197_v3  ;;  %3790 = vmatpush2.bf16.msra.mxu1 %v11929_v60  ;;  %3832 = vmatprep.subr.bf16.mxu0 %v11934_v61  ;;  %v10552_v51 = vcombine.high %v10234_v49, %v10238_v27  ;;  %v10226_v52 = vld [vmem:[%s16158_s2 + $0xaa0] sm:$0xff]  ;;  %v10551_v20 = vcombine.low %v10234_v49, %v10238_v27 }
 0x23b   :  { %3791 = vmatprep.subr.bf16.mxu1 %v11937_v62  ;;  %v10230_v54 = vld [vmem:[%s16158_s2 + $0xac0] sm:$0xff] }
 0x23c   :  { %3218 = vst [vmem:[#allocation2] sm:$0xff] %v3198_v5  ;;  %v10544_v57 = vcombine.high %v10226_v52, %v10230_v54  ;;  %v11970_v60 = vld [vmem:[%s16157_s1 + $0x3d0] ss:$20 sps:$4 sm:$0xff]  }
 0x23d   :  { %3833 = vmatpush2.bf16.msra.mxu0 %v11932_v4  ;;  %v10218_v61 = vld [vmem:[%s16158_s2 + $0xa60] sm:$0xff]  ;;  %v10543_v4 = vcombine.low %v10226_v52, %v10230_v54 }
 0x23e   :  { %3792 = vmatpush2.bf16.msra.mxu1 %v11935_v6  ;;  %3834 = vmatprep.subr.bf16.mxu0 %v11940_v8  ;;  %v10222_v62 = vld [vmem:[%s16158_s2 + $0xa80] sm:$0xff] }
 0x23f   :  { %3793 = vmatprep.subr.bf16.mxu1 %v11943_v58  ;;  %v10386_v63 = vld [vmem:[%s16158_s2 + $0xfa0] sm:$0xff]  ;;  %v10536_v6 = vcombine.high %v10218_v61, %v10222_v62 }
 0x240   :  { %v10390_v3 = vld [vmem:[%s16158_s2 + $0xfc0] sm:$0xff] }
 0x241   :  { %3835 = vmatpush2.bf16.msra.mxu0 %v11938_v11  ;;  %v11971_v5 = vld [vmem:[%s16157_s1 + $0x290] ss:$20 sps:$4 sm:$0xff]   ;;  %v10704_v8 = vcombine.high %v10386_v63, %v10390_v3 }
 0x242   :  { %3794 = vmatpush2.bf16.msra.mxu1 %v11941_v13  ;;  %3836 = vmatprep.subr.bf16.mxu0 %v11946_v14  ;;  %v10210_v58 = vld [vmem:[%s16158_s2 + $0xa20] sm:$0xff]  ;;  %v13782_v13 = vsub.s32 5, %v12626_v31 }
 0x243   :  { %3795 = vmatprep.subr.bf16.mxu1 %v11949_v16  ;;  %v10214_v11 = vld [vmem:[%s16158_s2 + $0xa40] sm:$0xff] }
 0x244   :  { %v10378_v14 = vld [vmem:[%s16158_s2 + $0xf60] sm:$0xff] }
 0x245   :  { %3837 = vmatpush2.bf16.msra.mxu0 %v11944_v17  ;;  %v10382_v16 = vld [vmem:[%s16158_s2 + $0xf80] sm:$0xff]  ;;  %v10535_v17 = vcombine.low %v10218_v61, %v10222_v62 }
 0x246   :  { %3796 = vmatpush2.bf16.msra.mxu1 %v11947_v18  ;;  %3838 = vmatprep.subr.bf16.mxu0 %v11952_v34  ;;  %v1044_v18 = vrot.slane %v13271_v46, %v12749_v56  ;;  %v10703_v34 = vcombine.low %v10386_v63, %v10390_v3  ;;  %v10326_v40 = vld [vmem:[%s16158_s2 + $0xdc0] sm:$0xff] }
 0x247   :  { %3797 = vmatprep.subr.bf16.mxu1 %v11955_v19  ;;  %v10528_v19 = vcombine.high %v10210_v58, %v10214_v11  ;;  %v10318_v52 = vld [vmem:[%s16158_s2 + $0xd80] sm:$0xff] }
 0x248   :  { %v10354_v54 = vld [vmem:[%s16158_s2 + $0xea0] sm:$0xff] }
 0x249   :  { %3839 = vmatpush2.bf16.msra.mxu0 %v11950_v1  ;;  %v10696_v1 = vcombine.high %v10378_v14, %v10382_v16  ;;  %v10306_v62 = vld [vmem:[%s16158_s2 + $0xd20] sm:$0xff] }
 0x24a   :  { %3798 = vmatpush2.bf16.msra.mxu1 %v11953_v9  ;;  %5866 = vmatprep.subr.bf16.mxu0 %v10576_v37  ;;  %v10202_v9 = vld [vmem:[%s16158_s2 + $0x9e0] sm:$0xff] }
 0x24b   :  { %11691 = vmatprep.subr.bf16.mxu1 %v11956_v10  ;;  %v10206_v10 = vld [vmem:[%s16158_s2 + $0xa00] sm:$0xff] }
 0x24c   :  { %3841 = vmatmul.mubr.bf16.vlgmr.msra.gmra.mxu0 %v12367_v7  ;;  %v10520_v37 = vcombine.high %v10202_v9, %v10206_v10  ;;  %v10519_v15 = vcombine.low %v10202_v9, %v10206_v10  ;;  %v10310_v63 = vld [vmem:[%s16158_s2 + $0xd40] sm:$0xff] }
 0x24d   :  { %3800 = vmatmul.mubr.bf16.vlgmr.msra.gmra.mxu1 %v12367_v7  ;;  %5867 = vmatpush1.bf16.msra.mxu0 %v10575_v39  ;;  %v10322_v39 = vld [vmem:[%s16158_s2 + $0xda0] sm:$0xff] }
 0x24e   :  { %11692 = vmatpush3.bf16.msra.mxu1 %v11957_v21  ;;  %3881 = vmatprep.mubr.bf16.mxu1 %v12315_v53  ;;  %v10346_v3 = vld [vmem:[%s16158_s2 + $0xe60] sm:$0xff] }
 0x24f   :  { %11693 = vmatprep.subr.bf16.mxu1 %v11958_v22  ;;  %5868 = vmatprep.subr.bf16.mxu0 %v10568_v42  ;;  %v1048_v22 = vrot.slane %v13271_v46, %v13782_v13  ;;  %v10290_v9 = vld [vmem:[%s16158_s2 + $0xca0] sm:$0xff] }
 0x250   :  { %v10294_v10 = vld [vmem:[%s16158_s2 + $0xcc0] sm:$0xff] }
 0x251   :  { %5869 = vmatpush1.bf16.msra.mxu0 %v10567_v44  ;;  %v10366_v44 = vld [vmem:[%s16158_s2 + $0xf00] sm:$0xff] }
 0x252   :  { %11694 = vmatpush3.bf16.msra.mxu1 %v11959_v23  ;;  %5870 = vmatprep.subr.bf16.mxu0 %v10560_v48  ;;  %v10370_v23 = vld [vmem:[%s16158_s2 + $0xf20] sm:$0xff] }
 0x253   :  { %11695 = vmatprep.subr.bf16.mxu1 %v11960_v24  ;;  %v10374_v24 = vld [vmem:[%s16158_s2 + $0xf40] sm:$0xff] }
 0x254   :  { %v10687_v49 = vcombine.low %v10370_v23, %v10374_v24 }
 0x255   :  { %5871 = vmatpush1.bf16.msra.mxu0 %v10559_v47 }
 0x256   :  { %11696 = vmatpush3.bf16.msra.mxu1 %v11961_v25  ;;  %5872 = vmatprep.subr.bf16.mxu0 %v10552_v51  ;;  %v10314_v51 = vld [vmem:[%s16158_s2 + $0xd60] sm:$0xff] }
 0x257   :  { %11697 = vmatprep.subr.bf16.mxu1 %v11962_v26  ;;  %v10527_v26 = vcombine.low %v10210_v58, %v10214_v11  ;;  %v10298_v11 = vld [vmem:[%s16158_s2 + $0xce0] sm:$0xff] }
 0x259   :  { %5873 = vmatpush1.bf16.msra.mxu0 %v10551_v20  ;;  %v10358_v20 = vld [vmem:[%s16158_s2 + $0xec0] sm:$0xff] }
 0x25a   :  { %11698 = vmatpush3.bf16.msra.mxu1 %v11963_v30  ;;  %5874 = vmatprep.subr.bf16.mxu0 %v10544_v57  ;;  %v10695_v30 = vcombine.low %v10378_v14, %v10382_v16  ;;  %v10672_v61 = vcombine.high %v10354_v54, %v10358_v20  ;;  %v10302_v14 = vld [vmem:[%s16158_s2 + $0xd00] sm:$0xff] }
 0x25b   :  { %11699 = vmatprep.subr.bf16.mxu1 %v11964_v38  ;;  %v10688_v38 = vcombine.high %v10370_v23, %v10374_v24  ;;  %v10338_v16 = vld [vmem:[%s16158_s2 + $0xe20] sm:$0xff]  ;;  %v10615_v23 = vcombine.low %v10298_v11, %v10302_v14 }
 0x25d   :  { %5875 = vmatpush1.bf16.msra.mxu0 %v10543_v4  ;;  %v10350_v4 = vld [vmem:[%s16158_s2 + $0xe80] sm:$0xff] }
 0x25e   :  { %11700 = vmatpush3.bf16.msra.mxu1 %v11965_v2  ;;  %5876 = vmatprep.subr.bf16.mxu0 %v10536_v6  ;;  %v10671_v6 = vcombine.low %v10354_v54, %v10358_v20  ;;  %v10664_v58 = vcombine.high %v10346_v3, %v10350_v4 }
 0x25f   :  { %11701 = vmatprep.subr.bf16.mxu1 %v11966_v43  ;;  %v10362_v43 = vld [vmem:[%s16158_s2 + $0xee0] sm:$0xff] }
 0x260   :  { %v10679_v57 = vcombine.low %v10362_v43, %v10366_v44 }
 0x261   :  { %5877 = vmatpush1.bf16.msra.mxu0 %v10535_v17  ;;  %v10342_v17 = vld [vmem:[%s16158_s2 + $0xe40] sm:$0xff] }
 0x262   :  { %11702 = vmatpush3.bf16.msra.mxu1 %v11967_v59  ;;  %5878 = vmatprep.subr.bf16.mxu0 %v10528_v19  ;;  %v10640_v59 = vcombine.high %v10322_v39, %v10326_v40  ;;  %v10616_v19 = vcombine.high %v10298_v11, %v10302_v14  ;;  %v10655_v24 = vcombine.low %v10338_v16, %v10342_v17  ;;  %v13918_v11 = vld [vmem:[%s16158_s2 + $0xba8] sm:$0xff] }
 0x263   :  { %11703 = vmatprep.subr.bf16.mxu1 %v11968_v50  ;;  %v10680_v50 = vcombine.high %v10362_v43, %v10366_v44  ;;  %v13923_v14 = vld [vmem:[%s16158_s2 + $0xbc8] sm:$0xff] }
 0x265   :  { %5879 = vmatpush1.bf16.msra.mxu0 %v10527_v26 }
 0x266   :  { %11704 = vmatpush3.bf16.msra.mxu1 %v11969_v55  ;;  %5880 = vmatprep.subr.bf16.mxu0 %v10520_v37  ;;  %v10639_v55 = vcombine.low %v10322_v39, %v10326_v40  ;;  %v10454_v37 = vld [vmem:[%s16158_s2 + $0x11c0] sm:$0xff] }
 0x267   :  { %11705 = vmatprep.subr.bf16.mxu1 %v11970_v60  ;;  %v10632_v60 = vcombine.high %v10314_v51, %v10318_v52 }
 0x269   :  { %5881 = vmatpush1.bf16.msra.mxu0 %v10519_v15  ;;  %v10434_v15 = vld [vmem:[%s16158_s2 + $0x1120] sm:$0xff] }
 0x26a   :  { %11706 = vmatpush3.bf16.msra.mxu1 %v11971_v5  ;;  %5882 = vmatprep.subr.bf16.mxu0 %v10640_v59  ;;  %v10631_v5 = vcombine.low %v10314_v51, %v10318_v52  ;;  %v10274_v59 = vld [vmem:[%s16158_s2 + $0xc20] sm:$0xff] }
 0x26b   :  { %5907 = vmatprep.subr.bf16.mxu1 %v10704_v8  ;;  %v10624_v8 = vcombine.high %v10306_v62, %v10310_v63 }
 0x26c   :  { %v2995_v21 = vpop.f32.mrf.mxu0 }
 0x26d   :  { %v2954_v25 = vpop.f32.mrf.mxu1  ;;  %3882 = vmatmul.mubr.bf16.vlgmr.msra.gmra.mxu1 %v12367_v7  ;;  %5883 = vmatpush2.bf16.msra.mxu0 %v10639_v55 }
 0x26e   :  { %v2955_v28 = vadd.f32 %v2954_v25, %v1044_v18  ;;  %v2997_v29 = vpop.f32.mrf.mxu0  ;;  %5908 = vmatpush1.bf16.msra.mxu1 %v10703_v34  ;;  %5884 = vmatprep.subr.bf16.mxu0 %v10632_v60  ;;  %v10623_v18 = vcombine.low %v10306_v62, %v10310_v63  ;;  %v10663_v34 = vcombine.low %v10346_v3, %v10350_v4  ;;  %v10426_v60 = vld [vmem:[%s16158_s2 + $0x10e0] sm:$0xff] }
 0x26f   :  { %v2956_v46 = vpop.f32.mrf.mxu1  ;;  %5909 = vmatprep.subr.bf16.mxu1 %v10696_v1  ;;  %v10656_v1 = vcombine.high %v10338_v16, %v10342_v17  ;;  %v10608_v25 = vcombine.high %v10290_v9, %v10294_v10  ;;  %v10270_v63 = vld [vmem:[%s16158_s2 + $0xc00] sm:$0xff] }
 0x270   :  { %v2957_v41 = vadd.f32 %v2956_v46, %v1048_v22  ;;  %v2999_v2 = vpop.f32.mrf.mxu0  ;;  %v13813_v42 = vadd.f32 %v2995_v21, %v2955_v28  ;;  %v10330_v21 = vld [vmem:[%s16158_s2 + $0xde0] sm:$0xff]  ;;  %v10607_v46 = vcombine.low %v10290_v9, %v10294_v10 }
 0x271   :  { %v2958_v45 = vpop.f32.mrf.mxu1  ;;  %5885 = vmatpush2.bf16.msra.mxu0 %v10631_v5  ;;  %v10334_v22 = vld [vmem:[%s16158_s2 + $0xe00] sm:$0xff] }
 0x272   :  { %v3000_v47 = vpop.f32.mrf.mxu0  ;;  %v13821_v48 = vadd.f32 %v2997_v29, %v2957_v41  ;;  %5910 = vmatpush1.bf16.msra.mxu1 %v10695_v30  ;;  %5886 = vmatprep.subr.bf16.mxu0 %v10624_v8  ;;  %v10648_v26 = vcombine.high %v10330_v21, %v10334_v22  ;;  %v10282_v28 = vld [vmem:[%s16158_s2 + $0xc60] sm:$0xff] }
 0x273   :  { %v2959_v27 = vpop.f32.mrf.mxu1  ;;  %5911 = vmatprep.subr.bf16.mxu1 %v10688_v38  ;;  %v10286_v29 = vld [vmem:[%s16158_s2 + $0xc80] sm:$0xff]  ;;  %v10647_v38 = vcombine.low %v10330_v21, %v10334_v22 }
 0x274   :  { %v10450_v30 = vld [vmem:[%s16158_s2 + $0x11a0] sm:$0xff]  ;;  %v10600_v39 = vcombine.high %v10282_v28, %v10286_v29  ;;  %v10599_v43 = vcombine.low %v10282_v28, %v10286_v29 }
 0x275   :  { %5887 = vmatpush2.bf16.msra.mxu0 %v10623_v18  ;;  %v10768_v40 = vcombine.high %v10450_v30, %v10454_v37  ;;  %v10442_v41 = vld [vmem:[%s16158_s2 + $0x1160] sm:$0xff]  ;;  %v10767_v44 = vcombine.low %v10450_v30, %v10454_v37 }
 0x276   :  { %5912 = vmatpush1.bf16.msra.mxu1 %v10687_v49  ;;  %5888 = vmatprep.subr.bf16.mxu0 %v10616_v19  ;;  %v10446_v2 = vld [vmem:[%s16158_s2 + $0x1180] sm:$0xff] }
 0x277   :  { %5913 = vmatprep.subr.bf16.mxu1 %v10680_v50  ;;  %v10760_v45 = vcombine.high %v10442_v41, %v10446_v2  ;;  %v10438_v47 = vld [vmem:[%s16158_s2 + $0x1140] sm:$0xff]  ;;  %v10759_v51 = vcombine.low %v10442_v41, %v10446_v2 }
 0x278   :  { %v10278_v27 = vld [vmem:[%s16158_s2 + $0xc40] sm:$0xff]  ;;  %v10752_v20 = vcombine.high %v10434_v15, %v10438_v47  ;;  %v10751_v4 = vcombine.low %v10434_v15, %v10438_v47  ;;  %v13967_v15 = vsub.s32 7, %v12626_v31 }
 0x279   :  { %5889 = vmatpush2.bf16.msra.mxu0 %v10615_v23  ;;  %v10592_v52 = vcombine.high %v10274_v59, %v10278_v27  ;;  %v10591_v55 = vcombine.low %v10274_v59, %v10278_v27  ;;  %v10418_v17 = vld [vmem:[%s16158_s2 + $0x10a0] sm:$0xff] }
 0x27a   :  { %5914 = vmatpush1.bf16.msra.mxu1 %v10679_v57  ;;  %5890 = vmatprep.subr.bf16.mxu0 %v10608_v25  ;;  %v10422_v18 = vld [vmem:[%s16158_s2 + $0x10c0] sm:$0xff] }
 0x27b   :  { %5915 = vmatprep.subr.bf16.mxu1 %v10672_v61  ;;  %v10430_v61 = vld [vmem:[%s16158_s2 + $0x1100] sm:$0xff]  ;;  %v10736_v10 = vcombine.high %v10418_v17, %v10422_v18  ;;  %v10735_v23 = vcombine.low %v10418_v17, %v10422_v18 }
 0x27c   :  { %v10744_v8 = vcombine.high %v10426_v60, %v10430_v61  ;;  %v13938_v19 = vld [vmem:[%s16158_s2 + $0x13a0] sm:$0x33] }
 0x27d   :  { %5891 = vmatpush2.bf16.msra.mxu0 %v10607_v46  ;;  %v10832_v9 = vcombine.high %v13938_v19, %v13938_v19  ;;  %v10410_v21 = vld [vmem:[%s16158_s2 + $0x1060] sm:$0xff] }
 0x27e   :  { %5916 = vmatpush1.bf16.msra.mxu1 %v10671_v6  ;;  %5892 = vmatprep.subr.bf16.mxu0 %v10600_v39  ;;  %v10414_v22 = vld [vmem:[%s16158_s2 + $0x1080] sm:$0xff] }
 0x27f   :  { %5917 = vmatprep.subr.bf16.mxu1 %v10664_v58  ;;  %v10402_v25 = vld [vmem:[%s16158_s2 + $0x1020] sm:$0xff]  ;;  %v10727_v28 = vcombine.low %v10410_v21, %v10414_v22 }
 0x280   :  { %v10394_v30 = vld [vmem:[%s16158_s2 + $0xfe0] sm:$0xff] }
 0x281   :  { %5893 = vmatpush2.bf16.msra.mxu0 %v10599_v43  ;;  %v10398_v37 = vld [vmem:[%s16158_s2 + $0x1000] sm:$0xff] }
 0x282   :  { %5918 = vmatpush1.bf16.msra.mxu1 %v10663_v34  ;;  %5894 = vmatprep.subr.bf16.mxu0 %v10592_v52  ;;  %v10577_v34 = vcombine.low %v13918_v11, %v13923_v14  ;;  %v10711_v39 = vcombine.low %v10394_v30, %v10398_v37  ;;  %v12100_v47 = vld [vmem:[%s16160_s4] sm:$0xff] }
 0x283   :  { %5919 = vmatprep.subr.bf16.mxu1 %v10656_v1  ;;  %v10743_v1 = vcombine.low %v10426_v60, %v10430_v61  ;;  %v1056_v59 = vrot.slane %v12100_v47, %v13967_v15  ;;  %v13987_v17 = vld [vmem:[%s16159_s3 + $0x5] sm:$0x1f] }
 0x284   :  { %v3337_v18 = vrot.slane %v13987_v17, %v12632_v33 }
 0x285   :  { %5895 = vmatpush2.bf16.msra.mxu0 %v10591_v55 }
 0x286   :  { %5920 = vmatpush1.bf16.msra.mxu1 %v10655_v24  ;;  %v10728_v24 = vcombine.high %v10410_v21, %v10414_v22 }
 0x287   :  { %5921 = vmatprep.subr.bf16.mxu1 %v10648_v26  ;;  %v10406_v26 = vld [vmem:[%s16158_s2 + $0x1040] sm:$0xff] }
 0x288   :  { %v10720_v29 = vcombine.high %v10402_v25, %v10406_v26  ;;  %v10719_v46 = vcombine.low %v10402_v25, %v10406_v26 }
 0x28a   :  { %5922 = vmatpush1.bf16.msra.mxu1 %v10647_v38  ;;  %v10712_v38 = vcombine.high %v10394_v30, %v10398_v37 }
 0x28b   :  { %5923 = vmatprep.subr.bf16.mxu1 %v10768_v40  ;;  %v10578_v40 = vcombine.high %v13918_v11, %v13923_v14  ;;  %v10239_v11 = vld [vmem:[%s16158_s2 + $0xb08] sm:$0xff]  ;;  %v10490_v14 = vld [vmem:[%s16158_s2 + $0x12e0] sm:$0xff] }
 0x28d   :  { %v3036_v49 = vpop.f32.mrf.mxu1 }
 0x28e   :  { %v3037_v50 = vadd.f32 %v3036_v49, %v13813_v42  ;;  %5924 = vmatpush2.bf16.msra.mxu1 %v10767_v44  ;;  %v10266_v42 = vld [vmem:[%s16158_s2 + $0xbe0] sm:$0xff] }
 0x28f   :  { %v3038_v54 = vpop.f32.mrf.mxu1  ;;  %5925 = vmatprep.subr.bf16.mxu1 %v10760_v45  ;;  %v10584_v5 = vcombine.high %v10266_v42, %v10270_v63  ;;  %v10583_v58 = vcombine.low %v10266_v42, %v10270_v63  ;;  %v13964_v45 = vsub.s32 6, %v12626_v31 }
 0x290   :  { %v3039_v57 = vadd.f32 %v3038_v54, %v13821_v48  ;;  %v3170_v48 = vmax.f32 %v3037_v50, 0.0 }
 0x291   :  { %v3040_v62 = vpop.f32.mrf.mxu1  ;;  %5896 = vmatprep.subr.bf16.mxu0 %v10584_v5  ;;  %v1052_v49 = vrot.slane %v12100_v47, %v13964_v45  ;;  %v10506_v47 = vld [vmem:[%s16158_s2 + $0x1360] sm:$0xff] }
 0x292   :  { %v3171_v3 = vmax.f32 %v3039_v57, 0.0  ;;  %5926 = vmatpush2.bf16.msra.mxu1 %v10759_v51  ;;  %5897 = vmatpush2.bf16.msra.mxu0 %v10583_v58 }
 0x293   :  { %v3041_v6 = vpop.f32.mrf.mxu1  ;;  %5927 = vmatprep.subr.bf16.mxu1 %v10752_v20  ;;  %10839 = vmatprep.subr.msk.bf16.mxu0 %vm2649_vm0, %v10832_v9 }
 0x294   :  { %v13925_v16 = vcombine.low %v3170_v48, %v3171_v3 }
 0x296   :  { %5928 = vmatpush2.bf16.msra.mxu1 %v10751_v4  ;;  %v3207_v5 = vrot.slane %v13925_v16, %v13623_v0  ;;  %v3329_v16 = vrot.slane %v13987_v17, %v12629_v32 }
 0x297   :  { %5929 = vmatprep.subr.bf16.mxu1 %v10744_v8 }
 0x29a   :  { %5930 = vmatpush2.bf16.msra.mxu1 %v10743_v1  ;;  %v3341_v1 = vrot.slane %v13987_v17, %v12643_v36 }
 0x29b   :  { %5931 = vmatprep.subr.bf16.mxu1 %v10736_v10  ;;  %v3333_v10 = vrot.slane %v13987_v17, %v12640_v35 }
 0x29e   :  { %5932 = vmatpush2.bf16.msra.mxu1 %v10735_v23 }
 0x29f   :  { %5933 = vmatprep.subr.bf16.mxu1 %v10728_v24 }
 0x2a2   :  { %5934 = vmatpush2.bf16.msra.mxu1 %v10727_v28 }
 0x2a3   :  { %5935 = vmatprep.subr.bf16.mxu1 %v10720_v29 }
 0x2a6   :  { %5936 = vmatpush2.bf16.msra.mxu1 %v10719_v46 }
 0x2a7   :  { %5937 = vmatprep.subr.bf16.mxu1 %v10712_v38 }
 0x2aa   :  { %5938 = vmatpush2.bf16.msra.mxu1 %v10711_v39  ;;  %v10831_v39 = vcombine.low %v13938_v19, %v13938_v19  ;;  %v10510_v19 = vld [vmem:[%s16158_s2 + $0x1380] sm:$0xff] }
 0x2ab   :  { %5989 = vmatprep.subr.bf16.mxu1 %v10578_v40  ;;  %v10251_v40 = vld [vmem:[%s16158_s2 + $0xb68] sm:$0xff] }
 0x2ac   :  { %v3077_v41 = vpop.f32.mrf.mxu0 }
 0x2ad   :  { %v3078_v27 = vadd.f32 %v3077_v41, %v1052_v49 }
 0x2ae   :  { %v3079_v2 = vpop.f32.mrf.mxu0 }
 0x2af   :  { %v3080_v52 = vadd.f32 %v3079_v2, %v1056_v59 }
 0x2b0   :  { %v3081_v43 = vpop.f32.mrf.mxu0 }
 0x2b2   :  { %v3082_v44 = vpop.f32.mrf.mxu0 }
 0x2b3   :  { %v10255_v44 = vld [vmem:[%s16158_s2 + $0xb88] sm:$0xff] }
 0x2cc   :  { %v3159_v50 = vpop.f32.mrf.mxu0 }
 0x2cd   :  { %v3118_v51 = vpop.f32.mrf.mxu1 }
 0x2ce   :  { %v3119_v54 = vadd.f32 %v3118_v51, %v3078_v27  ;;  %v3161_v20 = vpop.f32.mrf.mxu0  ;;  %v5843_v51 = vsel %vm2649_vm0, %v10831_v39, 0  ;;  %v10470_v39 = vld [vmem:[%s16158_s2 + $0x1240] sm:$0xff] }
 0x2cf   :  { %v3120_v55 = vpop.f32.mrf.mxu1 }
 0x2d0   :  { %v3160_v57 = vadd.f32 %v3159_v50, %v3119_v54  ;;  %v3121_v60 = vadd.f32 %v3120_v55, %v3080_v52  ;;  %v3163_v31 = vpop.f32.mrf.mxu0  ;;  %v10570_v52 = vcombine.high %v10251_v40, %v10255_v44  ;;  %v10824_v54 = vcombine.high %v10506_v47, %v10510_v19  ;;  %v10247_v55 = vld [vmem:[%s16158_s2 + $0xb48] sm:$0xff] }
 0x2d1   :  { %v3122_v61 = vpop.f32.mrf.mxu1  ;;  %v10569_v31 = vcombine.low %v10251_v40, %v10255_v44 }
 0x2d2   :  { %v3162_v62 = vadd.f32 %v3161_v20, %v3121_v60  ;;  %v3164_v42 = vpop.f32.mrf.mxu0  ;;  %v3172_v48 = vmax.f32 %v3160_v57, 0.0  ;;  %v10243_v20 = vld [vmem:[%s16158_s2 + $0xb28] sm:$0xff]  ;;  %v10498_v57 = vld [vmem:[%s16158_s2 + $0x1320] sm:$0xff]  ;;  %v10823_v61 = vcombine.low %v10506_v47, %v10510_v19 }
 0x2d3   :  { %v3123_v63 = vpop.f32.mrf.mxu1  ;;  %v10502_v60 = vld [vmem:[%s16158_s2 + $0x1340] sm:$0xff]  ;;  %v10203_v47 = vld [vmem:[%s16158_s2 + $0x9e8] sm:$0xff] }
 0x2d4   :  { %v3173_v3 = vmax.f32 %v3162_v62, 0.0  ;;  %v10562_v62 = vcombine.high %v10243_v20, %v10247_v55  ;;  %v10816_v42 = vcombine.high %v10498_v57, %v10502_v60  ;;  %v10235_v63 = vld [vmem:[%s16158_s2 + $0xae8] sm:$0xff] }
 0x2d5   :  { %v10207_v19 = vld [vmem:[%s16158_s2 + $0xa08] sm:$0xff] }
 0x2d6   :  { %v3200_v4 = vcombine.low %v3172_v48, %v3173_v3  ;;  %v10561_v48 = vcombine.low %v10243_v20, %v10247_v55  ;;  %v10815_v3 = vcombine.low %v10498_v57, %v10502_v60  ;;  %v10522_v20 = vcombine.high %v10203_v47, %v10207_v19  ;;  %v10323_v60 = vld [vmem:[%s16158_s2 + $0xda8] sm:$0xff] }
 0x2d8   :  { %v3214_v6 = vrot.slane %v3200_v4, %v13623_v0  ;;  %v10554_v4 = vcombine.high %v10235_v63, %v10239_v11 }
 0x2da   :  { %v3215_v58 = vcombine.low %v3207_v5, %v3214_v6  ;;  %v10227_v6 = vld [vmem:[%s16158_s2 + $0xaa8] sm:$0xff] }
 0x2dc   :  { %3225 = vst.msk [vmem:[#allocation2 + $0x8] sm:$0xff] %vm13978_vm7, %v3215_v58  ;;  %v10231_v58 = vld [vmem:[%s16158_s2 + $0xac8] sm:$0xff] }
 0x30c   :  { %v3842_v9 = vpop.f32.mrf.mxu0 }
 0x30d   :  { %v3843_v21 = vadd.f32 %v3842_v9, %v3337_v18  ;;  %v3801_v22 = vpop.f32.mrf.mxu1  ;;  %v10482_v18 = vld [vmem:[%s16158_s2 + $0x12a0] sm:$0xff] }
 0x30e   :  { %v3802_v23 = vadd.f32 %v3801_v22, %v3329_v16  ;;  %v3844_v24 = vpop.f32.mrf.mxu0  ;;  %v10486_v16 = vld [vmem:[%s16158_s2 + $0x12c0] sm:$0xff]  ;;  %v10219_v22 = vld [vmem:[%s16158_s2 + $0xa68] sm:$0xff] }
 0x30f   :  { %v3891_v25 = vmax.f32 %v3843_v21, 0.0  ;;  %v3845_v26 = vadd.f32 %v3844_v24, %v3341_v1  ;;  %v3803_v28 = vpop.f32.mrf.mxu1  ;;  %v10553_v1 = vcombine.low %v10235_v63, %v10239_v11  ;;  %v10800_v21 = vcombine.high %v10482_v18, %v10486_v16  ;;  %v10474_v24 = vld [vmem:[%s16158_s2 + $0x1260] sm:$0xff] }
 0x310   :  { %v3804_v29 = vadd.f32 %v3803_v28, %v3333_v10  ;;  %v3846_v30 = vpop.f32.mrf.mxu0  ;;  %v3889_v37 = vmax.f32 %v3802_v23, 0.0  ;;  %v10546_v10 = vcombine.high %v10227_v6, %v10231_v58  ;;  %v10223_v23 = vld [vmem:[%s16158_s2 + $0xa88] sm:$0xff]  ;;  %v10799_v28 = vcombine.low %v10482_v18, %v10486_v16 }
 0x311   :  { %v3892_v46 = vmax.f32 %v3845_v26, 0.0  ;;  %v3805_v38 = vpop.f32.mrf.mxu1  ;;  %v14002_v41 = vpack.c.bf16 %v3891_v25, %v3891_v25  ;;  %v10478_v25 = vld [vmem:[%s16158_s2 + $0x1280] sm:$0xff]  ;;  %v10545_v26 = vcombine.low %v10227_v6, %v10231_v58  ;;  %v10537_v40 = vcombine.low %v10219_v22, %v10223_v23  ;;  %v10379_v16 = vld [vmem:[%s16158_s2 + $0xf68] sm:$0xff] }
 0x312   :  { %v3890_v2 = vmax.f32 %v3804_v29, 0.0  ;;  %v3847_v43 = vpop.f32.mrf.mxu0  ;;  %v14017_v50 = vpack.c.bf16 %v3889_v37, %v3889_v37  ;;  %v10538_v29 = vcombine.high %v10219_v22, %v10223_v23  ;;  %v10792_v30 = vcombine.high %v10474_v24, %v10478_v25  ;;  %v10211_v37 = vld [vmem:[%s16158_s2 + $0xa28] sm:$0xff]  ;;  %v10466_v38 = vld [vmem:[%s16158_s2 + $0x1220] sm:$0xff] }
 0x313   :  { %v14013_v49 = vpack.c.bf16 %v3892_v46, %v3892_v46  ;;  %v3806_v59 = vpop.f32.mrf.mxu1  ;;  %v10215_v46 = vld [vmem:[%s16158_s2 + $0xa48] sm:$0xff]  ;;  %v10784_v44 = vcombine.high %v10466_v38, %v10470_v39  ;;  %v10521_v11 = vcombine.low %v10203_v47, %v10207_v19 }
 0x314   :  { %v14015_v27 = vpack.c.bf16 %v3890_v2, %v3890_v2  ;;  %v10791_v2 = vcombine.low %v10474_v24, %v10478_v25  ;;  %v10530_v43 = vcombine.high %v10211_v37, %v10215_v46  ;;  %v10458_v59 = vld [vmem:[%s16158_s2 + $0x11e0] sm:$0xff]  ;;  %v10307_v22 = vld [vmem:[%s16158_s2 + $0xd28] sm:$0xff] }
 0x315   :  { %5939 = vmatprep.mubr.bf16.mxu1 %v14013_v49  ;;  %v10311_v23 = vld [vmem:[%s16158_s2 + $0xd48] sm:$0xff] }
 0x316   :  { %5898 = vmatprep.mubr.bf16.mxu0 %v14015_v27  ;;  %5940 = vmatmul.mubr.bf16.vlgmr.msra.gmra.mxu1 %v14002_v41  ;;  %v10291_v19 = vld [vmem:[%s16158_s2 + $0xca8] sm:$0xff] }
 0x317   :  { %5990 = vmatpush1.bf16.msra.mxu1 %v10577_v34  ;;  %5899 = vmatmul.mubr.bf16.vlgmr.msra.gmra.mxu0 %v14017_v50  ;;  %v10494_v34 = vld [vmem:[%s16158_s2 + $0x1300] sm:$0xff] }
 0x318   :  { %6021 = vmatprep.mubr.bf16.mxu1 %v14015_v27  ;;  %5949 = vmatpush1.bf16.msra.mxu0 %v5843_v51  ;;  %v10808_v5 = vcombine.high %v10490_v14, %v10494_v34  ;;  %v10807_v9 = vcombine.low %v10490_v14, %v10494_v34  ;;  %v10462_v51 = vld [vmem:[%s16158_s2 + $0x1200] sm:$0xff] }
 0x319   :  { %5991 = vmatprep.subr.bf16.mxu1 %v10570_v52  ;;  %5950 = vmatprep.subr.bf16.mxu0 %v10824_v54  ;;  %v10529_v52 = vcombine.low %v10211_v37, %v10215_v46  ;;  %v10783_v54 = vcombine.low %v10466_v38, %v10470_v39  ;;  %v10776_v57 = vcombine.high %v10458_v59, %v10462_v51  ;;  %v10299_v46 = vld [vmem:[%s16158_s2 + $0xce8] sm:$0xff] }
 0x31a   :  { %5980 = vmatprep.mubr.bf16.mxu0 %v12124_v12  ;;  %v10775_v34 = vcombine.low %v10458_v59, %v10462_v51  ;;  %v10303_v38 = vld [vmem:[%s16158_s2 + $0xd08] sm:$0xff] }
 0x31b   :  { %5992 = vmatpush1.bf16.msra.mxu1 %v10569_v31  ;;  %v10327_v31 = vld [vmem:[%s16158_s2 + $0xdc8] sm:$0xff] }
 0x31c   :  { %5951 = vmatpush1.bf16.msra.mxu0 %v10823_v61  ;;  %5993 = vmatprep.subr.bf16.mxu1 %v10562_v62  ;;  %v3345_v61 = vrot.slane %v13987_v17, %v12749_v56  ;;  %v10387_v62 = vld [vmem:[%s16158_s2 + $0xfa8] sm:$0xff]  ;;  %v10641_v18 = vcombine.low %v10323_v60, %v10327_v31 }
 0x31d   :  { %5952 = vmatprep.subr.bf16.mxu0 %v10816_v42  ;;  %v10391_v42 = vld [vmem:[%s16158_s2 + $0xfc8] sm:$0xff] }
 0x31e   :  { %v10315_v17 = vld [vmem:[%s16158_s2 + $0xd68] sm:$0xff] }
 0x31f   :  { %5994 = vmatpush1.bf16.msra.mxu1 %v10561_v48  ;;  %v10642_v48 = vcombine.high %v10323_v60, %v10327_v31  ;;  %v10295_v59 = vld [vmem:[%s16158_s2 + $0xcc8] sm:$0xff] }
 0x320   :  { %5953 = vmatpush1.bf16.msra.mxu0 %v10815_v3  ;;  %5995 = vmatprep.subr.bf16.mxu1 %v10554_v4  ;;  %v10706_v4 = vcombine.high %v10387_v62, %v10391_v42  ;;  %v10283_v60 = vld [vmem:[%s16158_s2 + $0xc68] sm:$0xff] }
 0x321   :  { %5954 = vmatprep.subr.bf16.mxu0 %v10808_v5  ;;  %v10319_v5 = vld [vmem:[%s16158_s2 + $0xd88] sm:$0xff] }
 0x322   :  { %v10287_v31 = vld [vmem:[%s16158_s2 + $0xc88] sm:$0xff] }
 0x323   :  { %5996 = vmatpush1.bf16.msra.mxu1 %v10553_v1  ;;  %v10383_v1 = vld [vmem:[%s16158_s2 + $0xf88] sm:$0xff] }
 0x324   :  { %5955 = vmatpush1.bf16.msra.mxu0 %v10807_v9  ;;  %5997 = vmatprep.subr.bf16.mxu1 %v10546_v10  ;;  %v10634_v10 = vcombine.high %v10315_v17, %v10319_v5  ;;  %v10698_v25 = vcombine.high %v10379_v16, %v10383_v1  ;;  %v10697_v37 = vcombine.low %v10379_v16, %v10383_v1  ;;  %v10271_v16 = vld [vmem:[%s16158_s2 + $0xc08] sm:$0xff] }
 0x325   :  { %5956 = vmatprep.subr.bf16.mxu0 %v10800_v21  ;;  %v10705_v21 = vcombine.low %v10387_v62, %v10391_v42  ;;  %v10609_v62 = vcombine.low %v10291_v19, %v10295_v59  ;;  %v10347_v42 = vld [vmem:[%s16158_s2 + $0xe68] sm:$0xff] }
 0x327   :  { %5998 = vmatpush1.bf16.msra.mxu1 %v10545_v26  ;;  %v10633_v26 = vcombine.low %v10315_v17, %v10319_v5  ;;  %v10339_v17 = vld [vmem:[%s16158_s2 + $0xe28] sm:$0xff] }
 0x328   :  { %5957 = vmatpush1.bf16.msra.mxu0 %v10799_v28  ;;  %5999 = vmatprep.subr.bf16.mxu1 %v10538_v29  ;;  %v10371_v28 = vld [vmem:[%s16158_s2 + $0xf28] sm:$0xff] }
 0x329   :  { %5958 = vmatprep.subr.bf16.mxu0 %v10792_v30  ;;  %v10375_v29 = vld [vmem:[%s16158_s2 + $0xf48] sm:$0xff]  ;;  %v10626_v30 = vcombine.high %v10307_v22, %v10311_v23 }
 0x32a   :  { %v10690_v39 = vcombine.high %v10371_v28, %v10375_v29  ;;  %v10689_v47 = vcombine.low %v10371_v28, %v10375_v29  ;;  %v10343_v5 = vld [vmem:[%s16158_s2 + $0xe48] sm:$0xff] }
 0x32b   :  { %6000 = vmatpush1.bf16.msra.mxu1 %v10537_v40  ;;  %v10625_v40 = vcombine.low %v10307_v22, %v10311_v23  ;;  %v10658_v1 = vcombine.high %v10339_v17, %v10343_v5  ;;  %v10657_v23 = vcombine.low %v10339_v17, %v10343_v5  ;;  %v10451_v29 = vld [vmem:[%s16158_s2 + $0x11a8] sm:$0xff] }
 0x32c   :  { %5959 = vmatpush1.bf16.msra.mxu0 %v10791_v2  ;;  %6001 = vmatprep.subr.bf16.mxu1 %v10530_v43  ;;  %v10363_v2 = vld [vmem:[%s16158_s2 + $0xee8] sm:$0xff] }
 0x32d   :  { %v11707_v55 = vpop.f32.mrf.mxu1  ;;  %5960 = vmatprep.subr.bf16.mxu0 %v10784_v44  ;;  %v10367_v43 = vld [vmem:[%s16158_s2 + $0xf08] sm:$0xff]  ;;  %v10618_v44 = vcombine.high %v10299_v46, %v10303_v38 }
 0x32e   :  { %v10682_v51 = vcombine.high %v10363_v2, %v10367_v43 }
 0x32f   :  { %6002 = vmatpush1.bf16.msra.mxu1 %v10529_v52  ;;  %v11708_v63 = vpop.f32.mrf.mxu1  ;;  %v10617_v52 = vcombine.low %v10299_v46, %v10303_v38 }
 0x330   :  { %v11709_v14 = vadd.f32 %v11708_v63, %v11707_v55  ;;  %5961 = vmatpush1.bf16.msra.mxu0 %v10783_v54  ;;  %6003 = vmatprep.subr.bf16.mxu1 %v10522_v20  ;;  %v10355_v54 = vld [vmem:[%s16158_s2 + $0xea8] sm:$0xff]  ;;  %v10610_v55 = vcombine.high %v10291_v19, %v10295_v59 }
 0x331   :  { %v11710_v3 = vpop.f32.mrf.mxu1  ;;  %5962 = vmatprep.subr.bf16.mxu0 %v10776_v57  ;;  %v10359_v20 = vld [vmem:[%s16158_s2 + $0xec8] sm:$0xff]  ;;  %v10681_v57 = vcombine.low %v10363_v2, %v10367_v43 }
 0x332   :  { %v3884_v6 = vadd.f32 %v11709_v14, %v3345_v61  ;;  %v10674_v61 = vcombine.high %v10355_v54, %v10359_v20  ;;  %v10351_v63 = vld [vmem:[%s16158_s2 + $0xe88] sm:$0xff]  ;;  %v10673_v14 = vcombine.low %v10355_v54, %v10359_v20 }
 0x333   :  { %6004 = vmatpush1.bf16.msra.mxu1 %v10521_v11  ;;  %v11711_v58 = vpop.f32.mrf.mxu1  ;;  %v10602_v11 = vcombine.high %v10283_v60, %v10287_v31  ;;  %v10666_v3 = vcombine.high %v10347_v42, %v10351_v63  ;;  %v10443_v43 = vld [vmem:[%s16158_s2 + $0x1168] sm:$0xff] }
 0x334   :  { %v3893_v9 = vmax.f32 %v3884_v6, 0.0  ;;  %5963 = vmatpush1.bf16.msra.mxu0 %v10775_v34  ;;  %6005 = vmatprep.subr.bf16.mxu1 %v10642_v48  ;;  %v10275_v34 = vld [vmem:[%s16158_s2 + $0xc28] sm:$0xff]  ;;  %v10665_v58 = vcombine.low %v10347_v42, %v10351_v63 }
 0x335   :  { %6030 = vmatprep.subr.bf16.mxu0 %v10706_v4  ;;  %v10279_v48 = vld [vmem:[%s16158_s2 + $0xc48] sm:$0xff]  ;;  %v10601_v4 = vcombine.low %v10283_v60, %v10287_v31 }
 0x336   :  { %v14133_v24 = vpack.c.bf16 %v3893_v9, %v3893_v9  ;;  %v10594_v6 = vcombine.high %v10275_v34, %v10279_v48  ;;  %v10593_v9 = vcombine.low %v10275_v34, %v10279_v48 }
 0x337   :  { %6006 = vmatpush2.bf16.msra.mxu1 %v10641_v18  ;;  %v10267_v18 = vld [vmem:[%s16158_s2 + $0xbe8] sm:$0xff] }
 0x338   :  { %10840 = vmatmul.mubr.msk.bf16.vlgmr.msra.gmra.mxu0 %vm2645_vm1, %v14133_v24  ;;  %6007 = vmatprep.subr.bf16.mxu1 %v10634_v10  ;;  %v10331_v10 = vld [vmem:[%s16158_s2 + $0xde8] sm:$0xff]  ;;  %v10586_v22 = vcombine.high %v10267_v18, %v10271_v16  ;;  %v10585_v28 = vcombine.low %v10267_v18, %v10271_v16 }
 0x339   :  { %6031 = vmatpush1.bf16.msra.mxu0 %v10705_v21  ;;  %6062 = vmatprep.mubr.bf16.mxu0 %v14013_v49  ;;  %v10335_v21 = vld [vmem:[%s16158_s2 + $0xe08] sm:$0xff] }
 0x33a   :  { %6032 = vmatprep.subr.bf16.mxu0 %v10698_v25  ;;  %v10515_v25 = vld [vmem:[%s16158_s2 + $0x13a8] sm:$0x33]  ;;  %v10649_v38 = vcombine.low %v10331_v10, %v10335_v21 }
 0x33b   :  { %6008 = vmatpush2.bf16.msra.mxu1 %v10633_v26  ;;  %v10650_v26 = vcombine.high %v10331_v10, %v10335_v21  ;;  %v10833_v46 = vcombine.low %v10515_v25, %v10515_v25 }
 0x33c   :  { %6009 = vmatprep.subr.bf16.mxu1 %v10626_v30  ;;  %v10455_v30 = vld [vmem:[%s16158_s2 + $0x11c8] sm:$0xff] }
 0x33d   :  { %6033 = vmatpush1.bf16.msra.mxu0 %v10697_v37  ;;  %v10834_v37 = vcombine.high %v10515_v25, %v10515_v25  ;;  %v10770_v2 = vcombine.high %v10451_v29, %v10455_v30  ;;  %v10769_v59 = vcombine.low %v10451_v29, %v10455_v30  ;;  %v10471_v29 = vld [vmem:[%s16158_s2 + $0x1248] sm:$0xff] }
 0x33e   :  { %6034 = vmatprep.subr.bf16.mxu0 %v10690_v39  ;;  %v10507_v39 = vld [vmem:[%s16158_s2 + $0x1368] sm:$0xff] }
 0x33f   :  { %6010 = vmatpush2.bf16.msra.mxu1 %v10625_v40  ;;  %v10511_v40 = vld [vmem:[%s16158_s2 + $0x1388] sm:$0xff] }
 0x340   :  { %6011 = vmatprep.subr.bf16.mxu1 %v10618_v44  ;;  %v10447_v44 = vld [vmem:[%s16158_s2 + $0x1188] sm:$0xff]  ;;  %v10826_v19 = vcombine.high %v10507_v39, %v10511_v40  ;;  %v10825_v20 = vcombine.low %v10507_v39, %v10511_v40 }
 0x341   :  { %6035 = vmatpush1.bf16.msra.mxu0 %v10689_v47  ;;  %v5849_v47 = vsel %vm2649_vm0, %v10833_v46, 0  ;;  %v10762_v54 = vcombine.high %v10443_v43, %v10447_v44  ;;  %v10761_v31 = vcombine.low %v10443_v43, %v10447_v44  ;;  %v10403_v46 = vld [vmem:[%s16158_s2 + $0x1028] sm:$0xff] }
 0x342   :  { %6036 = vmatprep.subr.bf16.mxu0 %v10682_v51  ;;  %v10499_v51 = vld [vmem:[%s16158_s2 + $0x1328] sm:$0xff] }
 0x343   :  { %6012 = vmatpush2.bf16.msra.mxu1 %v10617_v52  ;;  %v10503_v52 = vld [vmem:[%s16158_s2 + $0x1348] sm:$0xff] }
 0x344   :  { %6013 = vmatprep.subr.bf16.mxu1 %v10610_v55  ;;  %v10435_v55 = vld [vmem:[%s16158_s2 + $0x1128] sm:$0xff]  ;;  %v10818_v60 = vcombine.high %v10499_v51, %v10503_v52  ;;  %v10817_v63 = vcombine.low %v10499_v51, %v10503_v52 }
 0x345   :  { %6037 = vmatpush1.bf16.msra.mxu0 %v10681_v57  ;;  %v10439_v57 = vld [vmem:[%s16158_s2 + $0x1148] sm:$0xff] }
 0x346   :  { %6038 = vmatprep.subr.bf16.mxu0 %v10674_v61  ;;  %v10491_v61 = vld [vmem:[%s16158_s2 + $0x12e8] sm:$0xff]  ;;  %v10754_v42 = vcombine.high %v10435_v55, %v10439_v57  ;;  %v10753_v48 = vcombine.low %v10435_v55, %v10439_v57 }
 0x347   :  { %6014 = vmatpush2.bf16.msra.mxu1 %v10609_v62  ;;  %v10495_v62 = vld [vmem:[%s16158_s2 + $0x1308] sm:$0xff] }
 0x348   :  { %6015 = vmatprep.subr.bf16.mxu1 %v10602_v11  ;;  %v10427_v11 = vld [vmem:[%s16158_s2 + $0x10e8] sm:$0xff]  ;;  %v10810_v34 = vcombine.high %v10491_v61, %v10495_v62  ;;  %v10809_v5 = vcombine.low %v10491_v61, %v10495_v62 }
 0x349   :  { %6039 = vmatpush1.bf16.msra.mxu0 %v10673_v14  ;;  %v10431_v14 = vld [vmem:[%s16158_s2 + $0x1108] sm:$0xff] }
 0x34a   :  { %6040 = vmatprep.subr.bf16.mxu0 %v10666_v3  ;;  %v10483_v3 = vld [vmem:[%s16158_s2 + $0x12a8] sm:$0xff]  ;;  %v10746_v17 = vcombine.high %v10427_v11, %v10431_v14  ;;  %v10745_v16 = vcombine.low %v10427_v11, %v10431_v14 }
 0x34b   :  { %6016 = vmatpush2.bf16.msra.mxu1 %v10601_v4  ;;  %v10487_v4 = vld [vmem:[%s16158_s2 + $0x12c8] sm:$0xff] }
 0x34c   :  { %6017 = vmatprep.subr.bf16.mxu1 %v10594_v6  ;;  %v10419_v6 = vld [vmem:[%s16158_s2 + $0x10a8] sm:$0xff]  ;;  %v10802_v18 = vcombine.high %v10483_v3, %v10487_v4  ;;  %v10801_v21 = vcombine.low %v10483_v3, %v10487_v4 }
 0x34d   :  { %6041 = vmatpush1.bf16.msra.mxu0 %v10665_v58  ;;  %v10423_v58 = vld [vmem:[%s16158_s2 + $0x10c8] sm:$0xff] }
 0x34e   :  { %6042 = vmatprep.subr.bf16.mxu0 %v10658_v1  ;;  %v10475_v1 = vld [vmem:[%s16158_s2 + $0x1268] sm:$0xff]  ;;  %v10738_v10 = vcombine.high %v10419_v6, %v10423_v58 }
 0x34f   :  { %6018 = vmatpush2.bf16.msra.mxu1 %v10593_v9  ;;  %v10479_v9 = vld [vmem:[%s16158_s2 + $0x1288] sm:$0xff] }
 0x350   :  { %6019 = vmatprep.subr.bf16.mxu1 %v10586_v22  ;;  %v10411_v22 = vld [vmem:[%s16158_s2 + $0x1068] sm:$0xff]  ;;  %v10794_v25 = vcombine.high %v10475_v1, %v10479_v9 }
 0x351   :  { %6043 = vmatpush1.bf16.msra.mxu0 %v10657_v23  ;;  %v10415_v23 = vld [vmem:[%s16158_s2 + $0x1088] sm:$0xff] }
 0x352   :  { %6044 = vmatprep.subr.bf16.mxu0 %v10650_v26  ;;  %v10737_v26 = vcombine.low %v10419_v6, %v10423_v58  ;;  %v10730_v30 = vcombine.high %v10411_v22, %v10415_v23  ;;  %v10729_v40 = vcombine.low %v10411_v22, %v10415_v23  ;;  %v10463_v43 = vld [vmem:[%s16158_s2 + $0x1208] sm:$0xff] }
 0x353   :  { %6020 = vmatpush2.bf16.msra.mxu1 %v10585_v28  ;;  %v10467_v28 = vld [vmem:[%s16158_s2 + $0x1228] sm:$0xff] }
 0x354   :  { %10841 = vmatprep.subr.msk.bf16.mxu1 %vm2649_vm0, %v10834_v37  ;;  %v10793_v37 = vcombine.low %v10475_v1, %v10479_v9  ;;  %v10786_v39 = vcombine.high %v10467_v28, %v10471_v29 }
 0x355   :  { %6045 = vmatpush1.bf16.msra.mxu0 %v10649_v38  ;;  %v10407_v38 = vld [vmem:[%s16158_s2 + $0x1048] sm:$0xff] }
 0x356   :  { %6022 = vmatmul.mubr.bf16.vlgmr.msra.gmra.mxu1 %v14017_v50  ;;  %6046 = vmatprep.subr.bf16.mxu0 %v10770_v2  ;;  %v10459_v2 = vld [vmem:[%s16158_s2 + $0x11e8] sm:$0xff]  ;;  %v10722_v44 = vcombine.high %v10403_v46, %v10407_v38  ;;  %v10721_v52 = vcombine.low %v10403_v46, %v10407_v38 }
 0x357   :  { %6072 = vmatpush1.bf16.msra.mxu1 %v5849_v47  ;;  %6103 = vmatprep.mubr.bf16.mxu1 %v12124_v12  ;;  %v10785_v47 = vcombine.low %v10467_v28, %v10471_v29  ;;  %v10778_v51 = vcombine.high %v10459_v2, %v10463_v43  ;;  %v10777_v57 = vcombine.low %v10459_v2, %v10463_v43 }
 0x358   :  { %6073 = vmatprep.subr.bf16.mxu1 %v10826_v19  ;;  %v10395_v19 = vld [vmem:[%s16158_s2 + $0xfe8] sm:$0xff] }
 0x359   :  { %6047 = vmatpush2.bf16.msra.mxu0 %v10769_v59  ;;  %v10399_v59 = vld [vmem:[%s16158_s2 + $0x1008] sm:$0xff] }
 0x35a   :  { %6048 = vmatprep.subr.bf16.mxu0 %v10762_v54  ;;  %v10388_v54 = vld [vmem:[%s16158_s2 + $0xfb0] sm:$0xff]  ;;  %v10714_v55 = vcombine.high %v10395_v19, %v10399_v59  ;;  %v10713_v62 = vcombine.low %v10395_v19, %v10399_v59 }
 0x35b   :  { %6074 = vmatpush1.bf16.msra.mxu1 %v10825_v20  ;;  %v10392_v20 = vld [vmem:[%s16158_s2 + $0xfd0] sm:$0xff] }
 0x35c   :  { %6075 = vmatprep.subr.bf16.mxu1 %v10818_v60  ;;  %v10260_v60 = vld [vmem:[%s16158_s2 + $0xbb0] sm:$0xff]  ;;  %v10708_v61 = vcombine.high %v10388_v54, %v10392_v20  ;;  %v10707_v14 = vcombine.low %v10388_v54, %v10392_v20 }
 0x35d   :  { %6049 = vmatpush2.bf16.msra.mxu0 %v10761_v31  ;;  %v10264_v31 = vld [vmem:[%s16158_s2 + $0xbd0] sm:$0xff] }
 0x35e   :  { %6050 = vmatprep.subr.bf16.mxu0 %v10754_v42  ;;  %v10380_v42 = vld [vmem:[%s16158_s2 + $0xf70] sm:$0xff]  ;;  %v10580_v11 = vcombine.high %v10260_v60, %v10264_v31  ;;  %v10579_v4 = vcombine.low %v10260_v60, %v10264_v31 }
 0x35f   :  { %6076 = vmatpush1.bf16.msra.mxu1 %v10817_v63  ;;  %v10384_v63 = vld [vmem:[%s16158_s2 + $0xf90] sm:$0xff] }
 0x360   :  { %6077 = vmatprep.subr.bf16.mxu1 %v10810_v34  ;;  %v10252_v34 = vld [vmem:[%s16158_s2 + $0xb70] sm:$0xff]  ;;  %v10700_v3 = vcombine.high %v10380_v42, %v10384_v63  ;;  %v10699_v58 = vcombine.low %v10380_v42, %v10384_v63 }
 0x361   :  { %6051 = vmatpush2.bf16.msra.mxu0 %v10753_v48  ;;  %v10256_v48 = vld [vmem:[%s16158_s2 + $0xb90] sm:$0xff] }
 0x362   :  { %6052 = vmatprep.subr.bf16.mxu0 %v10746_v17  ;;  %v10372_v17 = vld [vmem:[%s16158_s2 + $0xf30] sm:$0xff]  ;;  %v10572_v6 = vcombine.high %v10252_v34, %v10256_v48  ;;  %v10571_v9 = vcombine.low %v10252_v34, %v10256_v48 }
 0x363   :  { %6078 = vmatpush1.bf16.msra.mxu1 %v10809_v5  ;;  %v10376_v5 = vld [vmem:[%s16158_s2 + $0xf50] sm:$0xff] }
 0x364   :  { %6079 = vmatprep.subr.bf16.mxu1 %v10802_v18  ;;  %v10244_v18 = vld [vmem:[%s16158_s2 + $0xb30] sm:$0xff]  ;;  %v10692_v1 = vcombine.high %v10372_v17, %v10376_v5  ;;  %v10691_v23 = vcombine.low %v10372_v17, %v10376_v5 }
 0x365   :  { %6053 = vmatpush2.bf16.msra.mxu0 %v10745_v16  ;;  %v10248_v16 = vld [vmem:[%s16158_s2 + $0xb50] sm:$0xff] }
 0x366   :  { %6054 = vmatprep.subr.bf16.mxu0 %v10738_v10  ;;  %v10364_v10 = vld [vmem:[%s16158_s2 + $0xef0] sm:$0xff]  ;;  %v10564_v22 = vcombine.high %v10244_v18, %v10248_v16  ;;  %v10563_v29 = vcombine.low %v10244_v18, %v10248_v16 }
 0x367   :  { %6080 = vmatpush1.bf16.msra.mxu1 %v10801_v21  ;;  %v10368_v21 = vld [vmem:[%s16158_s2 + $0xf10] sm:$0xff] }
 0x368   :  { %6081 = vmatprep.subr.bf16.mxu1 %v10794_v25  ;;  %v10236_v25 = vld [vmem:[%s16158_s2 + $0xaf0] sm:$0xff]  ;;  %v10684_v28 = vcombine.high %v10364_v10, %v10368_v21  ;;  %v10683_v38 = vcombine.low %v10364_v10, %v10368_v21 }
 0x369   :  { %6055 = vmatpush2.bf16.msra.mxu0 %v10737_v26  ;;  %v10240_v26 = vld [vmem:[%s16158_s2 + $0xb10] sm:$0xff] }
 0x36a   :  { %6056 = vmatprep.subr.bf16.mxu0 %v10730_v30  ;;  %v10356_v30 = vld [vmem:[%s16158_s2 + $0xeb0] sm:$0xff]  ;;  %v10556_v46 = vcombine.high %v10236_v25, %v10240_v26  ;;  %v10555_v43 = vcombine.low %v10236_v25, %v10240_v26 }
 0x36b   :  { %6082 = vmatpush1.bf16.msra.mxu1 %v10793_v37  ;;  %v10360_v37 = vld [vmem:[%s16158_s2 + $0xed0] sm:$0xff] }
 0x36c   :  { %6083 = vmatprep.subr.bf16.mxu1 %v10786_v39  ;;  %v10228_v39 = vld [vmem:[%s16158_s2 + $0xab0] sm:$0xff]  ;;  %v10676_v2 = vcombine.high %v10356_v30, %v10360_v37  ;;  %v10675_v59 = vcombine.low %v10356_v30, %v10360_v37 }
 0x36d   :  { %6057 = vmatpush2.bf16.msra.mxu0 %v10729_v40  ;;  %v10232_v40 = vld [vmem:[%s16158_s2 + $0xad0] sm:$0xff] }
 0x36e   :  { %6058 = vmatprep.subr.bf16.mxu0 %v10722_v44  ;;  %v10348_v44 = vld [vmem:[%s16158_s2 + $0xe70] sm:$0xff]  ;;  %v10548_v19 = vcombine.high %v10228_v39, %v10232_v40  ;;  %v10547_v20 = vcombine.low %v10228_v39, %v10232_v40 }
 0x36f   :  { %6084 = vmatpush1.bf16.msra.mxu1 %v10785_v47  ;;  %v10352_v47 = vld [vmem:[%s16158_s2 + $0xe90] sm:$0xff] }
 0x370   :  { %6085 = vmatprep.subr.bf16.mxu1 %v10778_v51  ;;  %v10220_v51 = vld [vmem:[%s16158_s2 + $0xa70] sm:$0xff]  ;;  %v10668_v54 = vcombine.high %v10348_v44, %v10352_v47  ;;  %v10667_v31 = vcombine.low %v10348_v44, %v10352_v47 }
 0x371   :  { %6059 = vmatpush2.bf16.msra.mxu0 %v10721_v52  ;;  %v10224_v52 = vld [vmem:[%s16158_s2 + $0xa90] sm:$0xff] }
 0x372   :  { %6060 = vmatprep.subr.bf16.mxu0 %v10714_v55  ;;  %v10340_v55 = vld [vmem:[%s16158_s2 + $0xe30] sm:$0xff]  ;;  %v10540_v60 = vcombine.high %v10220_v51, %v10224_v52  ;;  %v10539_v63 = vcombine.low %v10220_v51, %v10224_v52 }
 0x373   :  { %6086 = vmatpush1.bf16.msra.mxu1 %v10777_v57  ;;  %v10344_v57 = vld [vmem:[%s16158_s2 + $0xe50] sm:$0xff] }
 0x374   :  { %6153 = vmatprep.subr.bf16.mxu1 %v10708_v61  ;;  %v10212_v61 = vld [vmem:[%s16158_s2 + $0xa30] sm:$0xff]  ;;  %v10660_v42 = vcombine.high %v10340_v55, %v10344_v57  ;;  %v10659_v48 = vcombine.low %v10340_v55, %v10344_v57 }
 0x375   :  { %6061 = vmatpush2.bf16.msra.mxu0 %v10713_v62  ;;  %v10216_v62 = vld [vmem:[%s16158_s2 + $0xa50] sm:$0xff] }
 0x376   :  { %10842 = vmatmul.mubr.msk.bf16.vlgmr.msra.gmra.mxu1 %vm2645_vm1, %v14133_v24  ;;  %6112 = vmatprep.subr.bf16.mxu0 %v10580_v11  ;;  %v10332_v11 = vld [vmem:[%s16158_s2 + $0xdf0] sm:$0xff]  ;;  %v10532_v34 = vcombine.high %v10212_v61, %v10216_v62  ;;  %v10531_v5 = vcombine.low %v10212_v61, %v10216_v62 }
 0x377   :  { %6154 = vmatpush1.bf16.msra.mxu1 %v10707_v14  ;;  %6185 = vmatprep.mubr.bf16.mxu1 %v14013_v49  ;;  %v10336_v14 = vld [vmem:[%s16158_s2 + $0xe10] sm:$0xff] }
 0x378   :  { %6063 = vmatmul.mubr.bf16.vlgmr.msra.gmra.mxu0 %v14002_v41  ;;  %6155 = vmatprep.subr.bf16.mxu1 %v10700_v3  ;;  %v10204_v3 = vld [vmem:[%s16158_s2 + $0x9f0] sm:$0xff]  ;;  %v10652_v17 = vcombine.high %v10332_v11, %v10336_v14  ;;  %v10651_v16 = vcombine.low %v10332_v11, %v10336_v14 }
 0x379   :  { %6113 = vmatpush1.bf16.msra.mxu0 %v10579_v4  ;;  %6144 = vmatprep.mubr.bf16.mxu0 %v14015_v27  ;;  %v10208_v4 = vld [vmem:[%s16158_s2 + $0xa10] sm:$0xff] }
 0x37a   :  { %6114 = vmatprep.subr.bf16.mxu0 %v10572_v6  ;;  %v10452_v6 = vld [vmem:[%s16158_s2 + $0x11b0] sm:$0xff]  ;;  %v10524_v18 = vcombine.high %v10204_v3, %v10208_v4  ;;  %v10523_v21 = vcombine.low %v10204_v3, %v10208_v4 }
 0x37b   :  { %6156 = vmatpush1.bf16.msra.mxu1 %v10699_v58  ;;  %v10456_v58 = vld [vmem:[%s16158_s2 + $0x11d0] sm:$0xff] }
 0x37c   :  { %6157 = vmatprep.subr.bf16.mxu1 %v10692_v1  ;;  %v10324_v1 = vld [vmem:[%s16158_s2 + $0xdb0] sm:$0xff]  ;;  %v10772_v10 = vcombine.high %v10452_v6, %v10456_v58  ;;  %v10771_v26 = vcombine.low %v10452_v6, %v10456_v58 }
 0x37d   :  { %6115 = vmatpush1.bf16.msra.mxu0 %v10571_v9  ;;  %v10328_v9 = vld [vmem:[%s16158_s2 + $0xdd0] sm:$0xff] }
 0x37e   :  { %6116 = vmatprep.subr.bf16.mxu0 %v10564_v22  ;;  %v10444_v22 = vld [vmem:[%s16158_s2 + $0x1170] sm:$0xff]  ;;  %v10644_v25 = vcombine.high %v10324_v1, %v10328_v9  ;;  %v10643_v37 = vcombine.low %v10324_v1, %v10328_v9 }
 0x37f   :  { %6158 = vmatpush1.bf16.msra.mxu1 %v10691_v23  ;;  %v10448_v23 = vld [vmem:[%s16158_s2 + $0x1190] sm:$0xff] }
 0x380   :  { %6159 = vmatprep.subr.bf16.mxu1 %v10684_v28  ;;  %v10316_v28 = vld [vmem:[%s16158_s2 + $0xd70] sm:$0xff]  ;;  %v10764_v30 = vcombine.high %v10444_v22, %v10448_v23  ;;  %v10763_v40 = vcombine.low %v10444_v22, %v10448_v23 }
 0x381   :  { %6117 = vmatpush1.bf16.msra.mxu0 %v10563_v29  ;;  %v10320_v29 = vld [vmem:[%s16158_s2 + $0xd90] sm:$0xff] }
 0x382   :  { %6118 = vmatprep.subr.bf16.mxu0 %v10556_v46  ;;  %v10436_v46 = vld [vmem:[%s16158_s2 + $0x1130] sm:$0xff]  ;;  %v10636_v39 = vcombine.high %v10316_v28, %v10320_v29  ;;  %v10635_v47 = vcombine.low %v10316_v28, %v10320_v29 }
 0x383   :  { %6160 = vmatpush1.bf16.msra.mxu1 %v10683_v38  ;;  %v10440_v38 = vld [vmem:[%s16158_s2 + $0x1150] sm:$0xff] }
 0x384   :  { %6161 = vmatprep.subr.bf16.mxu1 %v10676_v2  ;;  %v10308_v2 = vld [vmem:[%s16158_s2 + $0xd30] sm:$0xff]  ;;  %v10756_v44 = vcombine.high %v10436_v46, %v10440_v38  ;;  %v10755_v52 = vcombine.low %v10436_v46, %v10440_v38 }
 0x385   :  { %6119 = vmatpush1.bf16.msra.mxu0 %v10555_v43  ;;  %v10312_v43 = vld [vmem:[%s16158_s2 + $0xd50] sm:$0xff] }
 0x386   :  { %6120 = vmatprep.subr.bf16.mxu0 %v10548_v19  ;;  %v10428_v19 = vld [vmem:[%s16158_s2 + $0x10f0] sm:$0xff]  ;;  %v10628_v51 = vcombine.high %v10308_v2, %v10312_v43  ;;  %v10627_v57 = vcombine.low %v10308_v2, %v10312_v43 }
 0x387   :  { %6162 = vmatpush1.bf16.msra.mxu1 %v10675_v59  ;;  %v10432_v59 = vld [vmem:[%s16158_s2 + $0x1110] sm:$0xff] }
 0x388   :  { %6163 = vmatprep.subr.bf16.mxu1 %v10668_v54  ;;  %v10300_v54 = vld [vmem:[%s16158_s2 + $0xcf0] sm:$0xff]  ;;  %v10748_v55 = vcombine.high %v10428_v19, %v10432_v59  ;;  %v10747_v62 = vcombine.low %v10428_v19, %v10432_v59  ;;  %v10253_v59 = vld [vmem:[%s16158_s2 + $0xb78] sm:$0xff] }
 0x389   :  { %6121 = vmatpush1.bf16.msra.mxu0 %v10547_v20  ;;  %v10304_v20 = vld [vmem:[%s16158_s2 + $0xd10] sm:$0xff] }
 0x38a   :  { %6122 = vmatprep.subr.bf16.mxu0 %v10540_v60  ;;  %v10420_v60 = vld [vmem:[%s16158_s2 + $0x10b0] sm:$0xff]  ;;  %v10620_v61 = vcombine.high %v10300_v54, %v10304_v20  ;;  %v10619_v14 = vcombine.low %v10300_v54, %v10304_v20 }
 0x38b   :  { %6164 = vmatpush1.bf16.msra.mxu1 %v10667_v31  ;;  %v10424_v31 = vld [vmem:[%s16158_s2 + $0x10d0] sm:$0xff] }
 0x38c   :  { %6165 = vmatprep.subr.bf16.mxu1 %v10660_v42  ;;  %v10292_v42 = vld [vmem:[%s16158_s2 + $0xcb0] sm:$0xff]  ;;  %v10740_v11 = vcombine.high %v10420_v60, %v10424_v31  ;;  %v10739_v4 = vcombine.low %v10420_v60, %v10424_v31  ;;  %v10245_v31 = vld [vmem:[%s16158_s2 + $0xb38] sm:$0xff] }
 0x38d   :  { %6123 = vmatpush1.bf16.msra.mxu0 %v10539_v63  ;;  %v10296_v63 = vld [vmem:[%s16158_s2 + $0xcd0] sm:$0xff] }
 0x38e   :  { %6124 = vmatprep.subr.bf16.mxu0 %v10532_v34  ;;  %v10412_v34 = vld [vmem:[%s16158_s2 + $0x1070] sm:$0xff]  ;;  %v10612_v3 = vcombine.high %v10292_v42, %v10296_v63  ;;  %v10611_v58 = vcombine.low %v10292_v42, %v10296_v63 }
 0x38f   :  { %6166 = vmatpush1.bf16.msra.mxu1 %v10659_v48  ;;  %v10416_v48 = vld [vmem:[%s16158_s2 + $0x1090] sm:$0xff] }
 0x390   :  { %6167 = vmatprep.subr.bf16.mxu1 %v10652_v17  ;;  %v10284_v17 = vld [vmem:[%s16158_s2 + $0xc70] sm:$0xff]  ;;  %v10732_v6 = vcombine.high %v10412_v34, %v10416_v48  ;;  %v10731_v9 = vcombine.low %v10412_v34, %v10416_v48 }
 0x391   :  { %6125 = vmatpush1.bf16.msra.mxu0 %v10531_v5  ;;  %v10288_v5 = vld [vmem:[%s16158_s2 + $0xc90] sm:$0xff] }
 0x392   :  { %6126 = vmatprep.subr.bf16.mxu0 %v10524_v18  ;;  %v10404_v18 = vld [vmem:[%s16158_s2 + $0x1030] sm:$0xff]  ;;  %v10604_v1 = vcombine.high %v10284_v17, %v10288_v5  ;;  %v10603_v23 = vcombine.low %v10284_v17, %v10288_v5 }
 0x393   :  { %6168 = vmatpush1.bf16.msra.mxu1 %v10651_v16  ;;  %v10408_v16 = vld [vmem:[%s16158_s2 + $0x1050] sm:$0xff] }
 0x394   :  { %6169 = vmatprep.subr.bf16.mxu1 %v10772_v10  ;;  %v10276_v10 = vld [vmem:[%s16158_s2 + $0xc30] sm:$0xff]  ;;  %v10724_v22 = vcombine.high %v10404_v18, %v10408_v16  ;;  %v10723_v29 = vcombine.low %v10404_v18, %v10408_v16  ;;  %v10229_v16 = vld [vmem:[%s16158_s2 + $0xab8] sm:$0xff] }
 0x395   :  { %6127 = vmatpush1.bf16.msra.mxu0 %v10523_v21  ;;  %v10280_v21 = vld [vmem:[%s16158_s2 + $0xc50] sm:$0xff] }
 0x396   :  { %6128 = vmatprep.subr.bf16.mxu0 %v10644_v25  ;;  %v10396_v25 = vld [vmem:[%s16158_s2 + $0xff0] sm:$0xff]  ;;  %v10596_v28 = vcombine.high %v10276_v10, %v10280_v21  ;;  %v10595_v38 = vcombine.low %v10276_v10, %v10280_v21 }
 0x397   :  { %6170 = vmatpush2.bf16.msra.mxu1 %v10771_v26  ;;  %v10400_v26 = vld [vmem:[%s16158_s2 + $0x1010] sm:$0xff] }
 0x398   :  { %6171 = vmatprep.subr.bf16.mxu1 %v10764_v30  ;;  %v10268_v30 = vld [vmem:[%s16158_s2 + $0xbf0] sm:$0xff]  ;;  %v10716_v46 = vcombine.high %v10396_v25, %v10400_v26  ;;  %v10715_v43 = vcombine.low %v10396_v25, %v10400_v26  ;;  %v10221_v26 = vld [vmem:[%s16158_s2 + $0xa78] sm:$0xff] }
 0x399   :  { %6129 = vmatpush2.bf16.msra.mxu0 %v10643_v37  ;;  %v10272_v37 = vld [vmem:[%s16158_s2 + $0xc10] sm:$0xff] }
 0x39a   :  { %6130 = vmatprep.subr.bf16.mxu0 %v10636_v39  ;;  %v10261_v39 = vld [vmem:[%s16158_s2 + $0xbb8] sm:$0xff]  ;;  %v10588_v2 = vcombine.high %v10268_v30, %v10272_v37  ;;  %v10587_v19 = vcombine.low %v10268_v30, %v10272_v37  ;;  %v10492_v5 = vld [vmem:[%s16158_s2 + $0x12f0] sm:$0xff] }
 0x39b   :  { %6172 = vmatpush2.bf16.msra.mxu1 %v10763_v40  ;;  %v10265_v40 = vld [vmem:[%s16158_s2 + $0xbd8] sm:$0xff]  ;;  %v10484_v21 = vld [vmem:[%s16158_s2 + $0x12b0] sm:$0xff] }
 0x39c   :  { %6173 = vmatprep.subr.bf16.mxu1 %v10756_v44  ;;  %v10516_v44 = vld [vmem:[%s16158_s2 + $0x13b0] sm:$0x33]  ;;  %v10581_v20 = vcombine.low %v10261_v39, %v10265_v40 }
 0x39d   :  { %6131 = vmatpush2.bf16.msra.mxu0 %v10635_v47  ;;  %v10582_v47 = vcombine.high %v10261_v39, %v10265_v40  ;;  %v10835_v54 = vcombine.low %v10516_v44, %v10516_v44  ;;  %v10476_v37 = vld [vmem:[%s16158_s2 + $0x1270] sm:$0xff]  ;;  %v10213_v40 = vld [vmem:[%s16158_s2 + $0xa38] sm:$0xff] }
 0x39e   :  { %6132 = vmatprep.subr.bf16.mxu0 %v10628_v51  ;;  %v10257_v51 = vld [vmem:[%s16158_s2 + $0xb98] sm:$0xff] }
 0x39f   :  { %6174 = vmatpush2.bf16.msra.mxu1 %v10755_v52  ;;  %v10836_v52 = vcombine.high %v10516_v44, %v10516_v44  ;;  %v10574_v60 = vcombine.high %v10253_v59, %v10257_v51  ;;  %v10573_v63 = vcombine.low %v10253_v59, %v10257_v51 }
 0x3a0   :  { %6175 = vmatprep.subr.bf16.mxu1 %v10748_v55  ;;  %v10508_v55 = vld [vmem:[%s16158_s2 + $0x1370] sm:$0xff] }
 0x3a1   :  { %6133 = vmatpush2.bf16.msra.mxu0 %v10627_v57  ;;  %v10512_v57 = vld [vmem:[%s16158_s2 + $0x1390] sm:$0xff] }
 0x3a2   :  { %6134 = vmatprep.subr.bf16.mxu0 %v10620_v61  ;;  %v10249_v61 = vld [vmem:[%s16158_s2 + $0xb58] sm:$0xff]  ;;  %v10828_v42 = vcombine.high %v10508_v55, %v10512_v57  ;;  %v10827_v48 = vcombine.low %v10508_v55, %v10512_v57  ;;  %v10460_v57 = vld [vmem:[%s16158_s2 + $0x11f0] sm:$0xff] }
 0x3a3   :  { %6176 = vmatpush2.bf16.msra.mxu1 %v10747_v62  ;;  %v5855_v62 = vsel %vm2649_vm0, %v10835_v54, 0  ;;  %v10566_v34 = vcombine.high %v10245_v31, %v10249_v61  ;;  %v10565_v17 = vcombine.low %v10245_v31, %v10249_v61  ;;  %v10209_v54 = vld [vmem:[%s16158_s2 + $0xa18] sm:$0xff] }
 0x3a4   :  { %6177 = vmatprep.subr.bf16.mxu1 %v10740_v11  ;;  %v10500_v11 = vld [vmem:[%s16158_s2 + $0x1330] sm:$0xff] }
 0x3a5   :  { %6135 = vmatpush2.bf16.msra.mxu0 %v10619_v14  ;;  %v10504_v14 = vld [vmem:[%s16158_s2 + $0x1350] sm:$0xff] }
 0x3a6   :  { %6136 = vmatprep.subr.bf16.mxu0 %v10612_v3  ;;  %v10237_v3 = vld [vmem:[%s16158_s2 + $0xaf8] sm:$0xff]  ;;  %v10819_v18 = vcombine.low %v10500_v11, %v10504_v14 }
 0x3a7   :  { %6178 = vmatpush2.bf16.msra.mxu1 %v10739_v4  ;;  %v10820_v4 = vcombine.high %v10500_v11, %v10504_v14  ;;  %v10389_v14 = vld [vmem:[%s16158_s2 + $0xfb8] sm:$0xff] }
 0x3a8   :  { %6179 = vmatprep.subr.bf16.mxu1 %v10732_v6  ;;  %v10496_v6 = vld [vmem:[%s16158_s2 + $0x1310] sm:$0xff] }
 0x3a9   :  { %6137 = vmatpush2.bf16.msra.mxu0 %v10611_v58  ;;  %v10811_v25 = vcombine.low %v10492_v5, %v10496_v6 }
 0x3aa   :  { %6138 = vmatprep.subr.bf16.mxu0 %v10604_v1  ;;  %v10233_v1 = vld [vmem:[%s16158_s2 + $0xad8] sm:$0xff] }
 0x3ab   :  { %6180 = vmatpush2.bf16.msra.mxu1 %v10731_v9  ;;  %v10812_v9 = vcombine.high %v10492_v5, %v10496_v6  ;;  %v10549_v30 = vcombine.low %v10229_v16, %v10233_v1 }
 0x3ac   :  { %6181 = vmatprep.subr.bf16.mxu1 %v10724_v22  ;;  %v10488_v22 = vld [vmem:[%s16158_s2 + $0x12d0] sm:$0xff] }
 0x3ad   :  { %6139 = vmatpush2.bf16.msra.mxu0 %v10603_v23  ;;  %v10550_v23 = vcombine.high %v10229_v16, %v10233_v1  ;;  %v10803_v39 = vcombine.low %v10484_v21, %v10488_v22 }
 0x3ae   :  { %6140 = vmatprep.subr.bf16.mxu0 %v10596_v28  ;;  %v10225_v28 = vld [vmem:[%s16158_s2 + $0xa98] sm:$0xff] }
 0x3af   :  { %6182 = vmatpush2.bf16.msra.mxu1 %v10723_v29  ;;  %v10804_v29 = vcombine.high %v10484_v21, %v10488_v22  ;;  %v10541_v44 = vcombine.low %v10221_v26, %v10225_v28  ;;  %v10313_v21 = vld [vmem:[%s16158_s2 + $0xd58] sm:$0xff] }
 0x3b0   :  { %6183 = vmatprep.subr.bf16.mxu1 %v10716_v46  ;;  %v10480_v46 = vld [vmem:[%s16158_s2 + $0x1290] sm:$0xff] }
 0x3b1   :  { %6141 = vmatpush2.bf16.msra.mxu0 %v10595_v38  ;;  %v10542_v38 = vcombine.high %v10221_v26, %v10225_v28  ;;  %v10795_v51 = vcombine.low %v10476_v37, %v10480_v46 }
 0x3b2   :  { %6142 = vmatprep.subr.bf16.mxu0 %v10588_v2  ;;  %v10217_v2 = vld [vmem:[%s16158_s2 + $0xa58] sm:$0xff] }
 0x3b3   :  { %6184 = vmatpush2.bf16.msra.mxu1 %v10715_v43  ;;  %v10796_v43 = vcombine.high %v10476_v37, %v10480_v46  ;;  %v10534_v59 = vcombine.high %v10213_v40, %v10217_v2  ;;  %v10533_v55 = vcombine.low %v10213_v40, %v10217_v2  ;;  %v10301_v2 = vld [vmem:[%s16158_s2 + $0xcf8] sm:$0xff] }
 0x3b4   :  { %6235 = vmatprep.subr.bf16.mxu1 %v10582_v47  ;;  %v10468_v47 = vld [vmem:[%s16158_s2 + $0x1230] sm:$0xff] }
 0x3b5   :  { %6143 = vmatpush2.bf16.msra.mxu0 %v10587_v19  ;;  %v10472_v19 = vld [vmem:[%s16158_s2 + $0x1250] sm:$0xff] }
 0x3b6   :  { %6186 = vmatmul.mubr.bf16.vlgmr.msra.gmra.mxu1 %v14002_v41  ;;  %10843 = vmatprep.subr.msk.bf16.mxu0 %vm2649_vm0, %v10836_v52  ;;  %v10205_v52 = vld [vmem:[%s16158_s2 + $0x9f8] sm:$0xff]  ;;  %v10787_v61 = vcombine.low %v10468_v47, %v10472_v19 }
 0x3b7   :  { %6236 = vmatpush1.bf16.msra.mxu1 %v10581_v20  ;;  %6267 = vmatprep.mubr.bf16.mxu1 %v14015_v27  ;;  %v10241_v27 = vld [vmem:[%s16158_s2 + $0xb18] sm:$0xff]  ;;  %v10788_v20 = vcombine.high %v10468_v47, %v10472_v19  ;;  %v10526_v31 = vcombine.high %v10205_v52, %v10209_v54  ;;  %v10525_v11 = vcombine.low %v10205_v52, %v10209_v54 }
 0x3b8   :  { %6145 = vmatmul.mubr.bf16.vlgmr.msra.gmra.mxu0 %v14017_v50  ;;  %6237 = vmatprep.subr.bf16.mxu1 %v10574_v60  ;;  %v10558_v58 = vcombine.high %v10237_v3, %v10241_v27  ;;  %v10557_v10 = vcombine.low %v10237_v3, %v10241_v27  ;;  %v10464_v60 = vld [vmem:[%s16158_s2 + $0x1210] sm:$0xff]  ;;  %v14612_v27 = vld [vmem:[%s16160_s4 + $0x8] sm:$0xff]  ;;  %v10369_v54 = vld [vmem:[%s16158_s2 + $0xf18] sm:$0xff] }
 0x3b9   :  { %6195 = vmatpush1.bf16.msra.mxu0 %v5855_v62  ;;  %6226 = vmatprep.mubr.bf16.mxu0 %v12124_v12  ;;  %v10325_v62 = vld [vmem:[%s16158_s2 + $0xdb8] sm:$0xff]  ;;  %v10779_v3 = vcombine.low %v10460_v57, %v10464_v60  ;;  %v4222_v16 = vrot.slane %v14612_v27, %v12629_v32 }
 0x3ba   :  { %6196 = vmatprep.subr.bf16.mxu0 %v10828_v42  ;;  %v10329_v42 = vld [vmem:[%s16158_s2 + $0xdd8] sm:$0xff] }
 0x3bb   :  { %6238 = vmatpush1.bf16.msra.mxu1 %v10573_v63  ;;  %v10780_v63 = vcombine.high %v10460_v57, %v10464_v60  ;;  %v10645_v6 = vcombine.low %v10325_v62, %v10329_v42 }
 0x3bc   :  { %6239 = vmatprep.subr.bf16.mxu1 %v10566_v34  ;;  %v10393_v34 = vld [vmem:[%s16158_s2 + $0xfd8] sm:$0xff] }
 0x3bd   :  { %6197 = vmatpush1.bf16.msra.mxu0 %v10827_v48  ;;  %v10646_v48 = vcombine.high %v10325_v62, %v10329_v42  ;;  %v10710_v5 = vcombine.high %v10389_v14, %v10393_v34  ;;  %v10297_v62 = vld [vmem:[%s16158_s2 + $0xcd8] sm:$0xff] }
 0x3be   :  { %6198 = vmatprep.subr.bf16.mxu0 %v10820_v4  ;;  %v10317_v4 = vld [vmem:[%s16158_s2 + $0xd78] sm:$0xff] }
 0x3bf   :  { %6240 = vmatpush1.bf16.msra.mxu1 %v10565_v17  ;;  %v10321_v17 = vld [vmem:[%s16158_s2 + $0xd98] sm:$0xff] }
 0x3c0   :  { %6241 = vmatprep.subr.bf16.mxu1 %v10558_v58  ;;  %v10381_v58 = vld [vmem:[%s16158_s2 + $0xf78] sm:$0xff]  ;;  %v10638_v1 = vcombine.high %v10317_v4, %v10321_v17  ;;  %v10637_v28 = vcombine.low %v10317_v4, %v10321_v17 }
 0x3c1   :  { %6199 = vmatpush1.bf16.msra.mxu0 %v10819_v18  ;;  %v10385_v18 = vld [vmem:[%s16158_s2 + $0xf98] sm:$0xff] }
 0x3c2   :  { %6200 = vmatprep.subr.bf16.mxu0 %v10812_v9  ;;  %v10709_v9 = vcombine.low %v10389_v14, %v10393_v34  ;;  %v10701_v40 = vcombine.low %v10381_v58, %v10385_v18  ;;  %v10361_v14 = vld [vmem:[%s16158_s2 + $0xed8] sm:$0xff] }
 0x3c3   :  { %6242 = vmatpush1.bf16.msra.mxu1 %v10557_v10  ;;  %v10309_v10 = vld [vmem:[%s16158_s2 + $0xd38] sm:$0xff] }
 0x3c4   :  { %6243 = vmatprep.subr.bf16.mxu1 %v10550_v23  ;;  %v4226_v23 = vrot.slane %v14612_v27, %v12640_v35  ;;  %v10629_v52 = vcombine.low %v10309_v10, %v10313_v21  ;;  %v10289_v4 = vld [vmem:[%s16158_s2 + $0xc98] sm:$0xff] }
 0x3c5   :  { %6201 = vmatpush1.bf16.msra.mxu0 %v10811_v25  ;;  %v10702_v25 = vcombine.high %v10381_v58, %v10385_v18  ;;  %v10353_v58 = vld [vmem:[%s16158_s2 + $0xe98] sm:$0xff] }
 0x3c6   :  { %6202 = vmatprep.subr.bf16.mxu0 %v10804_v29  ;;  %v10373_v29 = vld [vmem:[%s16158_s2 + $0xf38] sm:$0xff] }
 0x3c7   :  { %6244 = vmatpush1.bf16.msra.mxu1 %v10549_v30  ;;  %v10377_v30 = vld [vmem:[%s16158_s2 + $0xf58] sm:$0xff] }
 0x3c8   :  { %6245 = vmatprep.subr.bf16.mxu1 %v10542_v38  ;;  %v10630_v38 = vcombine.high %v10309_v10, %v10313_v21  ;;  %v10694_v19 = vcombine.high %v10373_v29, %v10377_v30 }
 0x3c9   :  { %6203 = vmatpush1.bf16.msra.mxu0 %v10803_v39 }
 0x3ca   :  { %6204 = vmatprep.subr.bf16.mxu0 %v10796_v43  ;;  %v10305_v43 = vld [vmem:[%s16158_s2 + $0xd18] sm:$0xff] }
 0x3cb   :  { %6246 = vmatpush1.bf16.msra.mxu1 %v10541_v44 }
 0x3cc   :  { %6247 = vmatprep.subr.bf16.mxu1 %v10534_v59 }
 0x3cd   :  { %6205 = vmatpush1.bf16.msra.mxu0 %v10795_v51 }
 0x3ce   :  { %6206 = vmatprep.subr.bf16.mxu0 %v10788_v20 }
 0x3cf   :  { %6248 = vmatpush1.bf16.msra.mxu1 %v10533_v55  ;;  %v10622_v55 = vcombine.high %v10301_v2, %v10305_v43 }
 0x3d0   :  { %6249 = vmatprep.subr.bf16.mxu1 %v10526_v31  ;;  %v10693_v31 = vcombine.low %v10373_v29, %v10377_v30  ;;  %v10273_v29 = vld [vmem:[%s16158_s2 + $0xc18] sm:$0xff] }
 0x3d1   :  { %6207 = vmatpush1.bf16.msra.mxu0 %v10787_v61  ;;  %v10293_v61 = vld [vmem:[%s16158_s2 + $0xcb8] sm:$0xff] }
 0x3d2   :  { %6208 = vmatprep.subr.bf16.mxu0 %v10780_v63  ;;  %v10621_v63 = vcombine.low %v10301_v2, %v10305_v43  ;;  %v10614_v34 = vcombine.high %v10293_v61, %v10297_v62  ;;  %v10517_v2 = vld [vmem:[%s16158_s2 + $0x13b8] sm:$0x33] }
 0x3d3   :  { %6250 = vmatpush1.bf16.msra.mxu1 %v10525_v11  ;;  %v10357_v11 = vld [vmem:[%s16158_s2 + $0xeb8] sm:$0xff] }
 0x3d4   :  { %6251 = vmatprep.subr.bf16.mxu1 %v10646_v48  ;;  %v10678_v17 = vcombine.high %v10357_v11, %v10361_v14 }
 0x3d5   :  { %6209 = vmatpush1.bf16.msra.mxu0 %v10779_v3  ;;  %v10285_v3 = vld [vmem:[%s16158_s2 + $0xc78] sm:$0xff] }
 0x3d6   :  { %v5941_v22 = vpop.f32.mrf.mxu1  ;;  %6276 = vmatprep.subr.bf16.mxu0 %v10710_v5  ;;  %v10613_v5 = vcombine.low %v10293_v61, %v10297_v62  ;;  %v10606_v18 = vcombine.high %v10285_v3, %v10289_v4  ;;  %v10605_v21 = vcombine.low %v10285_v3, %v10289_v4  ;;  %v10441_v3 = vld [vmem:[%s16158_s2 + $0x1158] sm:$0xff] }
 0x3d7   :  { %6252 = vmatpush2.bf16.msra.mxu1 %v10645_v6  ;;  %v5900_v26 = vpop.f32.mrf.mxu0  ;;  %v10349_v6 = vld [vmem:[%s16158_s2 + $0xe78] sm:$0xff] }
 0x3d8   :  { %v5901_v37 = vadd.f32 %v5900_v26, %v4222_v16  ;;  %10844 = vmatmul.mubr.msk.bf16.vlgmr.msra.gmra.mxu0 %vm2645_vm1, %v14133_v24  ;;  %v5943_v46 = vpop.f32.mrf.mxu1  ;;  %6253 = vmatprep.subr.bf16.mxu1 %v10638_v1  ;;  %v10677_v16 = vcombine.low %v10357_v11, %v10361_v14  ;;  %v10277_v1 = vld [vmem:[%s16158_s2 + $0xc38] sm:$0xff]  ;;  %v10670_v10 = vcombine.high %v10349_v6, %v10353_v58 }
 0x3d9   :  { %6277 = vmatpush1.bf16.msra.mxu0 %v10709_v9  ;;  %6308 = vmatprep.mubr.bf16.mxu0 %v14013_v49  ;;  %v5902_v39 = vpop.f32.mrf.mxu0  ;;  %v10365_v49 = vld [vmem:[%s16158_s2 + $0xef8] sm:$0xff]  ;;  %v10669_v26 = vcombine.low %v10349_v6, %v10353_v58 }
 0x3da   :  { %v5903_v44 = vadd.f32 %v5902_v39, %v4226_v23  ;;  %v5945_v47 = vpop.f32.mrf.mxu1  ;;  %6278 = vmatprep.subr.bf16.mxu0 %v10702_v25  ;;  %v14651_v59 = vadd.f32 %v5941_v22, %v5901_v37  ;;  %v10686_v42 = vcombine.high %v10365_v49, %v10369_v54  ;;  %v10685_v48 = vcombine.low %v10365_v49, %v10369_v54  ;;  %v10281_v9 = vld [vmem:[%s16158_s2 + $0xc58] sm:$0xff] }
 0x3db   :  { %6254 = vmatpush2.bf16.msra.mxu1 %v10637_v28  ;;  %v5904_v51 = vpop.f32.mrf.mxu0  ;;  %v10341_v22 = vld [vmem:[%s16158_s2 + $0xe38] sm:$0xff]  ;;  %v10598_v25 = vcombine.high %v10277_v1, %v10281_v9  ;;  %v10597_v37 = vcombine.low %v10277_v1, %v10281_v9 }
 0x3dc   :  { %v5946_v20 = vpop.f32.mrf.mxu1  ;;  %6255 = vmatprep.subr.bf16.mxu1 %v10630_v38  ;;  %v14659_v57 = vadd.f32 %v5943_v46, %v5903_v44  ;;  %v10345_v23 = vld [vmem:[%s16158_s2 + $0xe58] sm:$0xff]  ;;  %v10838_v51 = vcombine.high %v10517_v2, %v10517_v2 }
 0x3dd   :  { %6279 = vmatpush1.bf16.msra.mxu0 %v10701_v40  ;;  %v5905_v60 = vpop.f32.mrf.mxu0  ;;  %v10269_v28 = vld [vmem:[%s16158_s2 + $0xbf8] sm:$0xff]  ;;  %v10662_v30 = vcombine.high %v10341_v22, %v10345_v23  ;;  %v10661_v40 = vcombine.low %v10341_v22, %v10345_v23 }
 0x3de   :  { %6280 = vmatprep.subr.bf16.mxu0 %v10694_v19  ;;  %v10333_v46 = vld [vmem:[%s16158_s2 + $0xdf8] sm:$0xff]  ;;  %v10590_v39 = vcombine.high %v10269_v28, %v10273_v29  ;;  %v10589_v44 = vcombine.low %v10269_v28, %v10273_v29 }
 0x3df   :  { %6256 = vmatpush2.bf16.msra.mxu1 %v10629_v52  ;;  %v10337_v38 = vld [vmem:[%s16158_s2 + $0xe18] sm:$0xff]  ;;  %v10837_v52 = vcombine.low %v10517_v2, %v10517_v2 }
 0x3e0   :  { %6257 = vmatprep.subr.bf16.mxu1 %v10622_v55  ;;  %v10654_v43 = vcombine.high %v10333_v46, %v10337_v38  ;;  %v10453_v47 = vld [vmem:[%s16158_s2 + $0x11b8] sm:$0xff]  ;;  %v10653_v49 = vcombine.low %v10333_v46, %v10337_v38 }
 0x3e1   :  { %6281 = vmatpush1.bf16.msra.mxu0 %v10693_v31  ;;  %v10457_v19 = vld [vmem:[%s16158_s2 + $0x11d8] sm:$0xff]  ;;  %v5861_v61 = vsel %vm2649_vm0, %v10837_v52, 0 }
 0x3e2   :  { %6282 = vmatprep.subr.bf16.mxu0 %v10686_v42  ;;  %v10509_v54 = vld [vmem:[%s16158_s2 + $0x1378] sm:$0xff]  ;;  %v10774_v55 = vcombine.high %v10453_v47, %v10457_v19  ;;  %v10773_v42 = vcombine.low %v10453_v47, %v10457_v19 }
 0x3e3   :  { %6258 = vmatpush2.bf16.msra.mxu1 %v10621_v63  ;;  %v10513_v20 = vld [vmem:[%s16158_s2 + $0x1398] sm:$0xff] }
 0x3e4   :  { %6259 = vmatprep.subr.bf16.mxu1 %v10614_v34  ;;  %v10445_v60 = vld [vmem:[%s16158_s2 + $0x1178] sm:$0xff]  ;;  %v10830_v62 = vcombine.high %v10509_v54, %v10513_v20  ;;  %v10829_v34 = vcombine.low %v10509_v54, %v10513_v20 }
 0x3e5   :  { %6283 = vmatpush1.bf16.msra.mxu0 %v10685_v48  ;;  %v10449_v31 = vld [vmem:[%s16158_s2 + $0x1198] sm:$0xff] }
 0x3e6   :  { %6284 = vmatprep.subr.bf16.mxu0 %v10678_v17  ;;  %v10501_v63 = vld [vmem:[%s16158_s2 + $0x1338] sm:$0xff]  ;;  %v10766_v14 = vcombine.high %v10445_v60, %v10449_v31 }
 0x3e7   :  { %6260 = vmatpush2.bf16.msra.mxu1 %v10613_v5  ;;  %v10505_v11 = vld [vmem:[%s16158_s2 + $0x1358] sm:$0xff] }
 0x3e8   :  { %6261 = vmatprep.subr.bf16.mxu1 %v10606_v18  ;;  %v10437_v48 = vld [vmem:[%s16158_s2 + $0x1138] sm:$0xff]  ;;  %v10822_v17 = vcombine.high %v10501_v63, %v10505_v11  ;;  %v10821_v9 = vcombine.low %v10501_v63, %v10505_v11 }
 0x3e9   :  { %6285 = vmatpush1.bf16.msra.mxu0 %v10677_v16  ;;  %v10493_v6 = vld [vmem:[%s16158_s2 + $0x12f8] sm:$0xff]  ;;  %v10758_v16 = vcombine.high %v10437_v48, %v10441_v3 }
 0x3ea   :  { %6286 = vmatprep.subr.bf16.mxu0 %v10670_v10  ;;  %v10497_v58 = vld [vmem:[%s16158_s2 + $0x1318] sm:$0xff] }
 0x3eb   :  { %6262 = vmatpush2.bf16.msra.mxu1 %v10605_v21  ;;  %v10433_v10 = vld [vmem:[%s16158_s2 + $0x1118] sm:$0xff]  ;;  %v10814_v22 = vcombine.high %v10493_v6, %v10497_v58  ;;  %v10813_v46 = vcombine.low %v10493_v6, %v10497_v58 }
 0x3ec   :  { %6263 = vmatprep.subr.bf16.mxu1 %v10598_v25  ;;  %v10489_v28 = vld [vmem:[%s16158_s2 + $0x12d8] sm:$0xff] }
 0x3ed   :  { %6287 = vmatpush1.bf16.msra.mxu0 %v10669_v26  ;;  %v10757_v26 = vcombine.low %v10437_v48, %v10441_v3  ;;  %v10421_v38 = vld [vmem:[%s16158_s2 + $0x10b8] sm:$0xff] }
 0x3ee   :  { %6288 = vmatprep.subr.bf16.mxu0 %v10662_v30  ;;  %v10417_v52 = vld [vmem:[%s16158_s2 + $0x1098] sm:$0xff] }
 0x3ef   :  { %6264 = vmatpush2.bf16.msra.mxu1 %v10597_v37  ;;  %v10469_v20 = vld [vmem:[%s16158_s2 + $0x1238] sm:$0xff] }
 0x3f0   :  { %6265 = vmatprep.subr.bf16.mxu1 %v10590_v39  ;;  %v10425_v39 = vld [vmem:[%s16158_s2 + $0x10d8] sm:$0xff] }
 0x3f1   :  { %6289 = vmatpush1.bf16.msra.mxu0 %v10661_v40  ;;  %v10742_v47 = vcombine.high %v10421_v38, %v10425_v39  ;;  %v10741_v54 = vcombine.low %v10421_v38, %v10425_v39  ;;  %v10461_v11 = vld [vmem:[%s16158_s2 + $0x11f8] sm:$0xff] }
 0x3f2   :  { %6290 = vmatprep.subr.bf16.mxu0 %v10654_v43  ;;  %v10477_v43 = vld [vmem:[%s16158_s2 + $0x1278] sm:$0xff] }
 0x3f3   :  { %6266 = vmatpush2.bf16.msra.mxu1 %v10589_v44  ;;  %v10481_v44 = vld [vmem:[%s16158_s2 + $0x1298] sm:$0xff] }
 0x3f4   :  { %10845 = vmatprep.subr.msk.bf16.mxu1 %vm2649_vm0, %v10838_v51  ;;  %v10413_v51 = vld [vmem:[%s16158_s2 + $0x1078] sm:$0xff] }
 0x3f5   :  { %6291 = vmatpush1.bf16.msra.mxu0 %v10653_v49  ;;  %v10798_v49 = vcombine.high %v10477_v43, %v10481_v44  ;;  %v10733_v63 = vcombine.low %v10413_v51, %v10417_v52  ;;  %v10397_v3 = vld [vmem:[%s16158_s2 + $0xff8] sm:$0xff] }
 0x3f6   :  { %6268 = vmatmul.mubr.bf16.vlgmr.msra.gmra.mxu1 %v14017_v50  ;;  %6292 = vmatprep.subr.bf16.mxu0 %v10774_v55  ;;  %v10765_v50 = vcombine.low %v10445_v60, %v10449_v31  ;;  %v10473_v55 = vld [vmem:[%s16158_s2 + $0x1258] sm:$0xff]  ;;  %v10734_v60 = vcombine.high %v10413_v51, %v10417_v52  ;;  %v10797_v31 = vcombine.low %v10477_v43, %v10481_v44  ;;  %v12004_v43 = vld [vmem:[%s16157_s1 + $0x580] ss:$20 sps:$4 sm:$0xff]  }
 0x3f7   :  { %6318 = vmatpush1.bf16.msra.mxu1 %v5861_v61  ;;  %6349 = vmatprep.mubr.bf16.mxu1 %v12124_v12  ;;  %v10405_v61 = vld [vmem:[%s16158_s2 + $0x1038] sm:$0xff]  ;;  %v10789_v48 = vcombine.low %v10469_v20, %v10473_v55  ;;  %v12018_v52 = vld [vmem:[%s16157_s1 + $0x534] ss:$20 sps:$4 sm:$0xff]  }
 0x3f8   :  { %v5982_v4 = vpop.f32.mrf.mxu0  ;;  %6319 = vmatprep.subr.bf16.mxu1 %v10830_v62  ;;  %v10409_v62 = vld [vmem:[%s16158_s2 + $0x1058] sm:$0xff] }
 0x3f9   :  { %v5983_v5 = vadd.f32 %v5982_v4, %v14651_v59  ;;  %6293 = vmatpush2.bf16.msra.mxu0 %v10773_v42  ;;  %v10429_v59 = vld [vmem:[%s16158_s2 + $0x10f8] sm:$0xff]  ;;  %v10790_v42 = vcombine.high %v10469_v20, %v10473_v55  ;;  %v12016_v20 = vld [vmem:[%s16157_s1 + $0x530] ss:$20 sps:$4 sm:$0xff]   ;;  %v12024_v55 = vld [vmem:[%s16157_s1 + $0x50c] ss:$20 sps:$4 sm:$0xff]  }
 0x3fa   :  { %v5984_v18 = vpop.f32.mrf.mxu0  ;;  %6294 = vmatprep.subr.bf16.mxu0 %v10766_v14  ;;  %v10750_v30 = vcombine.high %v10429_v59, %v10433_v10  ;;  %v10749_v2 = vcombine.low %v10429_v59, %v10433_v10  ;;  %v10465_v14 = vld [vmem:[%s16158_s2 + $0x1218] sm:$0xff] }
 0x3fb   :  { %v5985_v1 = vadd.f32 %v5984_v18, %v14659_v57  ;;  %6320 = vmatpush1.bf16.msra.mxu1 %v10829_v34  ;;  %v6358_v23 = vmax.f32 %v5983_v5, 0.0  ;;  %v10485_v57 = vld [vmem:[%s16158_s2 + $0x12b8] sm:$0xff]  ;;  %v10726_v34 = vcombine.high %v10405_v61, %v10409_v62  ;;  %v10725_v5 = vcombine.low %v10405_v61, %v10409_v62 }
 0x3fc   :  { %v5986_v21 = vpop.f32.mrf.mxu0  ;;  %6321 = vmatprep.subr.bf16.mxu1 %v10822_v17  ;;  %v10806_v40 = vcombine.high %v10485_v57, %v10489_v28  ;;  %v10805_v19 = vcombine.low %v10485_v57, %v10489_v28  ;;  %v10401_v4 = vld [vmem:[%s16158_s2 + $0x1018] sm:$0xff]  ;;  %v10782_v17 = vcombine.high %v10461_v11, %v10465_v14  ;;  %v10781_v6 = vcombine.low %v10461_v11, %v10465_v14  ;;  %v11997_v57 = vld [vmem:[%s16157_s1 + $0x5cc] ss:$20 sps:$4 sm:$0xff]  }
 0x3fd   :  { %v6359_v25 = vmax.f32 %v5985_v1, 0.0  ;;  %6295 = vmatpush2.bf16.msra.mxu0 %v10765_v50  ;;  %v10718_v50 = vcombine.high %v10397_v3, %v10401_v4  ;;  %v11982_v58 = vld [vmem:[%s16157_s1 + $0x624] ss:$20 sps:$4 sm:$0xff]   ;;  %v10717_v18 = vcombine.low %v10397_v3, %v10401_v4  ;;  %v11980_v1 = vld [vmem:[%s16157_s1 + $0x620] ss:$20 sps:$4 sm:$0xff]   ;;  %v4230_v11 = vrot.slane %v14612_v27, %v12632_v33 }
 0x3fe   :  { %v5987_v29 = vpop.f32.mrf.mxu0  ;;  %6296 = vmatprep.subr.bf16.mxu0 %v10758_v16  ;;  %v11985_v16 = vld [vmem:[%s16157_s1 + $0x61c] ss:$20 sps:$4 sm:$0xff]   ;;  %v11983_v59 = vld [vmem:[%s16157_s1 + $0x618] ss:$20 sps:$4 sm:$0xff]   ;;  %v11991_v21 = vld [vmem:[%s16157_s1 + $0x5f4] ss:$20 sps:$4 sm:$0xff]  }
 0x3ff   :  { %v14766_v37 = vcombine.low %v6358_v23, %v6359_v25  ;;  %6322 = vmatpush1.bf16.msra.mxu1 %v10821_v9  ;;  %v11988_v9 = vld [vmem:[%s16157_s1 + $0x5fc] ss:$20 sps:$4 sm:$0xff]   ;;  %v12000_v29 = vld [vmem:[%s16157_s1 + $0x5ac] ss:$20 sps:$4 sm:$0xff]   ;;  %v12006_v39 = vld [vmem:[%s16157_s1 + $0x584] ss:$20 sps:$4 sm:$0xff]  }
 0x400   :  { %6323 = vmatprep.subr.bf16.mxu1 %v10814_v22  ;;  %v11986_v22 = vld [vmem:[%s16157_s1 + $0x5f8] ss:$20 sps:$4 sm:$0xff]   ;;  %v11989_v25 = vld [vmem:[%s16157_s1 + $0x5f0] ss:$20 sps:$4 sm:$0xff]   ;;  %v11998_v38 = vld [vmem:[%s16157_s1 + $0x5a8] ss:$20 sps:$4 sm:$0xff]  }
 0x401   :  { %6297 = vmatpush2.bf16.msra.mxu0 %v10757_v26  ;;  %v12012_v44 = vld [vmem:[%s16157_s1 + $0x55c] ss:$20 sps:$4 sm:$0xff]   ;;  %v12010_v51 = vld [vmem:[%s16157_s1 + $0x558] ss:$20 sps:$4 sm:$0xff]   ;;  %v12028_v14 = vld [vmem:[%s16157_s1 + $0x760] ss:$20 sps:$4 sm:$0xff]  }
 0x402   :  { %6298 = vmatprep.subr.bf16.mxu0 %v10750_v30  ;;  %v11995_v30 = vld [vmem:[%s16157_s1 + $0x5c8] ss:$20 sps:$4 sm:$0xff]   ;;  %v12030_v62 = vld [vmem:[%s16157_s1 + $0x764] ss:$20 sps:$4 sm:$0xff]  }
 0x403   :  { %6324 = vmatpush1.bf16.msra.mxu1 %v10813_v46  ;;  %v12003_v46 = vld [vmem:[%s16157_s1 + $0x5a4] ss:$20 sps:$4 sm:$0xff]   ;;  %v12022_v61 = vld [vmem:[%s16157_s1 + $0x508] ss:$20 sps:$4 sm:$0xff]  }
 0x404   :  { %6325 = vmatprep.subr.bf16.mxu1 %v10806_v40  ;;  %v12001_v40 = vld [vmem:[%s16157_s1 + $0x5a0] ss:$20 sps:$4 sm:$0xff]   ;;  %v12031_v3 = vld [vmem:[%s16157_s1 + $0x758] ss:$20 sps:$4 sm:$0xff]  }
 0x405   :  { %6299 = vmatpush2.bf16.msra.mxu0 %v10749_v2  ;;  %v12009_v2 = vld [vmem:[%s16157_s1 + $0x57c] ss:$20 sps:$4 sm:$0xff]  }
 0x406   :  { %6300 = vmatprep.subr.bf16.mxu0 %v10742_v47  ;;  %v12007_v47 = vld [vmem:[%s16157_s1 + $0x578] ss:$20 sps:$4 sm:$0xff]  }
 0x407   :  { %6326 = vmatpush1.bf16.msra.mxu1 %v10805_v19  ;;  %v12015_v19 = vld [vmem:[%s16157_s1 + $0x554] ss:$20 sps:$4 sm:$0xff]  }
 0x408   :  { %6327 = vmatprep.subr.bf16.mxu1 %v10798_v49  ;;  %v12013_v49 = vld [vmem:[%s16157_s1 + $0x550] ss:$20 sps:$4 sm:$0xff]  }
 0x409   :  { %6301 = vmatpush2.bf16.msra.mxu0 %v10741_v54  ;;  %v12021_v54 = vld [vmem:[%s16157_s1 + $0x52c] ss:$20 sps:$4 sm:$0xff]  }
 0x40a   :  { %6302 = vmatprep.subr.bf16.mxu0 %v10734_v60  ;;  %v12019_v60 = vld [vmem:[%s16157_s1 + $0x528] ss:$20 sps:$4 sm:$0xff]  }
 0x40b   :  { %6328 = vmatpush1.bf16.msra.mxu1 %v10797_v31  ;;  %v12027_v31 = vld [vmem:[%s16157_s1 + $0x504] ss:$20 sps:$4 sm:$0xff]  }
 0x40c   :  { %6329 = vmatprep.subr.bf16.mxu1 %v10790_v42  ;;  %v12025_v42 = vld [vmem:[%s16157_s1 + $0x500] ss:$20 sps:$4 sm:$0xff]  }
 0x40d   :  { %6303 = vmatpush2.bf16.msra.mxu0 %v10733_v63  ;;  %v12033_v63 = vld [vmem:[%s16157_s1 + $0x75c] ss:$20 sps:$4 sm:$0xff]  }
 0x40e   :  { %6304 = vmatprep.subr.bf16.mxu0 %v10726_v34  ;;  %v12036_v34 = vld [vmem:[%s16157_s1 + $0x73c] ss:$20 sps:$4 sm:$0xff]  }
 0x40f   :  { %6330 = vmatpush1.bf16.msra.mxu1 %v10789_v48  ;;  %v4234_v48 = vrot.slane %v14612_v27, %v12643_v36 }
 0x410   :  { %6331 = vmatprep.subr.bf16.mxu1 %v10782_v17  ;;  %v12039_v17 = vld [vmem:[%s16157_s1 + $0x734] ss:$20 sps:$4 sm:$0xff]  }
 0x411   :  { %6305 = vmatpush2.bf16.msra.mxu0 %v10725_v5 }
 0x412   :  { %6306 = vmatprep.subr.bf16.mxu0 %v10718_v50  ;;  %v12034_v50 = vld [vmem:[%s16157_s1 + $0x738] ss:$20 sps:$4 sm:$0xff]  }
 0x413   :  { %6332 = vmatpush1.bf16.msra.mxu1 %v10781_v6 }
 0x414   :  { %6995 = vmatprep.subr.bf16.mxu1 %v11982_v58 }
 0x415   :  { %6307 = vmatpush2.bf16.msra.mxu0 %v10717_v18  ;;  %v12042_v18 = vld [vmem:[%s16157_s1 + $0x714] ss:$20 sps:$4 sm:$0xff]  }
 0x416   :  { %v14825_v10 = vpop.f32.mrf.mxu1  ;;  %10846 = vmatmul.mubr.msk.bf16.vlgmr.msra.gmra.mxu1 %vm2645_vm1, %v14133_v24  ;;  %6954 = vmatprep.subr.bf16.mxu0 %v11985_v16  ;;  %v11994_v24 = vld [vmem:[%s16157_s1 + $0x5d4] ss:$20 sps:$4 sm:$0xff]  }
 0x417   :  { %6996 = vmatpush1.bf16.msra.mxu1 %v11980_v1  ;;  %7027 = vmatprep.mubr.bf16.mxu1 %v12315_v53  ;;  %v6024_v5 = vadd.f32 %v14825_v10, %v4230_v11  ;;  %v12070_v11 = vld [vmem:[%s16157_s1 + $0x648] ss:$20 sps:$4 sm:$0xff]  }
 0x418   :  { %v14836_v23 = vpop.f32.mrf.mxu1  ;;  %6309 = vmatmul.mubr.bf16.vlgmr.msra.gmra.mxu0 %v14002_v41  ;;  %6997 = vmatprep.subr.bf16.mxu1 %v11988_v9  ;;  %v11992_v41 = vld [vmem:[%s16157_s1 + $0x5d0] ss:$20 sps:$4 sm:$0xff]  }
 0x419   :  { %6955 = vmatpush1.bf16.msra.mxu0 %v11983_v59  ;;  %6986 = vmatprep.mubr.bf16.mxu0 %v12315_v53  ;;  %v6026_v16 = vadd.f32 %v14836_v23, %v4234_v48  ;;  %v12037_v9 = vld [vmem:[%s16157_s1 + $0x730] ss:$20 sps:$4 sm:$0xff]   ;;  %v12077_v48 = vld [vmem:[%s16157_s1 + $0x628] ss:$20 sps:$4 sm:$0xff]  }
 0x41a   :  { %v6027_v26 = vpop.f32.mrf.mxu1  ;;  %6956 = vmatprep.subr.bf16.mxu0 %v11991_v21  ;;  %v12045_v21 = vld [vmem:[%s16157_s1 + $0x70c] ss:$20 sps:$4 sm:$0xff]   ;;  %v12040_v23 = vld [vmem:[%s16157_s1 + $0x710] ss:$20 sps:$4 sm:$0xff]  }
 0x41b   :  { %6998 = vmatpush1.bf16.msra.mxu1 %v11986_v22 }
 0x41c   :  { %v6028_v28 = vpop.f32.mrf.mxu1  ;;  %6999 = vmatprep.subr.bf16.mxu1 %v11994_v24 }
 0x41d   :  { %6957 = vmatpush1.bf16.msra.mxu0 %v11989_v25  ;;  %v12043_v28 = vld [vmem:[%s16157_s1 + $0x708] ss:$20 sps:$4 sm:$0xff]  }
 0x41e   :  { %6958 = vmatprep.subr.bf16.mxu0 %v11997_v57  ;;  %v12048_v57 = vld [vmem:[%s16157_s1 + $0x6ec] ss:$20 sps:$4 sm:$0xff]  }
 0x41f   :  { %7000 = vmatpush1.bf16.msra.mxu1 %v11992_v41 }
 0x420   :  { %7001 = vmatprep.subr.bf16.mxu1 %v12000_v29 }
 0x421   :  { %6959 = vmatpush1.bf16.msra.mxu0 %v11995_v30  ;;  %v12051_v30 = vld [vmem:[%s16157_s1 + $0x6e4] ss:$20 sps:$4 sm:$0xff]  }
 0x422   :  { %6960 = vmatprep.subr.bf16.mxu0 %v12003_v46 }
 0x423   :  { %7002 = vmatpush1.bf16.msra.mxu1 %v11998_v38 }
 0x424   :  { %7003 = vmatprep.subr.bf16.mxu1 %v12006_v39  ;;  %v12046_v39 = vld [vmem:[%s16157_s1 + $0x6e8] ss:$20 sps:$4 sm:$0xff]  }
 0x425   :  { %6961 = vmatpush1.bf16.msra.mxu0 %v12001_v40  ;;  %v12054_v40 = vld [vmem:[%s16157_s1 + $0x6c4] ss:$20 sps:$4 sm:$0xff]  }
 0x426   :  { %6962 = vmatprep.subr.bf16.mxu0 %v12009_v2 }
 0x427   :  { %7004 = vmatpush1.bf16.msra.mxu1 %v12004_v43  ;;  %v12049_v43 = vld [vmem:[%s16157_s1 + $0x6e0] ss:$20 sps:$4 sm:$0xff]  }
 0x428   :  { %7005 = vmatprep.subr.bf16.mxu1 %v12012_v44  ;;  %v12057_v44 = vld [vmem:[%s16157_s1 + $0x6bc] ss:$20 sps:$4 sm:$0xff]  }
 0x429   :  { %6963 = vmatpush1.bf16.msra.mxu0 %v12007_v47  ;;  %v6382_v47 = vrot.slane %v14766_v37, %v13623_v0  ;;  %v12063_v37 = vld [vmem:[%s16157_s1 + $0x694] ss:$20 sps:$4 sm:$0xff]  }
 0x42a   :  { %6964 = vmatprep.subr.bf16.mxu0 %v12015_v19 }
 0x42b   :  { %7006 = vmatpush1.bf16.msra.mxu1 %v12010_v51  ;;  %v12052_v51 = vld [vmem:[%s16157_s1 + $0x6c0] ss:$20 sps:$4 sm:$0xff]  }
 0x42c   :  { %7007 = vmatprep.subr.bf16.mxu1 %v12018_v52  ;;  %v12060_v52 = vld [vmem:[%s16157_s1 + $0x69c] ss:$20 sps:$4 sm:$0xff]  }
 0x42d   :  { %6965 = vmatpush1.bf16.msra.mxu0 %v12013_v49 }
 0x42e   :  { %6966 = vmatprep.subr.bf16.mxu0 %v12021_v54  ;;  %v12055_v54 = vld [vmem:[%s16157_s1 + $0x6b8] ss:$20 sps:$4 sm:$0xff]  }
 0x42f   :  { %7008 = vmatpush1.bf16.msra.mxu1 %v12016_v20  ;;  %v12058_v20 = vld [vmem:[%s16157_s1 + $0x698] ss:$20 sps:$4 sm:$0xff]  }
 0x430   :  { %7009 = vmatprep.subr.bf16.mxu1 %v12024_v55  ;;  %v12066_v55 = vld [vmem:[%s16157_s1 + $0x674] ss:$20 sps:$4 sm:$0xff]  }
 0x431   :  { %6967 = vmatpush1.bf16.msra.mxu0 %v12019_v60  ;;  %v12061_v60 = vld [vmem:[%s16157_s1 + $0x690] ss:$20 sps:$4 sm:$0xff]  }
 0x432   :  { %6968 = vmatprep.subr.bf16.mxu0 %v12027_v31  ;;  %v12069_v31 = vld [vmem:[%s16157_s1 + $0x66c] ss:$20 sps:$4 sm:$0xff]  }
 0x433   :  { %7010 = vmatpush1.bf16.msra.mxu1 %v12022_v61  ;;  %v12064_v61 = vld [vmem:[%s16157_s1 + $0x670] ss:$20 sps:$4 sm:$0xff]  }
 0x434   :  { %7011 = vmatprep.subr.bf16.mxu1 %v12030_v62  ;;  %v12072_v62 = vld [vmem:[%s16157_s1 + $0x64c] ss:$20 sps:$4 sm:$0xff]  }
 0x435   :  { %6969 = vmatpush1.bf16.msra.mxu0 %v12025_v42  ;;  %v12067_v42 = vld [vmem:[%s16157_s1 + $0x668] ss:$20 sps:$4 sm:$0xff]  }
 0x436   :  { %v6105_v4 = vpop.f32.mrf.mxu1  ;;  %6970 = vmatprep.subr.bf16.mxu0 %v12033_v63  ;;  %v12075_v63 = vld [vmem:[%s16157_s1 + $0x644] ss:$20 sps:$4 sm:$0xff]  }
 0x437   :  { %7012 = vmatpush2.bf16.msra.mxu1 %v12028_v14  ;;  %v12073_v14 = vld [vmem:[%s16157_s1 + $0x640] ss:$20 sps:$4 sm:$0xff]  }
 0x438   :  { %v6064_v6 = vpop.f32.mrf.mxu0  ;;  %v6107_v58 = vpop.f32.mrf.mxu1  ;;  %7013 = vmatprep.subr.bf16.mxu1 %v12036_v34  ;;  %v12076_v34 = vld [vmem:[%s16157_s1 + $0x768] ss:$20 sps:$4 sm:$0xff]  }
 0x439   :  { %v6065_v1 = vadd.f32 %v6064_v6, %v6024_v5  ;;  %6971 = vmatpush2.bf16.msra.mxu0 %v12031_v3  ;;  %v12078_v3 = vld [vmem:[%s16157_s1 + $0x740] ss:$20 sps:$4 sm:$0xff]   ;;  %v12081_v5 = vld [vmem:[%s16157_s1 + $0x5d8] ss:$20 sps:$4 sm:$0xff]  }
 0x43a   :  { %v6066_v59 = vpop.f32.mrf.mxu0  ;;  %v6109_v10 = vpop.f32.mrf.mxu1  ;;  %6972 = vmatprep.subr.bf16.mxu0 %v12039_v17  ;;  %v12080_v17 = vld [vmem:[%s16157_s1 + $0x718] ss:$20 sps:$4 sm:$0xff]   ;;  %v11080_v6 = vld [vmem:[%s16158_s2 + $0x1580] sm:$0xff] }
 0x43b   :  { %v6106_v22 = vadd.f32 %v6105_v4, %v6065_v1  ;;  %v6067_v24 = vadd.f32 %v6066_v59, %v6026_v16  ;;  %7014 = vmatpush2.bf16.msra.mxu1 %v12034_v50  ;;  %v12079_v4 = vld [vmem:[%s16157_s1 + $0x600] ss:$20 sps:$4 sm:$0xff]   ;;  %v12082_v50 = vld [vmem:[%s16157_s1 + $0x6f0] ss:$20 sps:$4 sm:$0xff]   ;;  %v12084_v1 = vld [vmem:[%s16157_s1 + $0x6c8] ss:$20 sps:$4 sm:$0xff]  }
 0x43c   :  { %v6068_v25 = vpop.f32.mrf.mxu0  ;;  %v6110_v26 = vpop.f32.mrf.mxu1  ;;  %7015 = vmatprep.subr.bf16.mxu1 %v12042_v18  ;;  %v12083_v18 = vld [vmem:[%s16157_s1 + $0x5b0] ss:$20 sps:$4 sm:$0xff]  }
 0x43d   :  { %v6108_v41 = vadd.f32 %v6107_v58, %v6067_v24  ;;  %6973 = vmatpush2.bf16.msra.mxu0 %v12037_v9  ;;  %v6360_v46 = vmax.f32 %v6106_v22, 0.0  ;;  %v11072_v9 = vld [vmem:[%s16158_s2 + $0x1540] sm:$0xff] }
 0x43e   :  { %v6069_v29 = vpop.f32.mrf.mxu0  ;;  %6974 = vmatprep.subr.bf16.mxu0 %v12045_v21  ;;  %v11076_v59 = vld [vmem:[%s16158_s2 + $0x1560] sm:$0xff]  ;;  %v12085_v21 = vld [vmem:[%s16157_s1 + $0x588] ss:$20 sps:$4 sm:$0xff]  }
 0x43f   :  { %v6361_v38 = vmax.f32 %v6108_v41, 0.0  ;;  %7016 = vmatpush2.bf16.msra.mxu1 %v12040_v23  ;;  %v11390_v10 = vcombine.high %v11072_v9, %v11076_v59  ;;  %v11389_v22 = vcombine.low %v11072_v9, %v11076_v59  ;;  %v12086_v24 = vld [vmem:[%s16157_s1 + $0x6a0] ss:$20 sps:$4 sm:$0xff]  }
 0x440   :  { %7017 = vmatprep.subr.bf16.mxu1 %v12048_v57  ;;  %v11064_v23 = vld [vmem:[%s16158_s2 + $0x1500] sm:$0xff] }
 0x441   :  { %v6375_v2 = vcombine.low %v6360_v46, %v6361_v38  ;;  %6975 = vmatpush2.bf16.msra.mxu0 %v12043_v28  ;;  %v11068_v25 = vld [vmem:[%s16158_s2 + $0x1520] sm:$0xff]  ;;  %v12088_v38 = vld [vmem:[%s16157_s1 + $0x678] ss:$20 sps:$4 sm:$0xff]  }
 0x442   :  { %6976 = vmatprep.subr.bf16.mxu0 %v12051_v30  ;;  %v11381_v26 = vcombine.low %v11064_v23, %v11068_v25  ;;  %v11382_v57 = vcombine.high %v11064_v23, %v11068_v25  ;;  %v11056_v41 = vld [vmem:[%s16158_s2 + $0x14c0] sm:$0xff] }
 0x443   :  { %v6389_v19 = vrot.slane %v6375_v2, %v13623_v0  ;;  %7018 = vmatpush2.bf16.msra.mxu1 %v12046_v39  ;;  %v11060_v28 = vld [vmem:[%s16158_s2 + $0x14e0] sm:$0xff] }
 0x444   :  { %7019 = vmatprep.subr.bf16.mxu1 %v12054_v40  ;;  %v12087_v29 = vld [vmem:[%s16157_s1 + $0x560] ss:$20 sps:$4 sm:$0xff]   ;;  %v11374_v30 = vcombine.high %v11056_v41, %v11060_v28  ;;  %v11373_v40 = vcombine.low %v11056_v41, %v11060_v28 }
 0x445   :  { %v6390_v49 = vcombine.low %v6382_v47, %v6389_v19  ;;  %6977 = vmatpush2.bf16.msra.mxu0 %v12049_v43  ;;  %v11048_v46 = vld [vmem:[%s16158_s2 + $0x1480] sm:$0xff]  ;;  %v12089_v43 = vld [vmem:[%s16157_s1 + $0x538] ss:$20 sps:$4 sm:$0xff]  }
 0x446   :  { %6978 = vmatprep.subr.bf16.mxu0 %v12057_v44  ;;  %v11052_v39 = vld [vmem:[%s16158_s2 + $0x14a0] sm:$0xff] }
 0x447   :  { %6411 = vst [vmem:[#allocation2 + $0x10] sm:$0xff] %v6390_v49  ;;  %7020 = vmatpush2.bf16.msra.mxu1 %v12052_v51  ;;  %v11366_v2 = vcombine.high %v11048_v46, %v11052_v39  ;;  %v11040_v44 = vld [vmem:[%s16158_s2 + $0x1440] sm:$0xff]  ;;  %v11365_v49 = vcombine.low %v11048_v46, %v11052_v39 }
 0x448   :  { %7021 = vmatprep.subr.bf16.mxu1 %v12060_v52  ;;  %v11044_v47 = vld [vmem:[%s16158_s2 + $0x1460] sm:$0xff] }
 0x449   :  { %6979 = vmatpush2.bf16.msra.mxu0 %v12055_v54  ;;  %v12090_v19 = vld [vmem:[%s16157_s1 + $0x650] ss:$20 sps:$4 sm:$0xff]   ;;  %v11358_v54 = vcombine.high %v11040_v44, %v11044_v47 }
 0x44a   :  { %6980 = vmatprep.subr.bf16.mxu0 %v12063_v37  ;;  %v11208_v51 = vld [vmem:[%s16158_s2 + $0x1980] sm:$0xff] }
 0x44b   :  { %7022 = vmatpush2.bf16.msra.mxu1 %v12058_v20  ;;  %v11212_v52 = vld [vmem:[%s16158_s2 + $0x19a0] sm:$0xff] }
 0x44c   :  { %7023 = vmatprep.subr.bf16.mxu1 %v12066_v55  ;;  %v12091_v37 = vld [vmem:[%s16157_s1 + $0x510] ss:$20 sps:$4 sm:$0xff]  }
 0x44d   :  { %6981 = vmatpush2.bf16.msra.mxu0 %v12061_v60  ;;  %v11032_v20 = vld [vmem:[%s16158_s2 + $0x1400] sm:$0xff]  ;;  %v11526_v60 = vcombine.high %v11208_v51, %v11212_v52 }
 0x44e   :  { %6982 = vmatprep.subr.bf16.mxu0 %v12069_v31  ;;  %v11036_v55 = vld [vmem:[%s16158_s2 + $0x1420] sm:$0xff] }
 0x44f   :  { %7024 = vmatpush2.bf16.msra.mxu1 %v12064_v61  ;;  %v11200_v31 = vld [vmem:[%s16158_s2 + $0x1940] sm:$0xff] }
 0x450   :  { %7025 = vmatprep.subr.bf16.mxu1 %v12072_v62  ;;  %v11204_v61 = vld [vmem:[%s16158_s2 + $0x1960] sm:$0xff]  ;;  %v11357_v62 = vcombine.low %v11040_v44, %v11044_v47 }
 0x451   :  { %6983 = vmatpush2.bf16.msra.mxu0 %v12067_v42  ;;  %v11350_v42 = vcombine.high %v11032_v20, %v11036_v55  ;;  %v11176_v39 = vld [vmem:[%s16158_s2 + $0x1880] sm:$0xff] }
 0x452   :  { %6984 = vmatprep.subr.bf16.mxu0 %v12075_v63  ;;  %v4238_v63 = vrot.slane %v14612_v27, %v12749_v56  ;;  %v11128_v47 = vld [vmem:[%s16158_s2 + $0x1700] sm:$0xff] }
 0x453   :  { %7026 = vmatpush2.bf16.msra.mxu1 %v12070_v11  ;;  %v11525_v11 = vcombine.low %v11208_v51, %v11212_v52  ;;  %v11168_v52 = vld [vmem:[%s16158_s2 + $0x1840] sm:$0xff] }
 0x455   :  { %6985 = vmatpush2.bf16.msra.mxu0 %v12073_v14  ;;  %v11024_v14 = vld [vmem:[%s16158_s2 + $0x13c0] sm:$0xff] }
 0x456   :  { %7028 = vmatmul.mubr.bf16.vlgmr.msra.gmra.mxu1 %v12367_v7  ;;  %11713 = vmatprep.subr.bf16.mxu0 %v12076_v34  ;;  %v11028_v34 = vld [vmem:[%s16158_s2 + $0x13e0] sm:$0xff] }
 0x457   :  { %v11341_v23 = vcombine.low %v11024_v14, %v11028_v34 }
 0x458   :  { %6987 = vmatmul.mubr.bf16.vlgmr.msra.gmra.mxu0 %v12367_v7 }
 0x459   :  { %11714 = vmatpush3.bf16.msra.mxu0 %v12077_v48  ;;  %7068 = vmatprep.mubr.bf16.mxu0 %v12315_v53  ;;  %v11084_v53 = vld [vmem:[%s16158_s2 + $0x15a0] sm:$0xff] }
 0x45a   :  { %11715 = vmatprep.subr.bf16.mxu0 %v12078_v3  ;;  %v11398_v58 = vcombine.high %v11080_v6, %v11084_v53  ;;  %v11397_v16 = vcombine.low %v11080_v6, %v11084_v53  ;;  %v11518_v3 = vcombine.high %v11200_v31, %v11204_v61 }
 0x45c   :  { %9053 = vmatprep.subr.bf16.mxu1 %v11398_v58  ;;  %v11342_v58 = vcombine.high %v11024_v14, %v11028_v34  ;;  %v11112_v14 = vld [vmem:[%s16158_s2 + $0x1680] sm:$0xff] }
 0x45d   :  { %11716 = vmatpush3.bf16.msra.mxu0 %v12079_v4  ;;  %9054 = vmatpush1.bf16.msra.mxu1 %v11397_v16  ;;  %v4242_v4 = vrot.slane %v14612_v27, %v13782_v13  ;;  %v11517_v16 = vcombine.low %v11200_v31, %v11204_v61  ;;  %v11144_v27 = vld [vmem:[%s16158_s2 + $0x1780] sm:$0xff] }
 0x45e   :  { %11717 = vmatprep.subr.bf16.mxu0 %v12080_v17  ;;  %9055 = vmatprep.subr.bf16.mxu1 %v11390_v10  ;;  %v11192_v17 = vld [vmem:[%s16158_s2 + $0x1900] sm:$0xff] }
 0x45f   :  { %v11160_v61 = vld [vmem:[%s16158_s2 + $0x1800] sm:$0xff] }
 0x460   :  { %v11116_v34 = vld [vmem:[%s16158_s2 + $0x16a0] sm:$0xff] }
 0x461   :  { %11718 = vmatpush3.bf16.msra.mxu0 %v12081_v5  ;;  %9056 = vmatpush1.bf16.msra.mxu1 %v11389_v22  ;;  %v11196_v5 = vld [vmem:[%s16158_s2 + $0x1920] sm:$0xff] }
 0x462   :  { %11719 = vmatprep.subr.bf16.mxu0 %v12082_v50  ;;  %9057 = vmatprep.subr.bf16.mxu1 %v11382_v57  ;;  %v11349_v50 = vcombine.low %v11032_v20, %v11036_v55  ;;  %v11510_v10 = vcombine.high %v11192_v17, %v11196_v5  ;;  %v11509_v28 = vcombine.low %v11192_v17, %v11196_v5  ;;  %v11120_v55 = vld [vmem:[%s16158_s2 + $0x16c0] sm:$0xff] }
 0x463   :  { %v11430_v5 = vcombine.high %v11112_v14, %v11116_v34 }
 0x465   :  { %11720 = vmatpush3.bf16.msra.mxu0 %v12083_v18  ;;  %9058 = vmatpush1.bf16.msra.mxu1 %v11381_v26 }
 0x466   :  { %11721 = vmatprep.subr.bf16.mxu0 %v12084_v1  ;;  %9059 = vmatprep.subr.bf16.mxu1 %v11374_v30  ;;  %v11148_v1 = vld [vmem:[%s16158_s2 + $0x17a0] sm:$0xff] }
 0x467   :  { %v11462_v57 = vcombine.high %v11144_v27, %v11148_v1  ;;  %v11140_v30 = vld [vmem:[%s16158_s2 + $0x1760] sm:$0xff] }
 0x469   :  { %11722 = vmatpush3.bf16.msra.mxu0 %v12085_v21  ;;  %9060 = vmatpush1.bf16.msra.mxu1 %v11373_v40  ;;  %v11180_v40 = vld [vmem:[%s16158_s2 + $0x18a0] sm:$0xff] }
 0x46a   :  { %11723 = vmatprep.subr.bf16.mxu0 %v12086_v24  ;;  %9061 = vmatprep.subr.bf16.mxu1 %v11366_v2  ;;  %v11188_v24 = vld [vmem:[%s16158_s2 + $0x18e0] sm:$0xff]  ;;  %v11461_v2 = vcombine.low %v11144_v27, %v11148_v1  ;;  %v11494_v51 = vcombine.high %v11176_v39, %v11180_v40  ;;  %v11493_v20 = vcombine.low %v11176_v39, %v11180_v40 }
 0x46b   :  { %v11264_v1 = vld [vmem:[%s16158_s2 + $0x1b40] sm:$0xff] }
 0x46d   :  { %11724 = vmatpush3.bf16.msra.mxu0 %v12087_v29  ;;  %9062 = vmatpush1.bf16.msra.mxu1 %v11365_v49  ;;  %v11136_v29 = vld [vmem:[%s16158_s2 + $0x1740] sm:$0xff] }
 0x46e   :  { %11725 = vmatprep.subr.bf16.mxu0 %v12088_v38  ;;  %9063 = vmatprep.subr.bf16.mxu1 %v11358_v54  ;;  %v11172_v49 = vld [vmem:[%s16158_s2 + $0x1860] sm:$0xff]  ;;  %v11453_v54 = vcombine.low %v11136_v29, %v11140_v30 }
 0x46f   :  { %v11486_v31 = vcombine.high %v11168_v52, %v11172_v49 }
 0x471   :  { %11726 = vmatpush3.bf16.msra.mxu0 %v12089_v43  ;;  %9064 = vmatpush1.bf16.msra.mxu1 %v11357_v62  ;;  %v11454_v43 = vcombine.high %v11136_v29, %v11140_v30  ;;  %v11164_v62 = vld [vmem:[%s16158_s2 + $0x1820] sm:$0xff] }
 0x472   :  { %11727 = vmatprep.subr.bf16.mxu0 %v12090_v19  ;;  %9065 = vmatprep.subr.bf16.mxu1 %v11350_v42  ;;  %v11132_v19 = vld [vmem:[%s16158_s2 + $0x1720] sm:$0xff] }
 0x473   :  { %v11445_v42 = vcombine.low %v11128_v47, %v11132_v19 }
 0x475   :  { %11728 = vmatpush3.bf16.msra.mxu0 %v12091_v37  ;;  %9066 = vmatpush1.bf16.msra.mxu1 %v11349_v50  ;;  %v11446_v37 = vcombine.high %v11128_v47, %v11132_v19  ;;  %v11477_v50 = vcombine.low %v11160_v61, %v11164_v62  ;;  %v11252_v47 = vld [vmem:[%s16158_s2 + $0x1ae0] sm:$0xff] }
 0x476   :  { %v6187_v48 = vpop.f32.mrf.mxu1  ;;  %9094 = vmatprep.subr.bf16.mxu0 %v11526_v60  ;;  %9067 = vmatprep.subr.bf16.mxu1 %v11342_v58  ;;  %v11124_v60 = vld [vmem:[%s16158_s2 + $0x16e0] sm:$0xff] }
 0x477   :  { %v11437_v17 = vcombine.low %v11120_v55, %v11124_v60  ;;  %v11276_v58 = vld [vmem:[%s16158_s2 + $0x1ba0] sm:$0xff] }
 0x478   :  { %v6146_v6 = vpop.f32.mrf.mxu0  ;;  %v6189_v53 = vpop.f32.mrf.mxu1  ;;  %7069 = vmatmul.mubr.bf16.vlgmr.msra.gmra.mxu0 %v12367_v7  ;;  %v11184_v7 = vld [vmem:[%s16158_s2 + $0x18c0] sm:$0xff] }
 0x479   :  { %v6147_v18 = vadd.f32 %v6146_v6, %v4238_v63  ;;  %9095 = vmatpush1.bf16.msra.mxu0 %v11525_v11  ;;  %v11502_v38 = vcombine.high %v11184_v7, %v11188_v24  ;;  %9068 = vmatpush1.bf16.msra.mxu1 %v11341_v23  ;;  %v11501_v44 = vcombine.low %v11184_v7, %v11188_v24  ;;  %v11092_v19 = vld [vmem:[%s16158_s2 + $0x15e0] sm:$0xff] }
 0x47a   :  { %v6148_v9 = vpop.f32.mrf.mxu0  ;;  %v6191_v59 = vpop.f32.mrf.mxu1  ;;  %9096 = vmatprep.subr.bf16.mxu0 %v11518_v3  ;;  %9069 = vmatprep.subr.bf16.mxu1 %v11462_v57  ;;  %v11438_v63 = vcombine.high %v11120_v55, %v11124_v60  ;;  %v11485_v11 = vcombine.low %v11168_v52, %v11172_v49  ;;  %v11152_v3 = vld [vmem:[%s16158_s2 + $0x17c0] sm:$0xff]  ;;  %v15253_v49 = vld [vmem:[%s16158_s2 + $0x1588] sm:$0xff] }
 0x47b   :  { %v6149_v21 = vadd.f32 %v6148_v9, %v4242_v4  ;;  %v15148_v22 = vadd.f32 %v6187_v48, %v6147_v18  ;;  %v11478_v48 = vcombine.high %v11160_v61, %v11164_v62  ;;  %v11156_v4 = vld [vmem:[%s16158_s2 + $0x17e0] sm:$0xff]  ;;  %v11429_v18 = vcombine.low %v11112_v14, %v11116_v34 }
 0x47c   :  { %v6150_v25 = vpop.f32.mrf.mxu0  ;;  %v6192_v26 = vpop.f32.mrf.mxu1  ;;  %v11470_v6 = vcombine.high %v11152_v3, %v11156_v4  ;;  %v11268_v9 = vld [vmem:[%s16158_s2 + $0x1b60] sm:$0xff] }
 0x47d   :  { %v15156_v41 = vadd.f32 %v6189_v53, %v6149_v21  ;;  %9097 = vmatpush1.bf16.msra.mxu0 %v11517_v16  ;;  %9070 = vmatpush2.bf16.msra.mxu1 %v11461_v2  ;;  %v11272_v53 = vld [vmem:[%s16158_s2 + $0x1b80] sm:$0xff]  ;;  %v11469_v16 = vcombine.low %v11152_v3, %v11156_v4  ;;  %v11582_v23 = vcombine.high %v11264_v1, %v11268_v9 }
 0x47e   :  { %v6151_v46 = vpop.f32.mrf.mxu0  ;;  %9098 = vmatprep.subr.bf16.mxu0 %v11510_v10  ;;  %9071 = vmatprep.subr.bf16.mxu1 %v11454_v43  ;;  %v11590_v27 = vcombine.high %v11272_v53, %v11276_v58  ;;  %v11104_v59 = vld [vmem:[%s16158_s2 + $0x1640] sm:$0xff]  ;;  %v11589_v7 = vcombine.low %v11272_v53, %v11276_v58 }
 0x47f   :  { %v11108_v10 = vld [vmem:[%s16158_s2 + $0x1660] sm:$0xff] }
 0x480   :  { %v11422_v21 = vcombine.high %v11104_v59, %v11108_v10  ;;  %v11421_v24 = vcombine.low %v11104_v59, %v11108_v10  ;;  %v11256_v25 = vld [vmem:[%s16158_s2 + $0x1b00] sm:$0xff] }
 0x481   :  { %9099 = vmatpush1.bf16.msra.mxu0 %v11509_v28  ;;  %9072 = vmatpush2.bf16.msra.mxu1 %v11453_v54  ;;  %v11260_v26 = vld [vmem:[%s16158_s2 + $0x1b20] sm:$0xff] }
 0x482   :  { %9100 = vmatprep.subr.bf16.mxu0 %v11502_v38  ;;  %9073 = vmatprep.subr.bf16.mxu1 %v11446_v37  ;;  %v11096_v57 = vld [vmem:[%s16158_s2 + $0x1600] sm:$0xff]  ;;  %v11581_v38 = vcombine.low %v11264_v1, %v11268_v9  ;;  %v11574_v2 = vcombine.high %v11256_v25, %v11260_v26 }
 0x483   :  { %v11100_v28 = vld [vmem:[%s16158_s2 + $0x1620] sm:$0xff] }
 0x484   :  { %v11414_v30 = vcombine.high %v11096_v57, %v11100_v28  ;;  %v11413_v39 = vcombine.low %v11096_v57, %v11100_v28  ;;  %v11248_v43 = vld [vmem:[%s16158_s2 + $0x1ac0] sm:$0xff] }
 0x485   :  { %9101 = vmatpush1.bf16.msra.mxu0 %v11501_v44  ;;  %9074 = vmatpush2.bf16.msra.mxu1 %v11445_v42  ;;  %v11240_v42 = vld [vmem:[%s16158_s2 + $0x1a80] sm:$0xff]  ;;  %v11565_v14 = vcombine.low %v11248_v43, %v11252_v47 }
 0x486   :  { %9102 = vmatprep.subr.bf16.mxu0 %v11494_v51  ;;  %9075 = vmatprep.subr.bf16.mxu1 %v11438_v63  ;;  %v11244_v63 = vld [vmem:[%s16158_s2 + $0x1aa0] sm:$0xff] }
 0x487   :  { %v11232_v3 = vld [vmem:[%s16158_s2 + $0x1a40] sm:$0xff] }
 0x488   :  { %v11236_v4 = vld [vmem:[%s16158_s2 + $0x1a60] sm:$0xff] }
 0x489   :  { %9103 = vmatpush1.bf16.msra.mxu0 %v11493_v20  ;;  %9076 = vmatpush2.bf16.msra.mxu1 %v11437_v17  ;;  %v11573_v20 = vcombine.low %v11256_v25, %v11260_v26  ;;  %v11557_v17 = vcombine.low %v11240_v42, %v11244_v63  ;;  %v11549_v53 = vcombine.low %v11232_v3, %v11236_v4 }
 0x48a   :  { %9104 = vmatprep.subr.bf16.mxu0 %v11486_v31  ;;  %9077 = vmatprep.subr.bf16.mxu1 %v11430_v5  ;;  %v11566_v31 = vcombine.high %v11248_v43, %v11252_v47  ;;  %v11550_v5 = vcombine.high %v11232_v3, %v11236_v4 }
 0x48d   :  { %9105 = vmatpush1.bf16.msra.mxu0 %v11485_v11  ;;  %9078 = vmatpush2.bf16.msra.mxu1 %v11429_v18  ;;  %v15271_v11 = vld [vmem:[%s16158_s2 + $0x1d80] sm:$0x33] }
 0x48e   :  { %9106 = vmatprep.subr.bf16.mxu0 %v11478_v48  ;;  %9079 = vmatprep.subr.bf16.mxu1 %v11422_v21  ;;  %v11654_v34 = vcombine.high %v15271_v11, %v15271_v11  ;;  %v11558_v48 = vcombine.high %v11240_v42, %v11244_v63  ;;  %v11216_v18 = vld [vmem:[%s16158_s2 + $0x19c0] sm:$0xff] }
 0x491   :  { %9107 = vmatpush1.bf16.msra.mxu0 %v11477_v50  ;;  %9080 = vmatpush2.bf16.msra.mxu1 %v11421_v24  ;;  %v11224_v50 = vld [vmem:[%s16158_s2 + $0x1a00] sm:$0xff] }
 0x492   :  { %9108 = vmatprep.subr.bf16.mxu0 %v11470_v6  ;;  %9081 = vmatprep.subr.bf16.mxu1 %v11414_v30  ;;  %v11228_v6 = vld [vmem:[%s16158_s2 + $0x1a20] sm:$0xff] }
 0x493   :  { %v11542_v58 = vcombine.high %v11224_v50, %v11228_v6 }
 0x495   :  { %9109 = vmatpush1.bf16.msra.mxu0 %v11469_v16  ;;  %9082 = vmatpush2.bf16.msra.mxu1 %v11413_v39  ;;  %v11220_v16 = vld [vmem:[%s16158_s2 + $0x19e0] sm:$0xff] }
 0x496   :  { %9110 = vmatprep.subr.bf16.mxu0 %v11590_v27  ;;  %v11541_v27 = vcombine.low %v11224_v50, %v11228_v6  ;;  %v11534_v1 = vcombine.high %v11216_v18, %v11220_v16  ;;  %v11533_v9 = vcombine.low %v11216_v18, %v11220_v16 }
 0x498   :  { %v6228_v29 = vpop.f32.mrf.mxu0 }
 0x499   :  { %v6229_v46 = vadd.f32 %v6228_v29, %v15148_v22  ;;  %9111 = vmatpush2.bf16.msra.mxu0 %v11589_v7  ;;  %v11088_v22 = vld [vmem:[%s16158_s2 + $0x15c0] sm:$0xff] }
 0x49a   :  { %v6230_v40 = vpop.f32.mrf.mxu0  ;;  %9112 = vmatprep.subr.bf16.mxu0 %v11582_v23  ;;  %v11406_v52 = vcombine.high %v11088_v22, %v11092_v19  ;;  %v11405_v55 = vcombine.low %v11088_v22, %v11092_v19  ;;  %v12101_v23 = vld [vmem:[%s16160_s4 + $0x8] sm:$0xff] }
 0x49b   :  { %v6231_v44 = vadd.f32 %v6230_v40, %v15156_v41  ;;  %v15258_v41 = vld [vmem:[%s16158_s2 + $0x15a8] sm:$0xff]  ;;  %v6362_v54 = vmax.f32 %v6229_v46, 0.0  ;;  %v4246_v25 = vrot.slane %v12101_v23, %v13964_v45  ;;  %v4250_v26 = vrot.slane %v12101_v23, %v13967_v15  ;;  %v11332_v23 = vld [vmem:[%s16158_s2 + $0x1d60] sm:$0xff] }
 0x49c   :  { %v6232_v51 = vpop.f32.mrf.mxu0  ;;  %9083 = vmatprep.subr.bf16.mxu1 %v11406_v52  ;;  %v11399_v61 = vcombine.low %v15253_v49, %v15258_v41  ;;  %v11400_v59 = vcombine.high %v15253_v49, %v15258_v41  ;;  %v11057_v41 = vld [vmem:[%s16158_s2 + $0x14c8] sm:$0xff] }
 0x49d   :  { %v6363_v37 = vmax.f32 %v6231_v44, 0.0  ;;  %9113 = vmatpush2.bf16.msra.mxu0 %v11581_v38  ;;  %9084 = vmatpush2.bf16.msra.mxu1 %v11405_v55 }
 0x49e   :  { %v6233_v60 = vpop.f32.mrf.mxu0  ;;  %9114 = vmatprep.subr.bf16.mxu0 %v11574_v2  ;;  %11661 = vmatprep.subr.msk.bf16.mxu1 %vm2649_vm0, %v11654_v34 }
 0x49f   :  { %v6391_v62 = vcombine.low %v6362_v54, %v6363_v37  ;;  %v15308_v60 = vld [vmem:[%s16159_s3 + $0xa] sm:$0x1f] }
 0x4a0   :  { %v6516_v42 = vrot.slane %v15308_v60, %v12629_v32  ;;  %v6520_v34 = vrot.slane %v15308_v60, %v12640_v35 }
 0x4a1   :  { %9115 = vmatpush2.bf16.msra.mxu0 %v11573_v20  ;;  %v6399_v37 = vrot.slane %v6391_v62, %v13623_v0  ;;  %v6528_v62 = vrot.slane %v15308_v60, %v12643_v36 }
 0x4a2   :  { %9116 = vmatprep.subr.bf16.mxu0 %v11566_v31  ;;  %v6524_v31 = vrot.slane %v15308_v60, %v12632_v33 }
 0x4a5   :  { %9117 = vmatpush2.bf16.msra.mxu0 %v11565_v14 }
 0x4a6   :  { %9118 = vmatprep.subr.bf16.mxu0 %v11558_v48 }
 0x4a9   :  { %9119 = vmatpush2.bf16.msra.mxu0 %v11557_v17 }
 0x4aa   :  { %9120 = vmatprep.subr.bf16.mxu0 %v11550_v5 }
 0x4ad   :  { %9121 = vmatpush2.bf16.msra.mxu0 %v11549_v53 }
 0x4ae   :  { %9122 = vmatprep.subr.bf16.mxu0 %v11542_v58 }
 0x4b1   :  { %9123 = vmatpush2.bf16.msra.mxu0 %v11541_v27 }
 0x4b2   :  { %9124 = vmatprep.subr.bf16.mxu0 %v11534_v1 }
 0x4b5   :  { %9125 = vmatpush2.bf16.msra.mxu0 %v11533_v9  ;;  %v11653_v9 = vcombine.low %v15271_v11, %v15271_v11 }
 0x4b6   :  { %v6269_v10 = vpop.f32.mrf.mxu1  ;;  %9176 = vmatprep.subr.bf16.mxu0 %v11400_v59  ;;  %v11073_v59 = vld [vmem:[%s16158_s2 + $0x1548] sm:$0xff] }
 0x4b7   :  { %v6270_v28 = vadd.f32 %v6269_v10, %v4246_v25  ;;  %v11077_v10 = vld [vmem:[%s16158_s2 + $0x1568] sm:$0xff] }
 0x4b8   :  { %v6271_v21 = vpop.f32.mrf.mxu1 }
 0x4b9   :  { %v6272_v46 = vadd.f32 %v6271_v21, %v4250_v26  ;;  %v11392_v26 = vcombine.high %v11073_v59, %v11077_v10 }
 0x4ba   :  { %v6273_v7 = vpop.f32.mrf.mxu1 }
 0x4bc   :  { %v6274_v24 = vpop.f32.mrf.mxu1 }
 0x4bd   :  { %v11328_v24 = vld [vmem:[%s16158_s2 + $0x1d40] sm:$0xff] }
 0x4be   :  { %v11645_v49 = vcombine.low %v11328_v24, %v11332_v23 }
 0x4d6   :  { %v6351_v57 = vpop.f32.mrf.mxu1 }
 0x4d8   :  { %v6310_v29 = vpop.f32.mrf.mxu0  ;;  %v6353_v30 = vpop.f32.mrf.mxu1 }
 0x4d9   :  { %v6311_v38 = vadd.f32 %v6310_v29, %v6270_v28  ;;  %v11069_v28 = vld [vmem:[%s16158_s2 + $0x1528] sm:$0xff] }
 0x4da   :  { %v6312_v39 = vpop.f32.mrf.mxu0  ;;  %v6355_v40 = vpop.f32.mrf.mxu1 }
 0x4db   :  { %v6352_v2 = vadd.f32 %v6351_v57, %v6311_v38  ;;  %v6313_v43 = vadd.f32 %v6312_v39, %v6272_v46  ;;  %v11065_v57 = vld [vmem:[%s16158_s2 + $0x1508] sm:$0xff]  ;;  %v11646_v46 = vcombine.high %v11328_v24, %v11332_v23  ;;  %v11391_v38 = vcombine.low %v11073_v59, %v11077_v10  ;;  %v11320_v39 = vld [vmem:[%s16158_s2 + $0x1d00] sm:$0xff] }
 0x4dc   :  { %v6314_v44 = vpop.f32.mrf.mxu0  ;;  %v6356_v47 = vpop.f32.mrf.mxu1  ;;  %v11324_v40 = vld [vmem:[%s16158_s2 + $0x1d20] sm:$0xff]  ;;  %v11025_v59 = vld [vmem:[%s16158_s2 + $0x13c8] sm:$0xff] }
 0x4dd   :  { %v6354_v22 = vadd.f32 %v6353_v30, %v6313_v43  ;;  %v6364_v51 = vmax.f32 %v6352_v2, 0.0  ;;  %v9030_v30 = vsel %vm2649_vm0, %v11653_v9, 0  ;;  %v11384_v2 = vcombine.high %v11065_v57, %v11069_v28  ;;  %v11312_v47 = vld [vmem:[%s16158_s2 + $0x1cc0] sm:$0xff]  ;;  %v11029_v10 = vld [vmem:[%s16158_s2 + $0x13e8] sm:$0xff] }
 0x4de   :  { %v6315_v19 = vpop.f32.mrf.mxu0  ;;  %v11638_v43 = vcombine.high %v11320_v39, %v11324_v40  ;;  %v11383_v44 = vcombine.low %v11065_v57, %v11069_v28  ;;  %v11280_v23 = vld [vmem:[%s16158_s2 + $0x1bc0] sm:$0xff]  ;;  %v11145_v28 = vld [vmem:[%s16158_s2 + $0x1788] sm:$0xff] }
 0x4df   :  { %v6365_v52 = vmax.f32 %v6354_v22, 0.0  ;;  %v11316_v22 = vld [vmem:[%s16158_s2 + $0x1ce0] sm:$0xff] }
 0x4e1   :  { %v6392_v54 = vcombine.low %v6364_v51, %v6365_v52  ;;  %v11637_v51 = vcombine.low %v11320_v39, %v11324_v40  ;;  %v11049_v52 = vld [vmem:[%s16158_s2 + $0x1488] sm:$0xff]  ;;  %v6532_v39 = vrot.slane %v15308_v60, %v12749_v56  ;;  %v11343_v40 = vcombine.low %v11025_v59, %v11029_v10 }
 0x4e2   :  { %v11141_v60 = vld [vmem:[%s16158_s2 + $0x1768] sm:$0xff] }
 0x4e3   :  { %v6406_v20 = vrot.slane %v6392_v54, %v13623_v0  ;;  %v11053_v54 = vld [vmem:[%s16158_s2 + $0x14a8] sm:$0xff] }
 0x4e5   :  { %v6407_v55 = vcombine.low %v6399_v37, %v6406_v20  ;;  %v11630_v37 = vcombine.high %v11312_v47, %v11316_v22 }
 0x4e7   :  { %6412 = vst.msk [vmem:[#allocation2 + $0x18] sm:$0xff] %vm13978_vm7, %v6407_v55  ;;  %v11304_v55 = vld [vmem:[%s16158_s2 + $0x1c80] sm:$0xff] }
 0x516   :  { %v7029_v63 = vpop.f32.mrf.mxu1 }
 0x517   :  { %v7030_v14 = vadd.f32 %v7029_v63, %v6524_v31  ;;  %v11308_v31 = vld [vmem:[%s16158_s2 + $0x1ca0] sm:$0xff]  ;;  %v11041_v63 = vld [vmem:[%s16158_s2 + $0x1448] sm:$0xff] }
 0x518   :  { %v6988_v48 = vpop.f32.mrf.mxu0  ;;  %v7031_v3 = vpop.f32.mrf.mxu1 }
 0x519   :  { %v7078_v4 = vmax.f32 %v7030_v14, 0.0  ;;  %v6989_v17 = vadd.f32 %v6988_v48, %v6516_v42  ;;  %v7032_v5 = vadd.f32 %v7031_v3, %v6528_v62  ;;  %v11368_v42 = vcombine.high %v11049_v52, %v11053_v54  ;;  %v11045_v14 = vld [vmem:[%s16158_s2 + $0x1468] sm:$0xff]  ;;  %v11296_v3 = vld [vmem:[%s16158_s2 + $0x1c40] sm:$0xff] }
 0x51a   :  { %v6990_v50 = vpop.f32.mrf.mxu0  ;;  %v7033_v6 = vpop.f32.mrf.mxu1  ;;  %v11629_v62 = vcombine.low %v11312_v47, %v11316_v22  ;;  %v11367_v48 = vcombine.low %v11049_v52, %v11053_v54  ;;  %v11137_v47 = vld [vmem:[%s16158_s2 + $0x1748] sm:$0xff] }
 0x51b   :  { %v7079_v53 = vmax.f32 %v7032_v5, 0.0  ;;  %v6991_v58 = vadd.f32 %v6990_v50, %v6520_v34  ;;  %v15318_v18 = vpack.c.bf16 %v7078_v4, %v7078_v4  ;;  %v7076_v16 = vmax.f32 %v6989_v17, 0.0  ;;  %v11300_v4 = vld [vmem:[%s16158_s2 + $0x1c60] sm:$0xff]  ;;  %v11033_v50 = vld [vmem:[%s16158_s2 + $0x1408] sm:$0xff] }
 0x51c   :  { %v6992_v27 = vpop.f32.mrf.mxu0  ;;  %v7034_v1 = vpop.f32.mrf.mxu1  ;;  %v11622_v34 = vcombine.high %v11304_v55, %v11308_v31  ;;  %v11360_v17 = vcombine.high %v11041_v63, %v11045_v14  ;;  %v11621_v5 = vcombine.low %v11304_v55, %v11308_v31  ;;  %v11037_v6 = vld [vmem:[%s16158_s2 + $0x1428] sm:$0xff]  ;;  %v11613_v9 = vcombine.low %v11296_v3, %v11300_v4 }
 0x51d   :  { %v15328_v21 = vpack.c.bf16 %v7079_v53, %v7079_v53  ;;  %v7077_v7 = vmax.f32 %v6991_v58, 0.0  ;;  %v15345_v29 = vpack.c.bf16 %v7076_v16, %v7076_v16  ;;  %v11614_v53 = vcombine.high %v11296_v3, %v11300_v4  ;;  %v11288_v16 = vld [vmem:[%s16158_s2 + $0x1c00] sm:$0xff]  ;;  %v11205_v55 = vld [vmem:[%s16158_s2 + $0x1968] sm:$0xff] }
 0x51e   :  { %v6993_v11 = vpop.f32.mrf.mxu0  ;;  %v11359_v58 = vcombine.low %v11041_v63, %v11045_v14  ;;  %v11292_v27 = vld [vmem:[%s16158_s2 + $0x1c20] sm:$0xff]  ;;  %v11352_v1 = vcombine.high %v11033_v50, %v11037_v6  ;;  %v11351_v24 = vcombine.low %v11033_v50, %v11037_v6  ;;  %v11193_v4 = vld [vmem:[%s16158_s2 + $0x1908] sm:$0xff] }
 0x51f   :  { %v15336_v25 = vpack.c.bf16 %v7077_v7, %v7077_v7  ;;  %9126 = vmatprep.mubr.bf16.mxu0 %v15328_v21  ;;  %v11606_v7 = vcombine.high %v11288_v16, %v11292_v27  ;;  %v11284_v11 = vld [vmem:[%s16158_s2 + $0x1be0] sm:$0xff]  ;;  %v11605_v57 = vcombine.low %v11288_v16, %v11292_v27  ;;  %v11125_v50 = vld [vmem:[%s16158_s2 + $0x16e8] sm:$0xff] }
 0x520   :  { %9127 = vmatmul.mubr.bf16.vlgmr.msra.gmra.mxu0 %v15318_v18  ;;  %v11185_v27 = vld [vmem:[%s16158_s2 + $0x18c8] sm:$0xff] }
 0x521   :  { %9177 = vmatpush1.bf16.msra.mxu0 %v11399_v61  ;;  %9085 = vmatprep.mubr.bf16.mxu1 %v15336_v25  ;;  %v11061_v61 = vld [vmem:[%s16158_s2 + $0x14e8] sm:$0xff] }
 0x522   :  { %9208 = vmatprep.mubr.bf16.mxu0 %v15336_v25  ;;  %9086 = vmatmul.mubr.bf16.vlgmr.msra.gmra.mxu1 %v15345_v29  ;;  %v11376_v19 = vcombine.high %v11057_v41, %v11061_v61  ;;  %v11375_v20 = vcombine.low %v11057_v41, %v11061_v61 }
 0x523   :  { %9136 = vmatpush1.bf16.msra.mxu1 %v9030_v30  ;;  %9178 = vmatprep.subr.bf16.mxu0 %v11392_v26  ;;  %v11344_v26 = vcombine.high %v11025_v59, %v11029_v10  ;;  %v11149_v30 = vld [vmem:[%s16158_s2 + $0x17a8] sm:$0xff] }
 0x524   :  { %9137 = vmatprep.subr.bf16.mxu1 %v11646_v46  ;;  %9167 = vmatprep.mubr.bf16.mxu1 %v12124_v12  ;;  %v11464_v61 = vcombine.high %v11145_v28, %v11149_v30  ;;  %v11463_v52 = vcombine.low %v11145_v28, %v11149_v30  ;;  %v11117_v59 = vld [vmem:[%s16158_s2 + $0x16a8] sm:$0xff] }
 0x525   :  { %9179 = vmatpush1.bf16.msra.mxu0 %v11391_v38  ;;  %v11598_v38 = vcombine.high %v11280_v23, %v11284_v11  ;;  %v11109_v28 = vld [vmem:[%s16158_s2 + $0x1668] sm:$0xff] }
 0x526   :  { %9180 = vmatprep.subr.bf16.mxu0 %v11384_v2  ;;  %v11209_v2 = vld [vmem:[%s16158_s2 + $0x1988] sm:$0xff] }
 0x527   :  { %9138 = vmatpush1.bf16.msra.mxu1 %v11645_v49  ;;  %v11213_v49 = vld [vmem:[%s16158_s2 + $0x19a8] sm:$0xff] }
 0x528   :  { %9139 = vmatprep.subr.bf16.mxu1 %v11638_v43  ;;  %v11527_v63 = vcombine.low %v11209_v2, %v11213_v49 }
 0x529   :  { %9181 = vmatpush1.bf16.msra.mxu0 %v11383_v44  ;;  %v11597_v44 = vcombine.low %v11280_v23, %v11284_v11  ;;  %v11177_v11 = vld [vmem:[%s16158_s2 + $0x1888] sm:$0xff] }
 0x52a   :  { %9182 = vmatprep.subr.bf16.mxu0 %v11376_v19  ;;  %v11528_v19 = vcombine.high %v11209_v2, %v11213_v49  ;;  %v11173_v2 = vld [vmem:[%s16158_s2 + $0x1868] sm:$0xff] }
 0x52b   :  { %9140 = vmatpush1.bf16.msra.mxu1 %v11637_v51  ;;  %v11097_v49 = vld [vmem:[%s16158_s2 + $0x1608] sm:$0xff] }
 0x52c   :  { %9141 = vmatprep.subr.bf16.mxu1 %v11630_v37  ;;  %v11456_v37 = vcombine.high %v11137_v47, %v11141_v60 }
 0x52d   :  { %9183 = vmatpush1.bf16.msra.mxu0 %v11375_v20  ;;  %v11201_v20 = vld [vmem:[%s16158_s2 + $0x1948] sm:$0xff] }
 0x52e   :  { %9184 = vmatprep.subr.bf16.mxu0 %v11368_v42  ;;  %v11129_v42 = vld [vmem:[%s16158_s2 + $0x1708] sm:$0xff]  ;;  %v11519_v6 = vcombine.low %v11201_v20, %v11205_v55 }
 0x52f   :  { %9142 = vmatpush1.bf16.msra.mxu1 %v11629_v62  ;;  %v11133_v62 = vld [vmem:[%s16158_s2 + $0x1728] sm:$0xff] }
 0x530   :  { %9143 = vmatprep.subr.bf16.mxu1 %v11622_v34  ;;  %v11455_v34 = vcombine.low %v11137_v47, %v11141_v60  ;;  %v11448_v3 = vcombine.high %v11129_v42, %v11133_v62  ;;  %v11161_v60 = vld [vmem:[%s16158_s2 + $0x1808] sm:$0xff] }
 0x531   :  { %9185 = vmatpush1.bf16.msra.mxu0 %v11367_v48  ;;  %v11520_v48 = vcombine.high %v11201_v20, %v11205_v55  ;;  %v11153_v55 = vld [vmem:[%s16158_s2 + $0x17c8] sm:$0xff] }
 0x532   :  { %9186 = vmatprep.subr.bf16.mxu0 %v11360_v17  ;;  %v11197_v17 = vld [vmem:[%s16158_s2 + $0x1928] sm:$0xff] }
 0x533   :  { %9144 = vmatpush1.bf16.msra.mxu1 %v11621_v5  ;;  %v11121_v5 = vld [vmem:[%s16158_s2 + $0x16c8] sm:$0xff]  ;;  %v11511_v10 = vcombine.low %v11193_v4, %v11197_v17 }
 0x534   :  { %9145 = vmatprep.subr.bf16.mxu1 %v11614_v53  ;;  %v11447_v53 = vcombine.low %v11129_v42, %v11133_v62  ;;  %v11440_v16 = vcombine.high %v11121_v5, %v11125_v50  ;;  %v11337_v42 = vld [vmem:[%s16158_s2 + $0x1d88] sm:$0x33] }
 0x535   :  { %9187 = vmatpush1.bf16.msra.mxu0 %v11359_v58  ;;  %v11512_v58 = vcombine.high %v11193_v4, %v11197_v17  ;;  %v11273_v4 = vld [vmem:[%s16158_s2 + $0x1b88] sm:$0xff] }
 0x536   :  { %9188 = vmatprep.subr.bf16.mxu0 %v11352_v1  ;;  %v11189_v1 = vld [vmem:[%s16158_s2 + $0x18e8] sm:$0xff] }
 0x537   :  { %9146 = vmatpush1.bf16.msra.mxu1 %v11613_v9  ;;  %v11113_v9 = vld [vmem:[%s16158_s2 + $0x1688] sm:$0xff]  ;;  %v11503_v30 = vcombine.low %v11185_v27, %v11189_v1 }
 0x538   :  { %v11729_v46 = vpop.f32.mrf.mxu0  ;;  %9147 = vmatprep.subr.bf16.mxu1 %v11606_v7  ;;  %v11439_v7 = vcombine.low %v11121_v5, %v11125_v50  ;;  %v11432_v23 = vcombine.high %v11113_v9, %v11117_v59  ;;  %v11277_v17 = vld [vmem:[%s16158_s2 + $0x1ba8] sm:$0xff] }
 0x539   :  { %9189 = vmatpush1.bf16.msra.mxu0 %v11351_v24  ;;  %v11504_v24 = vcombine.high %v11185_v27, %v11189_v1  ;;  %v11329_v5 = vld [vmem:[%s16158_s2 + $0x1d48] sm:$0xff] }
 0x53a   :  { %v11730_v41 = vpop.f32.mrf.mxu0  ;;  %9190 = vmatprep.subr.bf16.mxu0 %v11344_v26  ;;  %v11181_v26 = vld [vmem:[%s16158_s2 + $0x18a8] sm:$0xff] }
 0x53b   :  { %v11731_v43 = vadd.f32 %v11730_v41, %v11729_v46  ;;  %9148 = vmatpush1.bf16.msra.mxu1 %v11605_v57  ;;  %v11105_v57 = vld [vmem:[%s16158_s2 + $0x1648] sm:$0xff]  ;;  %v11431_v46 = vcombine.low %v11113_v9, %v11117_v59 }
 0x53c   :  { %v11732_v22 = vpop.f32.mrf.mxu0  ;;  %9149 = vmatprep.subr.bf16.mxu1 %v11598_v38  ;;  %v11496_v38 = vcombine.high %v11177_v11, %v11181_v26  ;;  %v11101_v41 = vld [vmem:[%s16158_s2 + $0x1628] sm:$0xff] }
 0x53d   :  { %v7071_v51 = vadd.f32 %v11731_v43, %v6532_v39  ;;  %9191 = vmatpush1.bf16.msra.mxu0 %v11343_v40  ;;  %v11424_v39 = vcombine.high %v11105_v57, %v11109_v28  ;;  %v11169_v40 = vld [vmem:[%s16158_s2 + $0x1848] sm:$0xff]  ;;  %v11423_v43 = vcombine.low %v11105_v57, %v11109_v28  ;;  %v11416_v47 = vcombine.high %v11097_v49, %v11101_v41 }
 0x53e   :  { %v11733_v54 = vpop.f32.mrf.mxu0  ;;  %9192 = vmatprep.subr.bf16.mxu0 %v11464_v61  ;;  %v11495_v61 = vcombine.low %v11177_v11, %v11181_v26  ;;  %v11165_v22 = vld [vmem:[%s16158_s2 + $0x1828] sm:$0xff] }
 0x53f   :  { %v7080_v31 = vmax.f32 %v7071_v51, 0.0  ;;  %9150 = vmatpush1.bf16.msra.mxu1 %v11597_v44  ;;  %v11488_v44 = vcombine.high %v11169_v40, %v11173_v2  ;;  %v11093_v51 = vld [vmem:[%s16158_s2 + $0x15e8] sm:$0xff]  ;;  %v11415_v54 = vcombine.low %v11097_v49, %v11101_v41  ;;  %v11479_v62 = vcombine.low %v11161_v60, %v11165_v22 }
 0x540   :  { %9217 = vmatprep.subr.bf16.mxu1 %v11528_v19  ;;  %v11089_v19 = vld [vmem:[%s16158_s2 + $0x15c8] sm:$0xff] }
 0x541   :  { %v15454_v14 = vpack.c.bf16 %v7080_v31, %v7080_v31  ;;  %9193 = vmatpush2.bf16.msra.mxu0 %v11463_v52  ;;  %v11487_v52 = vcombine.low %v11169_v40, %v11173_v2  ;;  %v11408_v20 = vcombine.high %v11089_v19, %v11093_v51  ;;  %v11157_v31 = vld [vmem:[%s16158_s2 + $0x17e8] sm:$0xff] }
 0x542   :  { %9194 = vmatprep.subr.bf16.mxu0 %v11456_v37  ;;  %v11480_v37 = vcombine.high %v11161_v60, %v11165_v22  ;;  %v11333_v50 = vld [vmem:[%s16158_s2 + $0x1d68] sm:$0xff] }
 0x543   :  { %11662 = vmatmul.mubr.msk.bf16.vlgmr.msra.gmra.mxu1 %vm2645_vm1, %v15454_v14  ;;  %v11265_v27 = vld [vmem:[%s16158_s2 + $0x1b48] sm:$0xff] }
 0x544   :  { %9218 = vmatpush1.bf16.msra.mxu1 %v11527_v63  ;;  %9249 = vmatprep.mubr.bf16.mxu1 %v15328_v21  ;;  %v11407_v63 = vcombine.low %v11089_v19, %v11093_v51  ;;  %v11269_v1 = vld [vmem:[%s16158_s2 + $0x1b68] sm:$0xff] }
 0x545   :  { %9195 = vmatpush2.bf16.msra.mxu0 %v11455_v34  ;;  %9219 = vmatprep.subr.bf16.mxu1 %v11520_v48  ;;  %v11472_v34 = vcombine.high %v11153_v55, %v11157_v31  ;;  %v11656_v48 = vcombine.high %v11337_v42, %v11337_v42  ;;  %v11321_v9 = vld [vmem:[%s16158_s2 + $0x1d08] sm:$0xff] }
 0x546   :  { %9196 = vmatprep.subr.bf16.mxu0 %v11448_v3  ;;  %v11655_v3 = vcombine.low %v11337_v42, %v11337_v42  ;;  %v11325_v59 = vld [vmem:[%s16158_s2 + $0x1d28] sm:$0xff] }
 0x547   :  { %v11257_v11 = vld [vmem:[%s16158_s2 + $0x1b08] sm:$0xff] }
 0x548   :  { %9220 = vmatpush1.bf16.msra.mxu1 %v11519_v6  ;;  %v11471_v6 = vcombine.low %v11153_v55, %v11157_v31  ;;  %v11261_v26 = vld [vmem:[%s16158_s2 + $0x1b28] sm:$0xff] }
 0x549   :  { %9197 = vmatpush2.bf16.msra.mxu0 %v11447_v53  ;;  %9221 = vmatprep.subr.bf16.mxu1 %v11512_v58  ;;  %v11592_v53 = vcombine.high %v11273_v4, %v11277_v17  ;;  %v9036_v58 = vsel %vm2649_vm0, %v11655_v3, 0  ;;  %v11313_v57 = vld [vmem:[%s16158_s2 + $0x1cc8] sm:$0xff] }
 0x54a   :  { %9198 = vmatprep.subr.bf16.mxu0 %v11440_v16  ;;  %v11648_v16 = vcombine.high %v11329_v5, %v11333_v50  ;;  %v11317_v28 = vld [vmem:[%s16158_s2 + $0x1ce8] sm:$0xff] }
 0x54b   :  { %v11249_v40 = vld [vmem:[%s16158_s2 + $0x1ac8] sm:$0xff] }
 0x54c   :  { %9222 = vmatpush1.bf16.msra.mxu1 %v11511_v10  ;;  %v11591_v10 = vcombine.low %v11273_v4, %v11277_v17  ;;  %v11253_v2 = vld [vmem:[%s16158_s2 + $0x1ae8] sm:$0xff] }
 0x54d   :  { %9199 = vmatpush2.bf16.msra.mxu0 %v11439_v7  ;;  %9223 = vmatprep.subr.bf16.mxu1 %v11504_v24  ;;  %v11647_v7 = vcombine.low %v11329_v5, %v11333_v50  ;;  %v11584_v24 = vcombine.high %v11265_v27, %v11269_v1  ;;  %v11305_v49 = vld [vmem:[%s16158_s2 + $0x1c88] sm:$0xff] }
 0x54e   :  { %9200 = vmatprep.subr.bf16.mxu0 %v11432_v23  ;;  %v11640_v23 = vcombine.high %v11321_v9, %v11325_v59  ;;  %v11309_v41 = vld [vmem:[%s16158_s2 + $0x1ca8] sm:$0xff] }
 0x54f   :  { %v11241_v60 = vld [vmem:[%s16158_s2 + $0x1a88] sm:$0xff] }
 0x550   :  { %9224 = vmatpush1.bf16.msra.mxu1 %v11503_v30  ;;  %v11583_v30 = vcombine.low %v11265_v27, %v11269_v1  ;;  %v11245_v22 = vld [vmem:[%s16158_s2 + $0x1aa8] sm:$0xff] }
 0x551   :  { %9201 = vmatpush2.bf16.msra.mxu0 %v11431_v46  ;;  %9225 = vmatprep.subr.bf16.mxu1 %v11496_v38  ;;  %v11639_v46 = vcombine.low %v11321_v9, %v11325_v59  ;;  %v11576_v38 = vcombine.high %v11257_v11, %v11261_v26  ;;  %v11297_v19 = vld [vmem:[%s16158_s2 + $0x1c48] sm:$0xff]  ;;  %v11210_v9 = vld [vmem:[%s16158_s2 + $0x1990] sm:$0xff] }
 0x552   :  { %9202 = vmatprep.subr.bf16.mxu0 %v11424_v39  ;;  %v11632_v39 = vcombine.high %v11313_v57, %v11317_v28  ;;  %v11301_v51 = vld [vmem:[%s16158_s2 + $0x1c68] sm:$0xff]  ;;  %v11214_v59 = vld [vmem:[%s16158_s2 + $0x19b0] sm:$0xff] }
 0x553   :  { %v11233_v55 = vld [vmem:[%s16158_s2 + $0x1a48] sm:$0xff] }
 0x554   :  { %9226 = vmatpush1.bf16.msra.mxu1 %v11495_v61  ;;  %v11575_v61 = vcombine.low %v11257_v11, %v11261_v26  ;;  %v11237_v31 = vld [vmem:[%s16158_s2 + $0x1a68] sm:$0xff]  ;;  %v11082_v11 = vld [vmem:[%s16158_s2 + $0x1590] sm:$0xff] }
 0x555   :  { %9203 = vmatpush2.bf16.msra.mxu0 %v11423_v43  ;;  %9227 = vmatprep.subr.bf16.mxu1 %v11488_v44  ;;  %v11631_v43 = vcombine.low %v11313_v57, %v11317_v28  ;;  %v11568_v44 = vcombine.high %v11249_v40, %v11253_v2  ;;  %v11289_v42 = vld [vmem:[%s16158_s2 + $0x1c08] sm:$0xff]  ;;  %v11086_v26 = vld [vmem:[%s16158_s2 + $0x15b0] sm:$0xff] }
 0x556   :  { %9204 = vmatprep.subr.bf16.mxu0 %v11416_v47  ;;  %v11624_v47 = vcombine.high %v11305_v49, %v11309_v41  ;;  %v11225_v4 = vld [vmem:[%s16158_s2 + $0x1a08] sm:$0xff]  ;;  %v11202_v57 = vld [vmem:[%s16158_s2 + $0x1950] sm:$0xff] }
 0x557   :  { %v11229_v17 = vld [vmem:[%s16158_s2 + $0x1a28] sm:$0xff]  ;;  %v11206_v28 = vld [vmem:[%s16158_s2 + $0x1970] sm:$0xff] }
 0x558   :  { %9228 = vmatpush1.bf16.msra.mxu1 %v11487_v52  ;;  %v11567_v52 = vcombine.low %v11249_v40, %v11253_v2  ;;  %v11281_v5 = vld [vmem:[%s16158_s2 + $0x1bc8] sm:$0xff]  ;;  %v11074_v40 = vld [vmem:[%s16158_s2 + $0x1550] sm:$0xff] }
 0x559   :  { %9205 = vmatpush2.bf16.msra.mxu0 %v11415_v54  ;;  %9229 = vmatprep.subr.bf16.mxu1 %v11480_v37  ;;  %v11623_v54 = vcombine.low %v11305_v49, %v11309_v41  ;;  %v11560_v37 = vcombine.high %v11241_v60, %v11245_v22  ;;  %v11285_v50 = vld [vmem:[%s16158_s2 + $0x1be8] sm:$0xff]  ;;  %v11078_v2 = vld [vmem:[%s16158_s2 + $0x1570] sm:$0xff] }
 0x55a   :  { %9206 = vmatprep.subr.bf16.mxu0 %v11408_v20  ;;  %v11616_v20 = vcombine.high %v11297_v19, %v11301_v51  ;;  %v11217_v27 = vld [vmem:[%s16158_s2 + $0x19c8] sm:$0xff]  ;;  %v11194_v49 = vld [vmem:[%s16158_s2 + $0x1910] sm:$0xff] }
 0x55b   :  { %v11221_v1 = vld [vmem:[%s16158_s2 + $0x19e8] sm:$0xff]  ;;  %v11198_v41 = vld [vmem:[%s16158_s2 + $0x1930] sm:$0xff] }
 0x55c   :  { %9230 = vmatpush1.bf16.msra.mxu1 %v11479_v62  ;;  %v11293_v62 = vld [vmem:[%s16158_s2 + $0x1c28] sm:$0xff] }
 0x55d   :  { %9207 = vmatpush2.bf16.msra.mxu0 %v11407_v63  ;;  %9231 = vmatprep.subr.bf16.mxu1 %v11472_v34  ;;  %v11559_v63 = vcombine.low %v11241_v60, %v11245_v22  ;;  %v11615_v34 = vcombine.low %v11297_v19, %v11301_v51  ;;  %v11608_v3 = vcombine.high %v11289_v42, %v11293_v62  ;;  %v11066_v60 = vld [vmem:[%s16158_s2 + $0x1510] sm:$0xff] }
 0x55e   :  { %11663 = vmatprep.subr.msk.bf16.mxu0 %vm2649_vm0, %v11656_v48  ;;  %v11552_v48 = vcombine.high %v11233_v55, %v11237_v31  ;;  %v11070_v22 = vld [vmem:[%s16158_s2 + $0x1530] sm:$0xff] }
 0x55f   :  { %v11186_v19 = vld [vmem:[%s16158_s2 + $0x18d0] sm:$0xff] }
 0x560   :  { %9209 = vmatmul.mubr.bf16.vlgmr.msra.gmra.mxu0 %v15345_v29  ;;  %9232 = vmatpush1.bf16.msra.mxu1 %v11471_v6  ;;  %v11551_v6 = vcombine.low %v11233_v55, %v11237_v31  ;;  %v11190_v51 = vld [vmem:[%s16158_s2 + $0x18f0] sm:$0xff] }
 0x561   :  { %9259 = vmatpush1.bf16.msra.mxu0 %v9036_v58  ;;  %9233 = vmatprep.subr.bf16.mxu1 %v11592_v53  ;;  %v11607_v53 = vcombine.low %v11289_v42, %v11293_v62  ;;  %v11544_v58 = vcombine.high %v11225_v4, %v11229_v17  ;;  %v11058_v55 = vld [vmem:[%s16158_s2 + $0x14d0] sm:$0xff] }
 0x562   :  { %9260 = vmatprep.subr.bf16.mxu0 %v11648_v16  ;;  %9290 = vmatprep.mubr.bf16.mxu0 %v12124_v12  ;;  %v11600_v16 = vcombine.high %v11281_v5, %v11285_v50  ;;  %v11062_v31 = vld [vmem:[%s16158_s2 + $0x14f0] sm:$0xff] }
 0x563   :  { %v11178_v42 = vld [vmem:[%s16158_s2 + $0x1890] sm:$0xff] }
 0x564   :  { %9234 = vmatpush2.bf16.msra.mxu1 %v11591_v10  ;;  %v11543_v10 = vcombine.low %v11225_v4, %v11229_v17  ;;  %v11182_v62 = vld [vmem:[%s16158_s2 + $0x18b0] sm:$0xff] }
 0x565   :  { %9261 = vmatpush1.bf16.msra.mxu0 %v11647_v7  ;;  %9235 = vmatprep.subr.bf16.mxu1 %v11584_v24  ;;  %v11599_v7 = vcombine.low %v11281_v5, %v11285_v50  ;;  %v11536_v24 = vcombine.high %v11217_v27, %v11221_v1  ;;  %v11050_v4 = vld [vmem:[%s16158_s2 + $0x1490] sm:$0xff] }
 0x566   :  { %9262 = vmatprep.subr.bf16.mxu0 %v11640_v23  ;;  %v11530_v23 = vcombine.high %v11210_v9, %v11214_v59  ;;  %v11054_v17 = vld [vmem:[%s16158_s2 + $0x14b0] sm:$0xff] }
 0x567   :  { %v11170_v5 = vld [vmem:[%s16158_s2 + $0x1850] sm:$0xff] }
 0x568   :  { %9236 = vmatpush2.bf16.msra.mxu1 %v11583_v30  ;;  %v11535_v30 = vcombine.low %v11217_v27, %v11221_v1  ;;  %v11174_v50 = vld [vmem:[%s16158_s2 + $0x1870] sm:$0xff] }
 0x569   :  { %9263 = vmatpush1.bf16.msra.mxu0 %v11639_v46  ;;  %9237 = vmatprep.subr.bf16.mxu1 %v11576_v38  ;;  %v11529_v46 = vcombine.low %v11210_v9, %v11214_v59  ;;  %v11402_v38 = vcombine.high %v11082_v11, %v11086_v26  ;;  %v11042_v27 = vld [vmem:[%s16158_s2 + $0x1450] sm:$0xff] }
 0x56a   :  { %9264 = vmatprep.subr.bf16.mxu0 %v11632_v39  ;;  %v11522_v39 = vcombine.high %v11202_v57, %v11206_v28  ;;  %v11046_v1 = vld [vmem:[%s16158_s2 + $0x1470] sm:$0xff] }
 0x56b   :  { %v11162_v9 = vld [vmem:[%s16158_s2 + $0x1810] sm:$0xff] }
 0x56c   :  { %9238 = vmatpush2.bf16.msra.mxu1 %v11575_v61  ;;  %v11401_v61 = vcombine.low %v11082_v11, %v11086_v26  ;;  %v11166_v59 = vld [vmem:[%s16158_s2 + $0x1830] sm:$0xff] }
 0x56d   :  { %9265 = vmatpush1.bf16.msra.mxu0 %v11631_v43  ;;  %9239 = vmatprep.subr.bf16.mxu1 %v11568_v44  ;;  %v11521_v43 = vcombine.low %v11202_v57, %v11206_v28  ;;  %v11394_v44 = vcombine.high %v11074_v40, %v11078_v2  ;;  %v11034_v11 = vld [vmem:[%s16158_s2 + $0x1410] sm:$0xff] }
 0x56e   :  { %9266 = vmatprep.subr.bf16.mxu0 %v11624_v47  ;;  %v11514_v47 = vcombine.high %v11194_v49, %v11198_v41  ;;  %v11038_v26 = vld [vmem:[%s16158_s2 + $0x1430] sm:$0xff] }
 0x56f   :  { %v11154_v57 = vld [vmem:[%s16158_s2 + $0x17d0] sm:$0xff] }
 0x570   :  { %9240 = vmatpush2.bf16.msra.mxu1 %v11567_v52  ;;  %v11393_v52 = vcombine.low %v11074_v40, %v11078_v2  ;;  %v11158_v28 = vld [vmem:[%s16158_s2 + $0x17f0] sm:$0xff] }
 0x571   :  { %9267 = vmatpush1.bf16.msra.mxu0 %v11623_v54  ;;  %9241 = vmatprep.subr.bf16.mxu1 %v11560_v37  ;;  %v11513_v54 = vcombine.low %v11194_v49, %v11198_v41  ;;  %v11386_v37 = vcombine.high %v11066_v60, %v11070_v22  ;;  %v11026_v40 = vld [vmem:[%s16158_s2 + $0x13d0] sm:$0xff] }
 0x572   :  { %9268 = vmatprep.subr.bf16.mxu0 %v11616_v20  ;;  %v11506_v20 = vcombine.high %v11186_v19, %v11190_v51  ;;  %v11030_v2 = vld [vmem:[%s16158_s2 + $0x13f0] sm:$0xff] }
 0x573   :  { %v11274_v49 = vld [vmem:[%s16158_s2 + $0x1b90] sm:$0xff] }
 0x574   :  { %9242 = vmatpush2.bf16.msra.mxu1 %v11559_v63  ;;  %v11385_v63 = vcombine.low %v11066_v60, %v11070_v22  ;;  %v11278_v41 = vld [vmem:[%s16158_s2 + $0x1bb0] sm:$0xff] }
 0x575   :  { %9269 = vmatpush1.bf16.msra.mxu0 %v11615_v34  ;;  %9243 = vmatprep.subr.bf16.mxu1 %v11552_v48  ;;  %v11505_v34 = vcombine.low %v11186_v19, %v11190_v51  ;;  %v11378_v48 = vcombine.high %v11058_v55, %v11062_v31  ;;  %v11146_v60 = vld [vmem:[%s16158_s2 + $0x1790] sm:$0xff] }
 0x576   :  { %9270 = vmatprep.subr.bf16.mxu0 %v11608_v3  ;;  %v11498_v3 = vcombine.high %v11178_v42, %v11182_v62  ;;  %v11150_v22 = vld [vmem:[%s16158_s2 + $0x17b0] sm:$0xff] }
 0x577   :  { %v11266_v19 = vld [vmem:[%s16158_s2 + $0x1b50] sm:$0xff] }
 0x578   :  { %9244 = vmatpush2.bf16.msra.mxu1 %v11551_v6  ;;  %v11377_v6 = vcombine.low %v11058_v55, %v11062_v31  ;;  %v11270_v51 = vld [vmem:[%s16158_s2 + $0x1b70] sm:$0xff] }
 0x579   :  { %9271 = vmatpush1.bf16.msra.mxu0 %v11607_v53  ;;  %9245 = vmatprep.subr.bf16.mxu1 %v11544_v58  ;;  %v11497_v53 = vcombine.low %v11178_v42, %v11182_v62  ;;  %v11370_v58 = vcombine.high %v11050_v4, %v11054_v17  ;;  %v11138_v55 = vld [vmem:[%s16158_s2 + $0x1750] sm:$0xff] }
 0x57a   :  { %9272 = vmatprep.subr.bf16.mxu0 %v11600_v16  ;;  %v11490_v16 = vcombine.high %v11170_v5, %v11174_v50  ;;  %v11142_v31 = vld [vmem:[%s16158_s2 + $0x1770] sm:$0xff] }
 0x57b   :  { %v11258_v42 = vld [vmem:[%s16158_s2 + $0x1b10] sm:$0xff] }
 0x57c   :  { %9246 = vmatpush2.bf16.msra.mxu1 %v11543_v10  ;;  %v11369_v10 = vcombine.low %v11050_v4, %v11054_v17  ;;  %v11262_v62 = vld [vmem:[%s16158_s2 + $0x1b30] sm:$0xff] }
 0x57d   :  { %9273 = vmatpush1.bf16.msra.mxu0 %v11599_v7  ;;  %9247 = vmatprep.subr.bf16.mxu1 %v11536_v24  ;;  %v11489_v7 = vcombine.low %v11170_v5, %v11174_v50  ;;  %v11362_v24 = vcombine.high %v11042_v27, %v11046_v1  ;;  %v11130_v4 = vld [vmem:[%s16158_s2 + $0x1710] sm:$0xff] }
 0x57e   :  { %9340 = vmatprep.subr.bf16.mxu0 %v11530_v23  ;;  %v11482_v23 = vcombine.high %v11162_v9, %v11166_v59  ;;  %v11134_v17 = vld [vmem:[%s16158_s2 + $0x1730] sm:$0xff] }
 0x57f   :  { %v11250_v5 = vld [vmem:[%s16158_s2 + $0x1ad0] sm:$0xff] }
 0x580   :  { %9248 = vmatpush2.bf16.msra.mxu1 %v11535_v30  ;;  %11664 = vmatmul.mubr.msk.bf16.vlgmr.msra.gmra.mxu0 %vm2645_vm1, %v15454_v14  ;;  %v11361_v30 = vcombine.low %v11042_v27, %v11046_v1  ;;  %v11254_v50 = vld [vmem:[%s16158_s2 + $0x1af0] sm:$0xff] }
 0x581   :  { %9341 = vmatpush1.bf16.msra.mxu0 %v11529_v46  ;;  %9372 = vmatprep.mubr.bf16.mxu0 %v15328_v21  ;;  %v11481_v46 = vcombine.low %v11162_v9, %v11166_v59  ;;  %v11122_v27 = vld [vmem:[%s16158_s2 + $0x16d0] sm:$0xff] }
 0x582   :  { %9299 = vmatprep.subr.bf16.mxu1 %v11402_v38  ;;  %9342 = vmatprep.subr.bf16.mxu0 %v11522_v39  ;;  %v11354_v38 = vcombine.high %v11034_v11, %v11038_v26  ;;  %v11474_v39 = vcombine.high %v11154_v57, %v11158_v28  ;;  %v11126_v1 = vld [vmem:[%s16158_s2 + $0x16f0] sm:$0xff] }
 0x583   :  { %9250 = vmatmul.mubr.bf16.vlgmr.msra.gmra.mxu1 %v15318_v18  ;;  %v11242_v9 = vld [vmem:[%s16158_s2 + $0x1a90] sm:$0xff] }
 0x584   :  { %9300 = vmatpush1.bf16.msra.mxu1 %v11401_v61  ;;  %9331 = vmatprep.mubr.bf16.mxu1 %v15336_v25  ;;  %v11353_v61 = vcombine.low %v11034_v11, %v11038_v26  ;;  %v11246_v59 = vld [vmem:[%s16158_s2 + $0x1ab0] sm:$0xff] }
 0x585   :  { %9343 = vmatpush1.bf16.msra.mxu0 %v11521_v43  ;;  %9301 = vmatprep.subr.bf16.mxu1 %v11394_v44  ;;  %v11473_v43 = vcombine.low %v11154_v57, %v11158_v28  ;;  %v11346_v44 = vcombine.high %v11026_v40, %v11030_v2  ;;  %v11114_v11 = vld [vmem:[%s16158_s2 + $0x1690] sm:$0xff] }
 0x586   :  { %9344 = vmatprep.subr.bf16.mxu0 %v11514_v47  ;;  %v11594_v47 = vcombine.high %v11274_v49, %v11278_v41  ;;  %v11118_v26 = vld [vmem:[%s16158_s2 + $0x16b0] sm:$0xff] }
 0x587   :  { %v11234_v57 = vld [vmem:[%s16158_s2 + $0x1a50] sm:$0xff] }
 0x588   :  { %9302 = vmatpush1.bf16.msra.mxu1 %v11393_v52  ;;  %v11345_v52 = vcombine.low %v11026_v40, %v11030_v2  ;;  %v11238_v28 = vld [vmem:[%s16158_s2 + $0x1a70] sm:$0xff] }
 0x589   :  { %9345 = vmatpush1.bf16.msra.mxu0 %v11513_v54  ;;  %9303 = vmatprep.subr.bf16.mxu1 %v11386_v37  ;;  %v11593_v54 = vcombine.low %v11274_v49, %v11278_v41  ;;  %v11466_v37 = vcombine.high %v11146_v60, %v11150_v22  ;;  %v11106_v40 = vld [vmem:[%s16158_s2 + $0x1650] sm:$0xff] }
 0x58a   :  { %9346 = vmatprep.subr.bf16.mxu0 %v11506_v20  ;;  %v11586_v20 = vcombine.high %v11266_v19, %v11270_v51  ;;  %v11110_v2 = vld [vmem:[%s16158_s2 + $0x1670] sm:$0xff] }
 0x58b   :  { %v11226_v49 = vld [vmem:[%s16158_s2 + $0x1a10] sm:$0xff] }
 0x58c   :  { %9304 = vmatpush1.bf16.msra.mxu1 %v11385_v63  ;;  %v11465_v63 = vcombine.low %v11146_v60, %v11150_v22  ;;  %v11230_v41 = vld [vmem:[%s16158_s2 + $0x1a30] sm:$0xff] }
 0x58d   :  { %9347 = vmatpush1.bf16.msra.mxu0 %v11505_v34  ;;  %9305 = vmatprep.subr.bf16.mxu1 %v11378_v48  ;;  %v11585_v34 = vcombine.low %v11266_v19, %v11270_v51  ;;  %v11458_v48 = vcombine.high %v11138_v55, %v11142_v31  ;;  %v11098_v60 = vld [vmem:[%s16158_s2 + $0x1610] sm:$0xff] }
 0x58e   :  { %9348 = vmatprep.subr.bf16.mxu0 %v11498_v3  ;;  %v11578_v3 = vcombine.high %v11258_v42, %v11262_v62  ;;  %v11102_v22 = vld [vmem:[%s16158_s2 + $0x1630] sm:$0xff] }
 0x58f   :  { %v11218_v19 = vld [vmem:[%s16158_s2 + $0x19d0] sm:$0xff] }
 0x590   :  { %9306 = vmatpush1.bf16.msra.mxu1 %v11377_v6  ;;  %v11457_v6 = vcombine.low %v11138_v55, %v11142_v31  ;;  %v11222_v51 = vld [vmem:[%s16158_s2 + $0x19f0] sm:$0xff] }
 0x591   :  { %9349 = vmatpush1.bf16.msra.mxu0 %v11497_v53  ;;  %9307 = vmatprep.subr.bf16.mxu1 %v11370_v58  ;;  %v11577_v53 = vcombine.low %v11258_v42, %v11262_v62  ;;  %v11450_v58 = vcombine.high %v11130_v4, %v11134_v17  ;;  %v11090_v55 = vld [vmem:[%s16158_s2 + $0x15d0] sm:$0xff]  ;;  %v11083_v42 = vld [vmem:[%s16158_s2 + $0x1598] sm:$0xff] }
 0x592   :  { %9350 = vmatprep.subr.bf16.mxu0 %v11490_v16  ;;  %v11570_v16 = vcombine.high %v11250_v5, %v11254_v50  ;;  %v11094_v31 = vld [vmem:[%s16158_s2 + $0x15f0] sm:$0xff]  ;;  %v11087_v62 = vld [vmem:[%s16158_s2 + $0x15b8] sm:$0xff] }
 0x594   :  { %9308 = vmatpush1.bf16.msra.mxu1 %v11369_v10  ;;  %v11449_v10 = vcombine.low %v11130_v4, %v11134_v17  ;;  %v11338_v4 = vld [vmem:[%s16158_s2 + $0x1d90] sm:$0x33]  ;;  %v11075_v17 = vld [vmem:[%s16158_s2 + $0x1558] sm:$0xff] }
 0x595   :  { %9351 = vmatpush1.bf16.msra.mxu0 %v11489_v7  ;;  %9309 = vmatprep.subr.bf16.mxu1 %v11362_v24  ;;  %v11569_v7 = vcombine.low %v11250_v5, %v11254_v50  ;;  %v11442_v24 = vcombine.high %v11122_v27, %v11126_v1  ;;  %v11079_v5 = vld [vmem:[%s16158_s2 + $0x1578] sm:$0xff]  ;;  %v11409_v50 = vcombine.low %v11090_v55, %v11094_v31 }
 0x596   :  { %9352 = vmatprep.subr.bf16.mxu0 %v11482_v23  ;;  %v11562_v23 = vcombine.high %v11242_v9, %v11246_v59 }
 0x598   :  { %9310 = vmatpush1.bf16.msra.mxu1 %v11361_v30  ;;  %v11441_v30 = vcombine.low %v11122_v27, %v11126_v1  ;;  %v11330_v27 = vld [vmem:[%s16158_s2 + $0x1d50] sm:$0xff] }
 0x599   :  { %9353 = vmatpush1.bf16.msra.mxu0 %v11481_v46  ;;  %9311 = vmatprep.subr.bf16.mxu1 %v11354_v38  ;;  %v11561_v46 = vcombine.low %v11242_v9, %v11246_v59  ;;  %v11434_v38 = vcombine.high %v11114_v11, %v11118_v26  ;;  %v11334_v1 = vld [vmem:[%s16158_s2 + $0x1d70] sm:$0xff]  ;;  %v11067_v9 = vld [vmem:[%s16158_s2 + $0x1518] sm:$0xff] }
 0x59a   :  { %9354 = vmatprep.subr.bf16.mxu0 %v11474_v39  ;;  %v11554_v39 = vcombine.high %v11234_v57, %v11238_v28  ;;  %v11071_v59 = vld [vmem:[%s16158_s2 + $0x1538] sm:$0xff] }
 0x59c   :  { %9312 = vmatpush1.bf16.msra.mxu1 %v11353_v61  ;;  %v11433_v61 = vcombine.low %v11114_v11, %v11118_v26  ;;  %v11322_v11 = vld [vmem:[%s16158_s2 + $0x1d10] sm:$0xff] }
 0x59d   :  { %9355 = vmatpush1.bf16.msra.mxu0 %v11473_v43  ;;  %9313 = vmatprep.subr.bf16.mxu1 %v11346_v44  ;;  %v11553_v43 = vcombine.low %v11234_v57, %v11238_v28  ;;  %v11426_v44 = vcombine.high %v11106_v40, %v11110_v2  ;;  %v11326_v26 = vld [vmem:[%s16158_s2 + $0x1d30] sm:$0xff]  ;;  %v11063_v57 = vld [vmem:[%s16158_s2 + $0x14f8] sm:$0xff]  ;;  %v11649_v28 = vcombine.low %v11330_v27, %v11334_v1 }
 0x59e   :  { %9356 = vmatprep.subr.bf16.mxu0 %v11594_v47  ;;  %v11546_v47 = vcombine.high %v11226_v49, %v11230_v41 }
 0x5a0   :  { %9314 = vmatpush1.bf16.msra.mxu1 %v11345_v52  ;;  %v11425_v52 = vcombine.low %v11106_v40, %v11110_v2  ;;  %v11318_v40 = vld [vmem:[%s16158_s2 + $0x1cf0] sm:$0xff]  ;;  %v11051_v2 = vld [vmem:[%s16158_s2 + $0x1498] sm:$0xff] }
 0x5a1   :  { %9357 = vmatpush2.bf16.msra.mxu0 %v11593_v54  ;;  %9315 = vmatprep.subr.bf16.mxu1 %v11466_v37  ;;  %v11545_v54 = vcombine.low %v11226_v49, %v11230_v41  ;;  %v11418_v37 = vcombine.high %v11098_v60, %v11102_v22  ;;  %v11055_v49 = vld [vmem:[%s16158_s2 + $0x14b8] sm:$0xff]  ;;  %v11641_v41 = vcombine.low %v11322_v11, %v11326_v26 }
 0x5a2   :  { %9358 = vmatprep.subr.bf16.mxu0 %v11586_v20  ;;  %v11538_v20 = vcombine.high %v11218_v19, %v11222_v51 }
 0x5a4   :  { %9316 = vmatpush2.bf16.msra.mxu1 %v11465_v63  ;;  %v11417_v63 = vcombine.low %v11098_v60, %v11102_v22  ;;  %v11310_v60 = vld [vmem:[%s16158_s2 + $0x1cb0] sm:$0xff]  ;;  %v11043_v22 = vld [vmem:[%s16158_s2 + $0x1458] sm:$0xff] }
 0x5a5   :  { %9359 = vmatpush2.bf16.msra.mxu0 %v11585_v34  ;;  %9317 = vmatprep.subr.bf16.mxu1 %v11458_v48  ;;  %v11537_v34 = vcombine.low %v11218_v19, %v11222_v51  ;;  %v11410_v48 = vcombine.high %v11090_v55, %v11094_v31  ;;  %v11047_v19 = vld [vmem:[%s16158_s2 + $0x1478] sm:$0xff]  ;;  %v11302_v55 = vld [vmem:[%s16158_s2 + $0x1c70] sm:$0xff] }
 0x5a6   :  { %9360 = vmatprep.subr.bf16.mxu0 %v11578_v3  ;;  %v11404_v3 = vcombine.high %v11083_v42, %v11087_v62  ;;  %v11035_v31 = vld [vmem:[%s16158_s2 + $0x1418] sm:$0xff] }
 0x5a8   :  { %9318 = vmatpush2.bf16.msra.mxu1 %v11457_v6  ;;  %v11403_v6 = vcombine.low %v11083_v42, %v11087_v62  ;;  %v11039_v42 = vld [vmem:[%s16158_s2 + $0x1438] sm:$0xff] }
 0x5a9   :  { %9361 = vmatpush2.bf16.msra.mxu0 %v11577_v53  ;;  %9319 = vmatprep.subr.bf16.mxu1 %v11450_v58  ;;  %v11657_v53 = vcombine.low %v11338_v4, %v11338_v4  ;;  %v11658_v58 = vcombine.high %v11338_v4, %v11338_v4  ;;  %v11294_v4 = vld [vmem:[%s16158_s2 + $0x1c30] sm:$0xff] }
 0x5aa   :  { %9362 = vmatprep.subr.bf16.mxu0 %v11570_v16  ;;  %v11396_v16 = vcombine.high %v11075_v17, %v11079_v5 }
 0x5ac   :  { %9320 = vmatpush2.bf16.msra.mxu1 %v11449_v10  ;;  %v9042_v10 = vsel %vm2649_vm0, %v11657_v53, 0 }
 0x5ad   :  { %9363 = vmatpush2.bf16.msra.mxu0 %v11569_v7  ;;  %9321 = vmatprep.subr.bf16.mxu1 %v11442_v24  ;;  %v11395_v7 = vcombine.low %v11075_v17, %v11079_v5  ;;  %v11650_v24 = vcombine.high %v11330_v27, %v11334_v1  ;;  %v11027_v17 = vld [vmem:[%s16158_s2 + $0x13d8] sm:$0xff]  ;;  %v11286_v27 = vld [vmem:[%s16158_s2 + $0x1bf0] sm:$0xff] }
 0x5ae   :  { %9364 = vmatprep.subr.bf16.mxu0 %v11562_v23  ;;  %v11388_v23 = vcombine.high %v11067_v9, %v11071_v59  ;;  %v11031_v5 = vld [vmem:[%s16158_s2 + $0x13f8] sm:$0xff] }
 0x5af   :  { %v11147_v1 = vld [vmem:[%s16158_s2 + $0x1798] sm:$0xff] }
 0x5b0   :  { %9322 = vmatpush2.bf16.msra.mxu1 %v11441_v30  ;;  %v11387_v30 = vcombine.low %v11067_v9, %v11071_v59  ;;  %v11151_v9 = vld [vmem:[%s16158_s2 + $0x17b8] sm:$0xff] }
 0x5b1   :  { %9365 = vmatpush2.bf16.msra.mxu0 %v11561_v46  ;;  %9323 = vmatprep.subr.bf16.mxu1 %v11434_v38  ;;  %v11642_v46 = vcombine.high %v11322_v11, %v11326_v26  ;;  %v11215_v11 = vld [vmem:[%s16158_s2 + $0x19b8] sm:$0xff] }
 0x5b2   :  { %9366 = vmatprep.subr.bf16.mxu0 %v11554_v39  ;;  %v11314_v39 = vld [vmem:[%s16158_s2 + $0x1cd0] sm:$0xff]  ;;  %v11139_v26 = vld [vmem:[%s16158_s2 + $0x1758] sm:$0xff] }
 0x5b3   :  { %v11633_v51 = vcombine.low %v11314_v39, %v11318_v40 }
 0x5b4   :  { %9324 = vmatpush2.bf16.msra.mxu1 %v11433_v61 }
 0x5b5   :  { %9367 = vmatpush2.bf16.msra.mxu0 %v11553_v43  ;;  %9325 = vmatprep.subr.bf16.mxu1 %v11426_v44  ;;  %v11634_v43 = vcombine.high %v11314_v39, %v11318_v40  ;;  %v11372_v44 = vcombine.high %v11051_v2, %v11055_v49  ;;  %v11203_v39 = vld [vmem:[%s16158_s2 + $0x1958] sm:$0xff] }
 0x5b6   :  { %9368 = vmatprep.subr.bf16.mxu0 %v11546_v47  ;;  %v11306_v47 = vld [vmem:[%s16158_s2 + $0x1c90] sm:$0xff]  ;;  %v11207_v40 = vld [vmem:[%s16158_s2 + $0x1978] sm:$0xff] }
 0x5b7   :  { %v11625_v62 = vcombine.low %v11306_v47, %v11310_v60 }
 0x5b8   :  { %9326 = vmatpush2.bf16.msra.mxu1 %v11425_v52  ;;  %v11371_v52 = vcombine.low %v11051_v2, %v11055_v49  ;;  %v11131_v49 = vld [vmem:[%s16158_s2 + $0x1718] sm:$0xff] }
 0x5b9   :  { %9369 = vmatpush2.bf16.msra.mxu0 %v11545_v54  ;;  %9327 = vmatprep.subr.bf16.mxu1 %v11418_v37  ;;  %v11626_v54 = vcombine.high %v11306_v47, %v11310_v60  ;;  %v11364_v37 = vcombine.high %v11043_v22, %v11047_v19  ;;  %v11524_v60 = vcombine.high %v11203_v39, %v11207_v40 }
 0x5ba   :  { %9370 = vmatprep.subr.bf16.mxu0 %v11538_v20  ;;  %v11298_v20 = vld [vmem:[%s16158_s2 + $0x1c50] sm:$0xff] }
 0x5bc   :  { %9328 = vmatpush2.bf16.msra.mxu1 %v11417_v63  ;;  %v11363_v63 = vcombine.low %v11043_v22, %v11047_v19 }
 0x5bd   :  { %9371 = vmatpush2.bf16.msra.mxu0 %v11537_v34  ;;  %9329 = vmatprep.subr.bf16.mxu1 %v11410_v48  ;;  %v11618_v34 = vcombine.high %v11298_v20, %v11302_v55  ;;  %v11356_v48 = vcombine.high %v11035_v31, %v11039_v42 }
 0x5be   :  { %9422 = vmatprep.subr.bf16.mxu0 %v11404_v3  ;;  %v11290_v3 = vld [vmem:[%s16158_s2 + $0x1c10] sm:$0xff] }
 0x5bf   :  { %v11610_v53 = vcombine.high %v11290_v3, %v11294_v4  ;;  %v11609_v59 = vcombine.low %v11290_v3, %v11294_v4 }
 0x5c0   :  { %9330 = vmatpush2.bf16.msra.mxu1 %v11409_v50  ;;  %9373 = vmatmul.mubr.bf16.vlgmr.msra.gmra.mxu0 %v15318_v18  ;;  %v11617_v50 = vcombine.low %v11298_v20, %v11302_v55 }
 0x5c1   :  { %9423 = vmatpush1.bf16.msra.mxu0 %v11403_v6  ;;  %9454 = vmatprep.mubr.bf16.mxu0 %v15336_v25  ;;  %v11059_v25 = vld [vmem:[%s16158_s2 + $0x14d8] sm:$0xff]  ;;  %v11355_v6 = vcombine.low %v11035_v31, %v11039_v42  ;;  %v11523_v31 = vcombine.low %v11203_v39, %v11207_v40 }
 0x5c2   :  { %11665 = vmatprep.subr.msk.bf16.mxu1 %vm2649_vm0, %v11658_v58  ;;  %9424 = vmatprep.subr.bf16.mxu0 %v11396_v16  ;;  %v11380_v38 = vcombine.high %v11059_v25, %v11063_v57  ;;  %v11379_v61 = vcombine.low %v11059_v25, %v11063_v57  ;;  %v11348_v58 = vcombine.high %v11027_v17, %v11031_v5  ;;  %v11282_v16 = vld [vmem:[%s16158_s2 + $0x1bd0] sm:$0xff]  ;;  %v11143_v25 = vld [vmem:[%s16158_s2 + $0x1778] sm:$0xff] }
 0x5c3   :  { %9332 = vmatmul.mubr.bf16.vlgmr.msra.gmra.mxu1 %v15345_v29  ;;  %v11601_v57 = vcombine.low %v11282_v16, %v11286_v27 }
 0x5c4   :  { %9382 = vmatpush1.bf16.msra.mxu1 %v9042_v10  ;;  %9413 = vmatprep.mubr.bf16.mxu1 %v12124_v12  ;;  %v11347_v10 = vcombine.low %v11027_v17, %v11031_v5  ;;  %v11187_v17 = vld [vmem:[%s16158_s2 + $0x18d8] sm:$0xff] }
 0x5c5   :  { %9425 = vmatpush1.bf16.msra.mxu0 %v11395_v7  ;;  %9383 = vmatprep.subr.bf16.mxu1 %v11650_v24  ;;  %v11602_v7 = vcombine.high %v11282_v16, %v11286_v27  ;;  %v11468_v24 = vcombine.high %v11147_v1, %v11151_v9  ;;  %v11115_v5 = vld [vmem:[%s16158_s2 + $0x1698] sm:$0xff] }
 0x5c6   :  { %9426 = vmatprep.subr.bf16.mxu0 %v11388_v23  ;;  %v11211_v23 = vld [vmem:[%s16158_s2 + $0x1998] sm:$0xff] }
 0x5c8   :  { %9384 = vmatpush1.bf16.msra.mxu1 %v11649_v28  ;;  %v15939_v28 = vld [vmem:[%s16160_s4 + $0x10] sm:$0xff] }
 0x5c9   :  { %9427 = vmatpush1.bf16.msra.mxu0 %v11387_v30  ;;  %9385 = vmatprep.subr.bf16.mxu1 %v11642_v46  ;;  %v11467_v30 = vcombine.low %v11147_v1, %v11151_v9  ;;  %v11532_v46 = vcombine.high %v11211_v23, %v11215_v11  ;;  %v7409_v2 = vrot.slane %v15939_v28, %v12629_v32  ;;  %v11179_v9 = vld [vmem:[%s16158_s2 + $0x1898] sm:$0xff] }
 0x5ca   :  { %9428 = vmatprep.subr.bf16.mxu0 %v11380_v38  ;;  %v11460_v38 = vcombine.high %v11139_v26, %v11143_v25  ;;  %v7413_v47 = vrot.slane %v15939_v28, %v12640_v35  ;;  %v11123_v35 = vld [vmem:[%s16158_s2 + $0x16d8] sm:$0xff] }
 0x5cc   :  { %9386 = vmatpush1.bf16.msra.mxu1 %v11641_v41  ;;  %v11135_v41 = vld [vmem:[%s16158_s2 + $0x1738] sm:$0xff] }
 0x5cd   :  { %9429 = vmatpush1.bf16.msra.mxu0 %v11379_v61  ;;  %9387 = vmatprep.subr.bf16.mxu1 %v11634_v43  ;;  %v11531_v43 = vcombine.low %v11211_v23, %v11215_v11  ;;  %v11452_v19 = vcombine.high %v11131_v49, %v11135_v41  ;;  %v11451_v42 = vcombine.low %v11131_v49, %v11135_v41  ;;  %v11163_v49 = vld [vmem:[%s16158_s2 + $0x1818] sm:$0xff] }
 0x5ce   :  { %9430 = vmatprep.subr.bf16.mxu0 %v11372_v44  ;;  %v11459_v44 = vcombine.low %v11139_v26, %v11143_v25  ;;  %v11171_v25 = vld [vmem:[%s16158_s2 + $0x1858] sm:$0xff] }
 0x5cf   :  { %v11167_v41 = vld [vmem:[%s16158_s2 + $0x1838] sm:$0xff] }
 0x5d0   :  { %9388 = vmatpush1.bf16.msra.mxu1 %v11633_v51  ;;  %v11195_v51 = vld [vmem:[%s16158_s2 + $0x1918] sm:$0xff] }
 0x5d1   :  { %9431 = vmatpush1.bf16.msra.mxu0 %v11371_v52  ;;  %9389 = vmatprep.subr.bf16.mxu1 %v11626_v54  ;;  %v11199_v52 = vld [vmem:[%s16158_s2 + $0x1938] sm:$0xff] }
 0x5d2   :  { %9432 = vmatprep.subr.bf16.mxu0 %v11364_v37  ;;  %v11127_v37 = vld [vmem:[%s16158_s2 + $0x16f8] sm:$0xff] }
 0x5d3   :  { %v11444_v4 = vcombine.high %v11123_v35, %v11127_v37  ;;  %v11443_v16 = vcombine.low %v11123_v35, %v11127_v37 }
 0x5d4   :  { %9390 = vmatpush1.bf16.msra.mxu1 %v11625_v62 }
 0x5d5   :  { %9433 = vmatpush1.bf16.msra.mxu0 %v11363_v63  ;;  %9391 = vmatprep.subr.bf16.mxu1 %v11618_v34  ;;  %v11516_v63 = vcombine.high %v11195_v51, %v11199_v52 }
 0x5d6   :  { %9434 = vmatprep.subr.bf16.mxu0 %v11356_v48 }
 0x5d8   :  { %9392 = vmatpush1.bf16.msra.mxu1 %v11617_v50  ;;  %v11119_v50 = vld [vmem:[%s16158_s2 + $0x16b8] sm:$0xff] }
 0x5d9   :  { %9435 = vmatpush1.bf16.msra.mxu0 %v11355_v6  ;;  %9393 = vmatprep.subr.bf16.mxu1 %v11610_v53  ;;  %v11436_v1 = vcombine.high %v11115_v5, %v11119_v50  ;;  %v11435_v23 = vcombine.low %v11115_v5, %v11119_v50  ;;  %v11323_v5 = vld [vmem:[%s16158_s2 + $0x1d18] sm:$0xff] }
 0x5da   :  { %9436 = vmatprep.subr.bf16.mxu0 %v11348_v58  ;;  %v11515_v58 = vcombine.low %v11195_v51, %v11199_v52  ;;  %v11339_v51 = vld [vmem:[%s16158_s2 + $0x1d98] sm:$0x33]  ;;  %v11483_v52 = vcombine.low %v11163_v49, %v11167_v41 }
 0x5db   :  { %v11660_v37 = vcombine.high %v11339_v51, %v11339_v51  ;;  %v11327_v50 = vld [vmem:[%s16158_s2 + $0x1d38] sm:$0xff] }
 0x5dc   :  { %9394 = vmatpush1.bf16.msra.mxu1 %v11609_v59  ;;  %v11183_v59 = vld [vmem:[%s16158_s2 + $0x18b8] sm:$0xff] }
 0x5dd   :  { %9437 = vmatpush1.bf16.msra.mxu0 %v11347_v10  ;;  %9395 = vmatprep.subr.bf16.mxu1 %v11602_v7  ;;  %v11107_v10 = vld [vmem:[%s16158_s2 + $0x1658] sm:$0xff]  ;;  %v11500_v11 = vcombine.high %v11179_v9, %v11183_v59 }
 0x5de   :  { %9438 = vmatprep.subr.bf16.mxu0 %v11468_v24  ;;  %v11111_v7 = vld [vmem:[%s16158_s2 + $0x1678] sm:$0xff] }
 0x5df   :  { %v11428_v26 = vcombine.high %v11107_v10, %v11111_v7  ;;  %v11427_v39 = vcombine.low %v11107_v10, %v11111_v7  ;;  %v11319_v10 = vld [vmem:[%s16158_s2 + $0x1cf8] sm:$0xff] }
 0x5e0   :  { %9396 = vmatpush1.bf16.msra.mxu1 %v11601_v57  ;;  %v9128_v61 = vpop.f32.mrf.mxu0  ;;  %v11175_v57 = vld [vmem:[%s16158_s2 + $0x1878] sm:$0xff] }
 0x5e1   :  { %9439 = vmatpush2.bf16.msra.mxu0 %v11467_v30  ;;  %9463 = vmatprep.subr.bf16.mxu1 %v11532_v46  ;;  %v11099_v30 = vld [vmem:[%s16158_s2 + $0x1618] sm:$0xff]  ;;  %v11492_v40 = vcombine.high %v11171_v25, %v11175_v57 }
 0x5e2   :  { %v9087_v22 = vpop.f32.mrf.mxu1  ;;  %v9130_v32 = vpop.f32.mrf.mxu0  ;;  %9440 = vmatprep.subr.bf16.mxu0 %v11460_v38  ;;  %v11103_v46 = vld [vmem:[%s16158_s2 + $0x1638] sm:$0xff]  ;;  %v11499_v38 = vcombine.low %v11179_v9, %v11183_v59 }
 0x5e3   :  { %v9088_v54 = vadd.f32 %v9087_v22, %v7409_v2  ;;  %11666 = vmatmul.mubr.msk.bf16.vlgmr.msra.gmra.mxu1 %vm2645_vm1, %v15454_v14  ;;  %v11420_v2 = vcombine.high %v11099_v30, %v11103_v46  ;;  %v11263_v9 = vld [vmem:[%s16158_s2 + $0x1b38] sm:$0xff] }
 0x5e4   :  { %9464 = vmatpush1.bf16.msra.mxu1 %v11531_v43  ;;  %9495 = vmatprep.mubr.bf16.mxu1 %v15328_v21  ;;  %v9089_v20 = vpop.f32.mrf.mxu1  ;;  %v9132_v55 = vpop.f32.mrf.mxu0  ;;  %v11191_v21 = vld [vmem:[%s16158_s2 + $0x18f8] sm:$0xff] }
 0x5e5   :  { %v9090_v62 = vadd.f32 %v9089_v20, %v7413_v47  ;;  %9441 = vmatpush2.bf16.msra.mxu0 %v11459_v44  ;;  %9465 = vmatprep.subr.bf16.mxu1 %v11524_v60  ;;  %v15972_v34 = vadd.f32 %v9128_v61, %v9088_v54  ;;  %v11508_v27 = vcombine.high %v11187_v17, %v11191_v21  ;;  %v11091_v61 = vld [vmem:[%s16158_s2 + $0x15d8] sm:$0xff] }
 0x5e6   :  { %v9091_v48 = vpop.f32.mrf.mxu1  ;;  %v9133_v3 = vpop.f32.mrf.mxu0  ;;  %9442 = vmatprep.subr.bf16.mxu0 %v11452_v19  ;;  %v11507_v24 = vcombine.low %v11187_v17, %v11191_v21  ;;  %v11095_v43 = vld [vmem:[%s16158_s2 + $0x15f8] sm:$0xff]  ;;  %v11491_v44 = vcombine.low %v11171_v25, %v11175_v57  ;;  %v11419_v47 = vcombine.low %v11099_v30, %v11103_v46  ;;  %v11484_v60 = vcombine.high %v11163_v49, %v11167_v41 }
 0x5e7   :  { %v15986_v6 = vadd.f32 %v9130_v32, %v9090_v62  ;;  %v11412_v22 = vcombine.high %v11091_v61, %v11095_v43  ;;  %v11155_v32 = vld [vmem:[%s16158_s2 + $0x17d8] sm:$0xff]  ;;  %v11411_v54 = vcombine.low %v11091_v61, %v11095_v43  ;;  %v11659_v20 = vcombine.low %v11339_v51, %v11339_v51 }
 0x5e8   :  { %9466 = vmatpush1.bf16.msra.mxu1 %v11523_v31  ;;  %v9092_v53 = vpop.f32.mrf.mxu1  ;;  %v11159_v19 = vld [vmem:[%s16158_s2 + $0x17f8] sm:$0xff] }
 0x5e9   :  { %9443 = vmatpush2.bf16.msra.mxu0 %v11451_v42  ;;  %9467 = vmatprep.subr.bf16.mxu1 %v11516_v63  ;;  %v11476_v35 = vcombine.high %v11155_v32, %v11159_v19  ;;  %v11275_v55 = vld [vmem:[%s16158_s2 + $0x1b98] sm:$0xff]  ;;  %v11475_v63 = vcombine.low %v11155_v32, %v11159_v19  ;;  %v9048_v3 = vsel %vm2649_vm0, %v11659_v20, 0 }
 0x5ea   :  { %9444 = vmatprep.subr.bf16.mxu0 %v11444_v4  ;;  %v11279_v31 = vld [vmem:[%s16158_s2 + $0x1bb8] sm:$0xff] }
 0x5eb   :  { %v11331_v42 = vld [vmem:[%s16158_s2 + $0x1d58] sm:$0xff]  ;;  %v11596_v48 = vcombine.high %v11275_v55, %v11279_v31  ;;  %v11595_v53 = vcombine.low %v11275_v55, %v11279_v31 }
 0x5ec   :  { %9468 = vmatpush1.bf16.msra.mxu1 %v11515_v58  ;;  %v11335_v62 = vld [vmem:[%s16158_s2 + $0x1d78] sm:$0xff] }
 0x5ed   :  { %9445 = vmatpush2.bf16.msra.mxu0 %v11443_v16  ;;  %9469 = vmatprep.subr.bf16.mxu1 %v11508_v27  ;;  %v11652_v4 = vcombine.high %v11331_v42, %v11335_v62  ;;  %v11267_v17 = vld [vmem:[%s16158_s2 + $0x1b58] sm:$0xff]  ;;  %v11651_v58 = vcombine.low %v11331_v42, %v11335_v62  ;;  %v11644_v27 = vcombine.high %v11323_v5, %v11327_v50 }
 0x5ee   :  { %9446 = vmatprep.subr.bf16.mxu0 %v11436_v1  ;;  %v11271_v21 = vld [vmem:[%s16158_s2 + $0x1b78] sm:$0xff] }
 0x5ef   :  { %v11588_v16 = vcombine.high %v11267_v17, %v11271_v21  ;;  %v11259_v1 = vld [vmem:[%s16158_s2 + $0x1b18] sm:$0xff] }
 0x5f0   :  { %9470 = vmatpush1.bf16.msra.mxu1 %v11507_v24  ;;  %v11587_v24 = vcombine.low %v11267_v17, %v11271_v21  ;;  %v11251_v57 = vld [vmem:[%s16158_s2 + $0x1ad8] sm:$0xff] }
 0x5f1   :  { %9447 = vmatpush2.bf16.msra.mxu0 %v11435_v23  ;;  %9471 = vmatprep.subr.bf16.mxu1 %v11500_v11  ;;  %v11643_v11 = vcombine.low %v11323_v5, %v11327_v50  ;;  %v11255_v30 = vld [vmem:[%s16158_s2 + $0x1af8] sm:$0xff] }
 0x5f2   :  { %9448 = vmatprep.subr.bf16.mxu0 %v11428_v26  ;;  %v11580_v26 = vcombine.high %v11259_v1, %v11263_v9  ;;  %v11307_v46 = vld [vmem:[%s16158_s2 + $0x1c98] sm:$0xff]  ;;  %v11572_v41 = vcombine.high %v11251_v57, %v11255_v30  ;;  %v11571_v32 = vcombine.low %v11251_v57, %v11255_v30 }
 0x5f3   :  { %v11295_v20 = vld [vmem:[%s16158_s2 + $0x1c38] sm:$0xff] }
 0x5f4   :  { %9472 = vmatpush1.bf16.msra.mxu1 %v11499_v38  ;;  %v11311_v38 = vld [vmem:[%s16158_s2 + $0x1cb8] sm:$0xff] }
 0x5f5   :  { %9449 = vmatpush2.bf16.msra.mxu0 %v11427_v39  ;;  %9473 = vmatprep.subr.bf16.mxu1 %v11492_v40  ;;  %v11579_v40 = vcombine.low %v11259_v1, %v11263_v9  ;;  %v11628_v43 = vcombine.high %v11307_v46, %v11311_v38  ;;  %v11627_v19 = vcombine.low %v11307_v46, %v11311_v38 }
 0x5f6   :  { %9450 = vmatprep.subr.bf16.mxu0 %v11420_v2 }
 0x5f8   :  { %9474 = vmatpush1.bf16.msra.mxu1 %v11491_v44  ;;  %v11243_v44 = vld [vmem:[%s16158_s2 + $0x1a98] sm:$0xff] }
 0x5f9   :  { %9451 = vmatpush2.bf16.msra.mxu0 %v11419_v47  ;;  %9475 = vmatprep.subr.bf16.mxu1 %v11484_v60  ;;  %v11247_v47 = vld [vmem:[%s16158_s2 + $0x1ab8] sm:$0xff] }
 0x5fa   :  { %9452 = vmatprep.subr.bf16.mxu0 %v11412_v22  ;;  %v11299_v60 = vld [vmem:[%s16158_s2 + $0x1c58] sm:$0xff]  ;;  %v11564_v51 = vcombine.high %v11243_v44, %v11247_v47  ;;  %v11563_v55 = vcombine.low %v11243_v44, %v11247_v47  ;;  %v7425_v47 = vrot.slane %v15939_v28, %v12749_v56 }
 0x5fb   :  { %v11303_v22 = vld [vmem:[%s16158_s2 + $0x1c78] sm:$0xff] }
 0x5fc   :  { %9476 = vmatpush1.bf16.msra.mxu1 %v11483_v52  ;;  %v11620_v52 = vcombine.high %v11299_v60, %v11303_v22  ;;  %v11619_v31 = vcombine.low %v11299_v60, %v11303_v22  ;;  %v7429_v22 = vrot.slane %v15939_v28, %v13782_v13 }
 0x5fd   :  { %9453 = vmatpush2.bf16.msra.mxu0 %v11411_v54  ;;  %9477 = vmatprep.subr.bf16.mxu1 %v11476_v35  ;;  %v11235_v54 = vld [vmem:[%s16158_s2 + $0x1a58] sm:$0xff] }
 0x5fe   :  { %11667 = vmatprep.subr.msk.bf16.mxu0 %vm2649_vm0, %v11660_v37  ;;  %v11239_v35 = vld [vmem:[%s16158_s2 + $0x1a78] sm:$0xff] }
 0x5ff   :  { %v11291_v37 = vld [vmem:[%s16158_s2 + $0x1c18] sm:$0xff]  ;;  %v11556_v42 = vcombine.high %v11235_v54, %v11239_v35  ;;  %v11555_v17 = vcombine.low %v11235_v54, %v11239_v35 }
 0x600   :  { %9455 = vmatmul.mubr.bf16.vlgmr.msra.gmra.mxu0 %v15345_v29  ;;  %9478 = vmatpush1.bf16.msra.mxu1 %v11475_v63  ;;  %v11315_v29 = vld [vmem:[%s16158_s2 + $0x1cd8] sm:$0xff]  ;;  %v11612_v62 = vcombine.high %v11291_v37, %v11295_v20  ;;  %v11611_v21 = vcombine.low %v11291_v37, %v11295_v20 }
 0x601   :  { %9505 = vmatpush1.bf16.msra.mxu0 %v9048_v3  ;;  %9479 = vmatprep.subr.bf16.mxu1 %v11596_v48  ;;  %v11636_v25 = vcombine.high %v11315_v29, %v11319_v10  ;;  %v11635_v49 = vcombine.low %v11315_v29, %v11319_v10  ;;  %v11227_v63 = vld [vmem:[%s16158_s2 + $0x1a18] sm:$0xff] }
 0x602   :  { %9506 = vmatprep.subr.bf16.mxu0 %v11652_v4  ;;  %9536 = vmatprep.mubr.bf16.mxu0 %v12124_v12  ;;  %v11231_v48 = vld [vmem:[%s16158_s2 + $0x1a38] sm:$0xff] }
 0x603   :  { %v9169_v59 = vpop.f32.mrf.mxu1  ;;  %v11283_v3 = vld [vmem:[%s16158_s2 + $0x1bd8] sm:$0xff]  ;;  %v11548_v5 = vcombine.high %v11227_v63, %v11231_v48 }
 0x604   :  { %v9170_v7 = vadd.f32 %v9169_v59, %v15972_v34  ;;  %9480 = vmatpush2.bf16.msra.mxu1 %v11595_v53  ;;  %v11287_v4 = vld [vmem:[%s16158_s2 + $0x1bf8] sm:$0xff] }
 0x605   :  { %9507 = vmatpush1.bf16.msra.mxu0 %v11651_v58  ;;  %v9171_v23 = vpop.f32.mrf.mxu1  ;;  %9481 = vmatprep.subr.bf16.mxu1 %v11588_v16  ;;  %v11604_v50 = vcombine.high %v11283_v3, %v11287_v4  ;;  %v11219_v53 = vld [vmem:[%s16158_s2 + $0x19d8] sm:$0xff]  ;;  %v11547_v16 = vcombine.low %v11227_v63, %v11231_v48 }
 0x606   :  { %v9172_v12 = vadd.f32 %v9171_v23, %v15986_v6  ;;  %9508 = vmatprep.subr.bf16.mxu0 %v11644_v27  ;;  %v9545_v6 = vmax.f32 %v9170_v7, 0.0  ;;  %v11223_v58 = vld [vmem:[%s16158_s2 + $0x19f8] sm:$0xff]  ;;  %v11603_v27 = vcombine.low %v11283_v3, %v11287_v4  ;;  %v7421_v23 = vrot.slane %v15939_v28, %v12643_v36  ;;  %s12126_s2 = smov [#allocation2]  }
 0x607   :  { %v9173_v34 = vpop.f32.mrf.mxu1  ;;  %v11540_v1 = vcombine.high %v11219_v53, %v11223_v58  ;;  %v11539_v9 = vcombine.low %v11219_v53, %v11223_v58  ;;  %v7433_v53 = vrot.slane %v15939_v28, %v13964_v45  ;;  %v7437_v58 = vrot.slane %v15939_v28, %v13967_v15  ;;  %s9605_s6 = sshll.u32 %s12126_s2, 4  ;;  %s9606_s6 = int_to_ptr.vmem [resolvable:$true] %s9605_s6 }
 0x608   :  { %v9546_v39 = vmax.f32 %v9172_v12, 0.0  ;;  %9482 = vmatpush2.bf16.msra.mxu1 %v11587_v24  ;;  %v7417_v24 = vrot.slane %v15939_v28, %v12632_v33  ;;  %s12102_s7 = scalar_lea.vmem %s9606_s6, 768  ;;  %p12107_p1 = scmp.lt.s32.totalorder %s9606_s6, %s9606_s6 }
 0x609   :  { %9509 = vmatpush1.bf16.msra.mxu0 %v11643_v11  ;;  %v9174_v2 = vpop.f32.mrf.mxu1  ;;  %9483 = vmatprep.subr.bf16.mxu1 %v11580_v26  ;;  %p12103_p0 = scmp.ne.s32.totalorder %s9606_s6, %s12102_s7  ;;  %p12108_p2 = scmp.lt.s32.totalorder %s12102_s7, %s12102_s7 }
 0x60a   :  { %v16087_v61 = vcombine.low %v9545_v6, %v9546_v39  ;;  %9510 = vmatprep.subr.bf16.mxu0 %v11636_v25 }
 0x60b   :  { %p12109_p3 = por %p12108_p2, %p12107_p1 }
 0x60c   :  { %9484 = vmatpush2.bf16.msra.mxu1 %v11579_v40  ;;  %v9569_v36 = vrot.slane %v16087_v61, %v13623_v0 }
 0x60d   :  { %9511 = vmatpush1.bf16.msra.mxu0 %v11635_v49  ;;  %9485 = vmatprep.subr.bf16.mxu1 %v11572_v41  ;;  %p12110_p4 = pnand %p12109_p3, %p12103_p0 }
 0x60e   :  { %9512 = vmatprep.subr.bf16.mxu0 %v11628_v43 }
 0x610   :  { %9486 = vmatpush2.bf16.msra.mxu1 %v11571_v32 }
 0x611   :  { %9513 = vmatpush1.bf16.msra.mxu0 %v11627_v19  ;;  %9487 = vmatprep.subr.bf16.mxu1 %v11564_v51 }
 0x612   :  { %9514 = vmatprep.subr.bf16.mxu0 %v11620_v52 }
 0x614   :  { %9488 = vmatpush2.bf16.msra.mxu1 %v11563_v55 }
 0x615   :  { %9515 = vmatpush1.bf16.msra.mxu0 %v11619_v31  ;;  %9489 = vmatprep.subr.bf16.mxu1 %v11556_v42 }
 0x616   :  { %9516 = vmatprep.subr.bf16.mxu0 %v11612_v62 }
 0x618   :  { %9490 = vmatpush2.bf16.msra.mxu1 %v11555_v17 }
 0x619   :  { %9517 = vmatpush1.bf16.msra.mxu0 %v11611_v21  ;;  %9491 = vmatprep.subr.bf16.mxu1 %v11548_v5 }
 0x61a   :  { %9518 = vmatprep.subr.bf16.mxu0 %v11604_v50 }
 0x61c   :  { %9492 = vmatpush2.bf16.msra.mxu1 %v11547_v16 }
 0x61d   :  { %9519 = vmatpush1.bf16.msra.mxu0 %v11603_v27  ;;  %9493 = vmatprep.subr.bf16.mxu1 %v11540_v1 }
 0x620   :  { %v9210_v59 = vpop.f32.mrf.mxu0  ;;  %9494 = vmatpush2.bf16.msra.mxu1 %v11539_v9  ;;  %11668 = vmatmul.mubr.msk.bf16.vlgmr.msra.gmra.mxu0 %vm2645_vm1, %v15454_v14 }
 0x621   :  { %v9211_v26 = vadd.f32 %v9210_v59, %v7417_v24 }
 0x622   :  { %v9212_v29 = vpop.f32.mrf.mxu0 }
 0x623   :  { %9496 = vmatmul.mubr.bf16.vlgmr.msra.gmra.mxu1 %v15318_v18  ;;  %v9213_v57 = vadd.f32 %v9212_v29, %v7421_v23 }
 0x624   :  { %v9214_v10 = vpop.f32.mrf.mxu0 }
 0x626   :  { %v9215_v7 = vpop.f32.mrf.mxu0 }
 0x640   :  { %v9292_v11 = vpop.f32.mrf.mxu0 }
 0x642   :  { %v9294_v12 = vpop.f32.mrf.mxu0 }
 0x643   :  { %v9251_v25 = vpop.f32.mrf.mxu1 }
 0x644   :  { %v9252_v30 = vadd.f32 %v9251_v25, %v9211_v26  ;;  %v9296_v34 = vpop.f32.mrf.mxu0 }
 0x645   :  { %v9253_v46 = vpop.f32.mrf.mxu1 }
 0x646   :  { %v9293_v14 = vadd.f32 %v9292_v11, %v9252_v30  ;;  %v9254_v38 = vadd.f32 %v9253_v46, %v9213_v57  ;;  %v9297_v6 = vpop.f32.mrf.mxu0 }
 0x647   :  { %v9255_v18 = vpop.f32.mrf.mxu1 }
 0x648   :  { %v9295_v39 = vadd.f32 %v9294_v12, %v9254_v38  ;;  %v9547_v2 = vmax.f32 %v9293_v14, 0.0 }
 0x649   :  { %v9256_v40 = vpop.f32.mrf.mxu1 }
 0x64a   :  { %v9548_v49 = vmax.f32 %v9295_v39, 0.0 }
 0x64c   :  { %v9562_v33 = vcombine.low %v9547_v2, %v9548_v49 }
 0x64e   :  { %v9576_v41 = vrot.slane %v9562_v33, %v13623_v0 }
 0x650   :  { %v9577_v43 = vcombine.low %v9569_v36, %v9576_v41 }
 0x652   :  { %9598 = vst [vmem:[#allocation2 + $0x20] sm:$0xff] %v9577_v43 }
 0x680   :  { %v9374_v44 = vpop.f32.mrf.mxu0 }
 0x682   :  { %v9376_v60 = vpop.f32.mrf.mxu0 }
 0x683   :  { %v9333_v32 = vpop.f32.mrf.mxu1 }
 0x684   :  { %v9334_v19 = vadd.f32 %v9333_v32, %v7425_v47  ;;  %v9378_v51 = vpop.f32.mrf.mxu0 }
 0x685   :  { %v9335_v52 = vpop.f32.mrf.mxu1 }
 0x686   :  { %v9336_v54 = vadd.f32 %v9335_v52, %v7429_v22  ;;  %v9379_v35 = vpop.f32.mrf.mxu0  ;;  %v9375_v37 = vadd.f32 %v9374_v44, %v9334_v19 }
 0x687   :  { %v9337_v61 = vpop.f32.mrf.mxu1 }
 0x688   :  { %v9377_v20 = vadd.f32 %v9376_v60, %v9336_v54 }
 0x689   :  { %v9338_v55 = vpop.f32.mrf.mxu1 }
 0x6a3   :  { %v9415_v31 = vpop.f32.mrf.mxu1 }
 0x6a4   :  { %v9416_v42 = vadd.f32 %v9415_v31, %v9375_v37 }
 0x6a5   :  { %v9417_v62 = vpop.f32.mrf.mxu1 }
 0x6a6   :  { %v9418_v63 = vadd.f32 %v9417_v62, %v9377_v20  ;;  %v9549_v56 = vmax.f32 %v9416_v42, 0.0 }
 0x6a7   :  { %v9419_v48 = vpop.f32.mrf.mxu1 }
 0x6a8   :  { %v9550_v3 = vmax.f32 %v9418_v63, 0.0 }
 0x6a9   :  { %v9420_v4 = vpop.f32.mrf.mxu1 }
 0x6aa   :  { %v9578_v17 = vcombine.low %v9549_v56, %v9550_v3 }
 0x6ac   :  { %v9586_v15 = vrot.slane %v9578_v17, %v13623_v0 }
 0x6c0   :  { %v9456_v13 = vpop.f32.mrf.mxu0 }
 0x6c1   :  { %v9457_v27 = vadd.f32 %v9456_v13, %v7433_v53 }
 0x6c2   :  { %v9458_v21 = vpop.f32.mrf.mxu0 }
 0x6c3   :  { %v9459_v59 = vadd.f32 %v9458_v21, %v7437_v58 }
 0x6c4   :  { %v9460_v5 = vpop.f32.mrf.mxu0 }
 0x6c6   :  { %v9461_v50 = vpop.f32.mrf.mxu0 }
 0x6e0   :  { %v9538_v16 = vpop.f32.mrf.mxu0 }
 0x6e2   :  { %v9540_v1 = vpop.f32.mrf.mxu0 }
 0x6e3   :  { %v9497_v9 = vpop.f32.mrf.mxu1 }
 0x6e4   :  { %v9498_v29 = vadd.f32 %v9497_v9, %v9457_v27  ;;  %v9542_v10 = vpop.f32.mrf.mxu0 }
 0x6e5   :  { %v9499_v7 = vpop.f32.mrf.mxu1 }
 0x6e6   :  { %v9539_v24 = vadd.f32 %v9538_v16, %v9498_v29  ;;  %v9500_v23 = vadd.f32 %v9499_v7, %v9459_v59  ;;  %v9543_v11 = vpop.f32.mrf.mxu0 }
 0x6e7   :  { %v9501_v26 = vpop.f32.mrf.mxu1 }
 0x6e8   :  { %v9541_v12 = vadd.f32 %v9540_v1, %v9500_v23  ;;  %v9551_v57 = vmax.f32 %v9539_v24, 0.0 }
 0x6e9   :  { %v9502_v25 = vpop.f32.mrf.mxu1 }
 0x6ea   :  { %v9552_v30 = vmax.f32 %v9541_v12, 0.0 }
 0x6ec   :  { %v9579_v45 = vcombine.low %v9551_v57, %v9552_v30 }
 0x6ee   :  { %v9593_v28 = vrot.slane %v9579_v45, %v13623_v0 }
 0x6f0   :  { %v9594_v34 = vcombine.low %v9586_v15, %v9593_v28 }
 0x6f2   :  { %9599 = vst.msk [vmem:[#allocation2 + $0x28] sm:$0xff] %vm13978_vm7, %v9594_v34 }
 0x6f3   :  { %12113 = shalt.err (!%p12110_p4)
}
 0x6f4   :  { %s12127_s8 = smov 256   ;;  %s12128_s9 = smov 16  }
 0x6f5   :  { %9611 = dma.vmem_to_hbm [thread:$0]  %s9606_s6, 768, %s16161_s5, [#allocation3], %s12127_s8, %s12127_s8, %s12128_s9  }
 0x6f6   :  { %12122 = dma.done.wait [#allocation3], 768  }
 0x6f7   :  { %12123 = vsyncadd [#allocation3], 4294966528 }
 0x6f8   :  { %9615 = vsyncpa [#allocation3], 1 }

</bundles_post_ra>
